<compile_context>
chip_gen: v5e
topology: v5e:2x2
jax: 0.10.0
libtpu: 0.0.40
codegen_flags: <defaults>
</compile_context>

<pallas_src>
import numpy as np
import jax
import jax.numpy as jnp
from jax.experimental import pallas as pl
from jax.experimental.pallas import tpu as pltpu


# --------------------------------------------------------------------------- #
# host-side parameter preparation
# --------------------------------------------------------------------------- #

def make_params(key, C, eps=1e-5):
    """One BasicConv2d: conv weight + eval-mode BN, folded into (w, b)."""
    kw, kg, kb, km, kv = jax.random.split(key, 5)
    w = 0.1 * jax.random.normal(kw, (3, 3, C, C), jnp.float32)       # HWIO
    gamma = 1.0 + 0.1 * jax.random.normal(kg, (C,), jnp.float32)
    beta = 0.1 * jax.random.normal(kb, (C,), jnp.float32)
    mean = 0.1 * jax.random.normal(km, (C,), jnp.float32)
    var = jnp.abs(jax.random.normal(kv, (C,), jnp.float32)) + 0.5
    scale = gamma / jnp.sqrt(var + eps)
    w_folded = w * scale[None, None, None, :]
    b_folded = beta - mean * scale
    return w_folded, b_folded


def _bilinear_matrix_np(in_size, out_size):
    """PyTorch F.interpolate(mode='bilinear', align_corners=False) as a 1-D map."""
    if in_size == out_size:
        return np.eye(out_size, dtype=np.float32)
    scale = in_size / out_size
    dst = np.arange(out_size, dtype=np.float64)
    src = np.maximum((dst + 0.5) * scale - 0.5, 0.0)
    i0 = np.minimum(np.floor(src).astype(np.int64), in_size - 1)
    i1 = np.minimum(i0 + 1, in_size - 1)
    lam = (src - i0).astype(np.float32)
    m = np.zeros((out_size, in_size), dtype=np.float32)
    m[np.arange(out_size), i0] += 1.0 - lam
    m[np.arange(out_size), i1] += lam
    return m


def prepare_circle_params(params, sizes, C):
    """Precompute constant matrices consumed by the fused kernel.

    Returns (cws, dms, cbs, mhs, mwts):
      cws[i] : (3, S_i*C, S_i*C) banded row-conv matrices (oy = -1, 0, +1)
      dms[i] : (2, S_i, S_i)     row-shift matrices       (oy = -1, +1)
      cbs[i] : (1, S_i*C)        folded BN bias tiled over width
      mhs[i] : (4, S_i, MAXS)    height-resize matrices for sources j != i
      mwts[i]: (4, MAXS*C, S_i*C) kron(width-resize, I_C)^T for sources j != i
    """
    MAXS = max(sizes)
    MAXSC = MAXS * C
    cws, dms, cbs, mhs, mwts = [], [], [], [], []

    for i, (w_folded, b_folded) in enumerate(params):
        S = sizes[i]
        SC = S * C
        w = np.asarray(w_folded, dtype=np.float32)        # (3, 3, C, C) HWIO
        b = np.asarray(b_folded, dtype=np.float32)        # (C,)

        # banded matrices over the flattened (w, c) row: col = w_out*C + c_out
        B = np.zeros((3, SC, SC), dtype=np.float32)
        for t, oy in enumerate((-1, 0, 1)):
            for ox in (-1, 0, 1):
                for wo in range(S):
                    wi = wo + ox
                    if 0 <= wi < S:
                        B[t, wi * C:(wi + 1) * C, wo * C:(wo + 1) * C] = w[oy + 1, ox + 1]

        # row shift matrices: (D_oy @ X)[h] = X[h + oy] (zero outside range)
        D = np.zeros((2, S, S), dtype=np.float32)
        for t, oy in enumerate((-1, 1)):
            for h in range(S):
                if 0 <= h + oy < S:
                    D[t, h, h + oy] = 1.0

        cws.append(jnp.asarray(B))
        dms.append(jnp.asarray(D))
        cbs.append(jnp.asarray(np.tile(b, S)[None, :]))   # bias pre-broadcast

    for i in range(5):
        Si = sizes[i]
        SCi = Si * C
        MH = np.zeros((4, Si, MAXS), dtype=np.float32)
        MWT = np.zeros((4, MAXSC, SCi), dtype=np.float32)
        k = 0
        for j in range(5):
            if j == i:
                continue
            Sj = sizes[j]
            SCj = Sj * C
            m = _bilinear_matrix_np(Sj, Si)                               # (Si, Sj)
            MH[k, :, :Sj] = m
            MWT[k, :SCj, :] = np.kron(m.T, np.eye(C, dtype=np.float32))   # (Sj*C, Si*C)
            k += 1
        mhs.append(jnp.asarray(MH))
        mwts.append(jnp.asarray(MWT))

    return cws, dms, cbs, mhs, mwts


# --------------------------------------------------------------------------- #
# fused Pallas kernel
# --------------------------------------------------------------------------- #

def circle_forward(cms, prepared, sizes, C):
    """cms: list of 5 NHWC arrays (N, S_i, S_i, C). Returns 5 NHWC outputs."""
    cws, dms, cbs, mhs, mwts = prepared
    nscale = len(sizes)
    N = cms[0].shape[0]

    # lane-dense (N, S, S*C) row layout (free metadata reshape in HBM)
    xs = [cms[i].reshape(N, sizes[i], sizes[i] * C) for i in range(nscale)]

    def kernel(*refs):
        x_refs = refs[0 * nscale:1 * nscale]
        cw_refs = refs[1 * nscale:2 * nscale]
        dm_refs = refs[2 * nscale:3 * nscale]
        cb_refs = refs[3 * nscale:4 * nscale]
        mh_refs = refs[4 * nscale:5 * nscale]
        mwt_refs = refs[5 * nscale:6 * nscale]
        o_refs = refs[6 * nscale:7 * nscale]
        y_refs = refs[7 * nscale:8 * nscale]
        f32 = jnp.float32

        # Phase 1: 3x3 pad=1 conv + folded BN per scale, in (S, S*C) layout.
        for i in range(nscale):
            x = x_refs[i][0]                                               # (S, S*C)
            xm = jnp.dot(dm_refs[i][0], x, preferred_element_type=f32)     # rows h-1
            xp = jnp.dot(dm_refs[i][1], x, preferred_element_type=f32)     # rows h+1
            y = jnp.dot(xm, cw_refs[i][0], preferred_element_type=f32)
            y = y + jnp.dot(x, cw_refs[i][1], preferred_element_type=f32)
            y = y + jnp.dot(xp, cw_refs[i][2], preferred_element_type=f32)
            y_refs[i][...] = y + cb_refs[i][...]

        # Phase 2: sum of bilinear-resized other scales, gate, sigmoid.
        for i in range(nscale):
            Si = sizes[i]
            SCi = Si * C
            cm = y_refs[i][...]
            r = jnp.zeros((Si, SCi), f32)
            k = 0
            for j in range(nscale):
                if j == i:
                    continue
                Sj = sizes[j]
                SCj = Sj * C
                mh = mh_refs[i][k, :, :Sj]                  # (Si, Sj)
                mwt = mwt_refs[i][k, :SCj, :]               # (Sj*C, Si*C)
                z = jnp.dot(mh, y_refs[j][...], preferred_element_type=f32)
                r = r + jnp.dot(z, mwt, preferred_element_type=f32)
                k += 1
            o_refs[i][...] = jax.nn.sigmoid(cm + cm * r)[None, :, :]

    in_specs = (
        [pl.BlockSpec((1, sizes[i], sizes[i] * C), lambda n: (n, 0, 0))
         for i in range(nscale)]
        + [pl.BlockSpec(cws[i].shape, lambda n: (0, 0, 0)) for i in range(nscale)]
        + [pl.BlockSpec(dms[i].shape, lambda n: (0, 0, 0)) for i in range(nscale)]
        + [pl.BlockSpec(cbs[i].shape, lambda n: (0, 0)) for i in range(nscale)]
        + [pl.BlockSpec(mhs[i].shape, lambda n: (0, 0, 0)) for i in range(nscale)]
        + [pl.BlockSpec(mwts[i].shape, lambda n: (0, 0, 0)) for i in range(nscale)]
    )
    out_specs = [pl.BlockSpec((1, sizes[i], sizes[i] * C), lambda n: (n, 0, 0))
                 for i in range(nscale)]
    out_shape = [jax.ShapeDtypeStruct((N, sizes[i], sizes[i] * C), jnp.float32)
                 for i in range(nscale)]
    scratch = [pltpu.VMEM((sizes[i], sizes[i] * C), jnp.float32)
               for i in range(nscale)]

    outs = pl.pallas_call(
        kernel,
        grid=(N,),
        in_specs=in_specs,
        out_specs=out_specs,
        out_shape=out_shape,
        scratch_shapes=scratch,
        compiler_params=pltpu.CompilerParams(
            dimension_semantics=("parallel",)),
    )(*xs, *cws, *dms, *cbs, *mhs, *mwts)

    return tuple(outs[i].reshape(N, sizes[i], sizes[i], C) for i in range(nscale))


# --------------------------------------------------------------------------- #
# pure-JAX reference (same math, high precision)
# --------------------------------------------------------------------------- #

def _conv_ref(x, w, b):
    y = jax.lax.conv_general_dilated(
        x, w, window_strides=(1, 1), padding='SAME',
        dimension_numbers=('NHWC', 'HWIO', 'NHWC'),
        precision=jax.lax.Precision.HIGHEST)
    return y + b[None, None, None, :]


def _bilinear_resize_ref(x, out_h, out_w):
    _, H, W, _ = x.shape
    mh = jnp.asarray(_bilinear_matrix_np(H, out_h))
    mw = jnp.asarray(_bilinear_matrix_np(W, out_w))
    y = jnp.einsum('oh,nhwc->nowc', mh, x, precision=jax.lax.Precision.HIGHEST)
    y = jnp.einsum('pw,nowc->nopc', mw, y, precision=jax.lax.Precision.HIGHEST)
    return y


def circle_forward_ref(cms, params):
    conv_out = [_conv_ref(cm, w, b) for cm, (w, b) in zip(cms, params)]
    outs = []
    for i in range(5):
        Hi, Wi = conv_out[i].shape[1], conv_out[i].shape[2]
        r = sum(_bilinear_resize_ref(conv_out[j], Hi, Wi)
                for j in range(5) if j != i)
        outs.append(jax.nn.sigmoid(conv_out[i] + conv_out[i] * r))
    return tuple(outs)


# --------------------------------------------------------------------------- #
# main
# --------------------------------------------------------------------------- #

if __name__ == "__main__":
    key = jax.random.PRNGKey(0)
    N, C = 2, 8
    sizes = [32, 16, 8, 4, 2]            # cm1 .. cm5 spatial sizes (pyramid)

    k_in, k_par = jax.random.split(key)
    in_keys = jax.random.split(k_in, 5)
    cms = [jax.random.normal(in_keys[i], (N, s, s, C), jnp.float32)
           for i, s in enumerate(sizes)]

    par_keys = jax.random.split(k_par, 5)
    params = [make_params(par_keys[i], C) for i in range(5)]

    prepared = prepare_circle_params(params, sizes, C)
    outs = jax.block_until_ready(circle_forward(cms, prepared, sizes, C))

    # sanity check against a pure-JAX reference
    refs = jax.block_until_ready(circle_forward_ref(cms, params))
    for o, r in zip(outs, refs):
        np.testing.assert_allclose(np.asarray(o), np.asarray(r),
                                   rtol=1e-4, atol=1e-4)

    print("KERNEL_OK")
</pallas_src>

<mosaic_0001>
module attributes {stable_mosaic.version = 11 : i64} {
  func.func @kernel(%arg0: i32, %arg1: memref<1x32x256xf32, #tpu.memory_space<vmem>>, %arg2: memref<1x16x128xf32, #tpu.memory_space<vmem>>, %arg3: memref<1x8x64xf32, #tpu.memory_space<vmem>>, %arg4: memref<1x4x32xf32, #tpu.memory_space<vmem>>, %arg5: memref<1x2x16xf32, #tpu.memory_space<vmem>>, %arg6: memref<3x256x256xf32, #tpu.memory_space<vmem>>, %arg7: memref<3x128x128xf32, #tpu.memory_space<vmem>>, %arg8: memref<3x64x64xf32, #tpu.memory_space<vmem>>, %arg9: memref<3x32x32xf32, #tpu.memory_space<vmem>>, %arg10: memref<3x16x16xf32, #tpu.memory_space<vmem>>, %arg11: memref<2x32x32xf32, #tpu.memory_space<vmem>>, %arg12: memref<2x16x16xf32, #tpu.memory_space<vmem>>, %arg13: memref<2x8x8xf32, #tpu.memory_space<vmem>>, %arg14: memref<2x4x4xf32, #tpu.memory_space<vmem>>, %arg15: memref<2x2x2xf32, #tpu.memory_space<vmem>>, %arg16: memref<1x256xf32, #tpu.memory_space<vmem>>, %arg17: memref<1x128xf32, #tpu.memory_space<vmem>>, %arg18: memref<1x64xf32, #tpu.memory_space<vmem>>, %arg19: memref<1x32xf32, #tpu.memory_space<vmem>>, %arg20: memref<1x16xf32, #tpu.memory_space<vmem>>, %arg21: memref<4x32x32xf32, #tpu.memory_space<vmem>>, %arg22: memref<4x16x32xf32, #tpu.memory_space<vmem>>, %arg23: memref<4x8x32xf32, #tpu.memory_space<vmem>>, %arg24: memref<4x4x32xf32, #tpu.memory_space<vmem>>, %arg25: memref<4x2x32xf32, #tpu.memory_space<vmem>>, %arg26: memref<4x256x256xf32, #tpu.memory_space<vmem>>, %arg27: memref<4x256x128xf32, #tpu.memory_space<vmem>>, %arg28: memref<4x256x64xf32, #tpu.memory_space<vmem>>, %arg29: memref<4x256x32xf32, #tpu.memory_space<vmem>>, %arg30: memref<4x256x16xf32, #tpu.memory_space<vmem>>, %arg31: memref<1x32x256xf32, #tpu.memory_space<vmem>>, %arg32: memref<1x16x128xf32, #tpu.memory_space<vmem>>, %arg33: memref<1x8x64xf32, #tpu.memory_space<vmem>>, %arg34: memref<1x4x32xf32, #tpu.memory_space<vmem>>, %arg35: memref<1x2x16xf32, #tpu.memory_space<vmem>>, %arg36: memref<32x256xf32, #tpu.memory_space<vmem>>, %arg37: memref<16x128xf32, #tpu.memory_space<vmem>>, %arg38: memref<8x64xf32, #tpu.memory_space<vmem>>, %arg39: memref<4x32xf32, #tpu.memory_space<vmem>>, %arg40: memref<2x16xf32, #tpu.memory_space<vmem>>) attributes {dimension_semantics = [#tpu.dimension_semantics<parallel>], iteration_bounds = array<i64: 2>, scalar_prefetch = 0 : i64, scratch_operands = 5 : i64, tpu.core_type = #tpu.core_type<tc>, window_params = [{transform_indices = @transform_0, window_bounds = array<i64: 1, 32, 256>}, {transform_indices = @transform_1, window_bounds = array<i64: 1, 16, 128>}, {transform_indices = @transform_2, window_bounds = array<i64: 1, 8, 64>}, {transform_indices = @transform_3, window_bounds = array<i64: 1, 4, 32>}, {transform_indices = @transform_4, window_bounds = array<i64: 1, 2, 16>}, {pipeline_mode = #tpu.pipeline_mode<synchronous>, transform_indices = @transform_5, window_bounds = array<i64: 3, 256, 256>}, {pipeline_mode = #tpu.pipeline_mode<synchronous>, transform_indices = @transform_6, window_bounds = array<i64: 3, 128, 128>}, {pipeline_mode = #tpu.pipeline_mode<synchronous>, transform_indices = @transform_7, window_bounds = array<i64: 3, 64, 64>}, {pipeline_mode = #tpu.pipeline_mode<synchronous>, transform_indices = @transform_8, window_bounds = array<i64: 3, 32, 32>}, {pipeline_mode = #tpu.pipeline_mode<synchronous>, transform_indices = @transform_9, window_bounds = array<i64: 3, 16, 16>}, {pipeline_mode = #tpu.pipeline_mode<synchronous>, transform_indices = @transform_10, window_bounds = array<i64: 2, 32, 32>}, {pipeline_mode = #tpu.pipeline_mode<synchronous>, transform_indices = @transform_11, window_bounds = array<i64: 2, 16, 16>}, {pipeline_mode = #tpu.pipeline_mode<synchronous>, transform_indices = @transform_12, window_bounds = array<i64: 2, 8, 8>}, {pipeline_mode = #tpu.pipeline_mode<synchronous>, transform_indices = @transform_13, window_bounds = array<i64: 2, 4, 4>}, {pipeline_mode = #tpu.pipeline_mode<synchronous>, transform_indices = @transform_14, window_bounds = array<i64: 2, 2, 2>}, {pipeline_mode = #tpu.pipeline_mode<synchronous>, transform_indices = @transform_15, window_bounds = array<i64: 1, 256>}, {pipeline_mode = #tpu.pipeline_mode<synchronous>, transform_indices = @transform_16, window_bounds = array<i64: 1, 128>}, {pipeline_mode = #tpu.pipeline_mode<synchronous>, transform_indices = @transform_17, window_bounds = array<i64: 1, 64>}, {pipeline_mode = #tpu.pipeline_mode<synchronous>, transform_indices = @transform_18, window_bounds = array<i64: 1, 32>}, {pipeline_mode = #tpu.pipeline_mode<synchronous>, transform_indices = @transform_19, window_bounds = array<i64: 1, 16>}, {pipeline_mode = #tpu.pipeline_mode<synchronous>, transform_indices = @transform_20, window_bounds = array<i64: 4, 32, 32>}, {pipeline_mode = #tpu.pipeline_mode<synchronous>, transform_indices = @transform_21, window_bounds = array<i64: 4, 16, 32>}, {pipeline_mode = #tpu.pipeline_mode<synchronous>, transform_indices = @transform_22, window_bounds = array<i64: 4, 8, 32>}, {pipeline_mode = #tpu.pipeline_mode<synchronous>, transform_indices = @transform_23, window_bounds = array<i64: 4, 4, 32>}, {pipeline_mode = #tpu.pipeline_mode<synchronous>, transform_indices = @transform_24, window_bounds = array<i64: 4, 2, 32>}, {pipeline_mode = #tpu.pipeline_mode<synchronous>, transform_indices = @transform_25, window_bounds = array<i64: 4, 256, 256>}, {pipeline_mode = #tpu.pipeline_mode<synchronous>, transform_indices = @transform_26, window_bounds = array<i64: 4, 256, 128>}, {pipeline_mode = #tpu.pipeline_mode<synchronous>, transform_indices = @transform_27, window_bounds = array<i64: 4, 256, 64>}, {pipeline_mode = #tpu.pipeline_mode<synchronous>, transform_indices = @transform_28, window_bounds = array<i64: 4, 256, 32>}, {pipeline_mode = #tpu.pipeline_mode<synchronous>, transform_indices = @transform_29, window_bounds = array<i64: 4, 256, 16>}, {transform_indices = @transform_30, window_bounds = array<i64: 1, 32, 256>}, {transform_indices = @transform_31, window_bounds = array<i64: 1, 16, 128>}, {transform_indices = @transform_32, window_bounds = array<i64: 1, 8, 64>}, {transform_indices = @transform_33, window_bounds = array<i64: 1, 4, 32>}, {transform_indices = @transform_34, window_bounds = array<i64: 1, 2, 16>}]} {
    %c0 = arith.constant 0 : index
    %c0_0 = arith.constant 0 : index
    %c0_1 = arith.constant 0 : index
    %0 = vector.load %arg1[%c0, %c0_0, %c0_1] : memref<1x32x256xf32, #tpu.memory_space<vmem>>, vector<1x32x256xf32>
    %1 = vector.shape_cast %0 : vector<1x32x256xf32> to vector<32x256xf32>
    %c0_2 = arith.constant 0 : index
    %c0_3 = arith.constant 0 : index
    %c0_4 = arith.constant 0 : index
    %2 = vector.load %arg11[%c0_2, %c0_3, %c0_4] : memref<2x32x32xf32, #tpu.memory_space<vmem>>, vector<1x32x32xf32>
    %3 = vector.shape_cast %2 : vector<1x32x32xf32> to vector<32x32xf32>
    %cst = arith.constant dense<0.000000e+00> : vector<32x256xf32>
    %4 = tpu.matmul %3, %1, %cst {dimension_numbers = #tpu.dot_dimension_numbers<[1], [0], [0], [1], [0, 0, 1, 1], [], []>} : vector<32x32xf32>, vector<32x256xf32>, vector<32x256xf32> -> vector<32x256xf32>
    %c1 = arith.constant 1 : index
    %c0_5 = arith.constant 0 : index
    %c0_6 = arith.constant 0 : index
    %5 = vector.load %arg11[%c1, %c0_5, %c0_6] : memref<2x32x32xf32, #tpu.memory_space<vmem>>, vector<1x32x32xf32>
    %6 = vector.shape_cast %5 : vector<1x32x32xf32> to vector<32x32xf32>
    %cst_7 = arith.constant dense<0.000000e+00> : vector<32x256xf32>
    %7 = tpu.matmul %6, %1, %cst_7 {dimension_numbers = #tpu.dot_dimension_numbers<[1], [0], [0], [1], [0, 0, 1, 1], [], []>} : vector<32x32xf32>, vector<32x256xf32>, vector<32x256xf32> -> vector<32x256xf32>
    %c0_8 = arith.constant 0 : index
    %c0_9 = arith.constant 0 : index
    %c0_10 = arith.constant 0 : index
    %8 = vector.load %arg6[%c0_8, %c0_9, %c0_10] : memref<3x256x256xf32, #tpu.memory_space<vmem>>, vector<1x256x256xf32>
    %9 = vector.shape_cast %8 : vector<1x256x256xf32> to vector<256x256xf32>
    %cst_11 = arith.constant dense<0.000000e+00> : vector<32x256xf32>
    %10 = tpu.matmul %4, %9, %cst_11 {dimension_numbers = #tpu.dot_dimension_numbers<[1], [0], [0], [1], [0, 0, 1, 1], [], []>} : vector<32x256xf32>, vector<256x256xf32>, vector<32x256xf32> -> vector<32x256xf32>
    %c1_12 = arith.constant 1 : index
    %c0_13 = arith.constant 0 : index
    %c0_14 = arith.constant 0 : index
    %11 = vector.load %arg6[%c1_12, %c0_13, %c0_14] : memref<3x256x256xf32, #tpu.memory_space<vmem>>, vector<1x256x256xf32>
    %12 = vector.shape_cast %11 : vector<1x256x256xf32> to vector<256x256xf32>
    %cst_15 = arith.constant dense<0.000000e+00> : vector<32x256xf32>
    %13 = tpu.matmul %1, %12, %cst_15 {dimension_numbers = #tpu.dot_dimension_numbers<[1], [0], [0], [1], [0, 0, 1, 1], [], []>} : vector<32x256xf32>, vector<256x256xf32>, vector<32x256xf32> -> vector<32x256xf32>
    %14 = arith.addf %10, %13 : vector<32x256xf32>
    %c2 = arith.constant 2 : index
    %c0_16 = arith.constant 0 : index
    %c0_17 = arith.constant 0 : index
    %15 = vector.load %arg6[%c2, %c0_16, %c0_17] : memref<3x256x256xf32, #tpu.memory_space<vmem>>, vector<1x256x256xf32>
    %16 = vector.shape_cast %15 : vector<1x256x256xf32> to vector<256x256xf32>
    %cst_18 = arith.constant dense<0.000000e+00> : vector<32x256xf32>
    %17 = tpu.matmul %7, %16, %cst_18 {dimension_numbers = #tpu.dot_dimension_numbers<[1], [0], [0], [1], [0, 0, 1, 1], [], []>} : vector<32x256xf32>, vector<256x256xf32>, vector<32x256xf32> -> vector<32x256xf32>
    %18 = arith.addf %14, %17 : vector<32x256xf32>
    %c0_19 = arith.constant 0 : index
    %c0_20 = arith.constant 0 : index
    %19 = vector.load %arg16[%c0_19, %c0_20] : memref<1x256xf32, #tpu.memory_space<vmem>>, vector<1x256xf32>
    %20 = vector.broadcast %19 : vector<1x256xf32> to vector<32x256xf32>
    %21 = arith.addf %18, %20 : vector<32x256xf32>
    %c0_21 = arith.constant 0 : index
    %c0_22 = arith.constant 0 : index
    %22 = vector.load %arg36[%c0_21, %c0_22] : memref<32x256xf32, #tpu.memory_space<vmem>>, vector<32x256xf32>
    tpu.vector_store %arg36[%c0_21, %c0_22], %21 {strides = array<i32>} : memref<32x256xf32, #tpu.memory_space<vmem>>, vector<32x256xf32>,
    %c0_23 = arith.constant 0 : index
    %c0_24 = arith.constant 0 : index
    %c0_25 = arith.constant 0 : index
    %23 = vector.load %arg2[%c0_23, %c0_24, %c0_25] : memref<1x16x128xf32, #tpu.memory_space<vmem>>, vector<1x16x128xf32>
    %24 = vector.shape_cast %23 : vector<1x16x128xf32> to vector<16x128xf32>
    %c0_26 = arith.constant 0 : index
    %c0_27 = arith.constant 0 : index
    %c0_28 = arith.constant 0 : index
    %25 = vector.load %arg12[%c0_26, %c0_27, %c0_28] : memref<2x16x16xf32, #tpu.memory_space<vmem>>, vector<1x16x16xf32>
    %26 = vector.shape_cast %25 : vector<1x16x16xf32> to vector<16x16xf32>
    %cst_29 = arith.constant dense<0.000000e+00> : vector<16x128xf32>
    %27 = tpu.matmul %26, %24, %cst_29 {dimension_numbers = #tpu.dot_dimension_numbers<[1], [0], [0], [1], [0, 0, 1, 1], [], []>} : vector<16x16xf32>, vector<16x128xf32>, vector<16x128xf32> -> vector<16x128xf32>
    %c1_30 = arith.constant 1 : index
    %c0_31 = arith.constant 0 : index
    %c0_32 = arith.constant 0 : index
    %28 = vector.load %arg12[%c1_30, %c0_31, %c0_32] : memref<2x16x16xf32, #tpu.memory_space<vmem>>, vector<1x16x16xf32>
    %29 = vector.shape_cast %28 : vector<1x16x16xf32> to vector<16x16xf32>
    %cst_33 = arith.constant dense<0.000000e+00> : vector<16x128xf32>
    %30 = tpu.matmul %29, %24, %cst_33 {dimension_numbers = #tpu.dot_dimension_numbers<[1], [0], [0], [1], [0, 0, 1, 1], [], []>} : vector<16x16xf32>, vector<16x128xf32>, vector<16x128xf32> -> vector<16x128xf32>
    %c0_34 = arith.constant 0 : index
    %c0_35 = arith.constant 0 : index
    %c0_36 = arith.constant 0 : index
    %31 = vector.load %arg7[%c0_34, %c0_35, %c0_36] : memref<3x128x128xf32, #tpu.memory_space<vmem>>, vector<1x128x128xf32>
    %32 = vector.shape_cast %31 : vector<1x128x128xf32> to vector<128x128xf32>
    %cst_37 = arith.constant dense<0.000000e+00> : vector<16x128xf32>
    %33 = tpu.matmul %27, %32, %cst_37 {dimension_numbers = #tpu.dot_dimension_numbers<[1], [0], [0], [1], [0, 0, 1, 1], [], []>} : vector<16x128xf32>, vector<128x128xf32>, vector<16x128xf32> -> vector<16x128xf32>
    %c1_38 = arith.constant 1 : index
    %c0_39 = arith.constant 0 : index
    %c0_40 = arith.constant 0 : index
    %34 = vector.load %arg7[%c1_38, %c0_39, %c0_40] : memref<3x128x128xf32, #tpu.memory_space<vmem>>, vector<1x128x128xf32>
    %35 = vector.shape_cast %34 : vector<1x128x128xf32> to vector<128x128xf32>
    %cst_41 = arith.constant dense<0.000000e+00> : vector<16x128xf32>
    %36 = tpu.matmul %24, %35, %cst_41 {dimension_numbers = #tpu.dot_dimension_numbers<[1], [0], [0], [1], [0, 0, 1, 1], [], []>} : vector<16x128xf32>, vector<128x128xf32>, vector<16x128xf32> -> vector<16x128xf32>
    %37 = arith.addf %33, %36 : vector<16x128xf32>
    %c2_42 = arith.constant 2 : index
    %c0_43 = arith.constant 0 : index
    %c0_44 = arith.constant 0 : index
    %38 = vector.load %arg7[%c2_42, %c0_43, %c0_44] : memref<3x128x128xf32, #tpu.memory_space<vmem>>, vector<1x128x128xf32>
    %39 = vector.shape_cast %38 : vector<1x128x128xf32> to vector<128x128xf32>
    %cst_45 = arith.constant dense<0.000000e+00> : vector<16x128xf32>
    %40 = tpu.matmul %30, %39, %cst_45 {dimension_numbers = #tpu.dot_dimension_numbers<[1], [0], [0], [1], [0, 0, 1, 1], [], []>} : vector<16x128xf32>, vector<128x128xf32>, vector<16x128xf32> -> vector<16x128xf32>
    %41 = arith.addf %37, %40 : vector<16x128xf32>
    %c0_46 = arith.constant 0 : index
    %c0_47 = arith.constant 0 : index
    %42 = vector.load %arg17[%c0_46, %c0_47] : memref<1x128xf32, #tpu.memory_space<vmem>>, vector<1x128xf32>
    %43 = vector.broadcast %42 : vector<1x128xf32> to vector<16x128xf32>
    %44 = arith.addf %41, %43 : vector<16x128xf32>
    %c0_48 = arith.constant 0 : index
    %c0_49 = arith.constant 0 : index
    %45 = vector.load %arg37[%c0_48, %c0_49] : memref<16x128xf32, #tpu.memory_space<vmem>>, vector<16x128xf32>
    tpu.vector_store %arg37[%c0_48, %c0_49], %44 {strides = array<i32>} : memref<16x128xf32, #tpu.memory_space<vmem>>, vector<16x128xf32>,
    %c0_50 = arith.constant 0 : index
    %c0_51 = arith.constant 0 : index
    %c0_52 = arith.constant 0 : index
    %46 = vector.load %arg3[%c0_50, %c0_51, %c0_52] : memref<1x8x64xf32, #tpu.memory_space<vmem>>, vector<1x8x64xf32>
    %47 = vector.shape_cast %46 : vector<1x8x64xf32> to vector<8x64xf32>
    %c0_53 = arith.constant 0 : index
    %c0_54 = arith.constant 0 : index
    %c0_55 = arith.constant 0 : index
    %48 = vector.load %arg13[%c0_53, %c0_54, %c0_55] : memref<2x8x8xf32, #tpu.memory_space<vmem>>, vector<1x8x8xf32>
    %49 = vector.shape_cast %48 : vector<1x8x8xf32> to vector<8x8xf32>
    %cst_56 = arith.constant dense<0.000000e+00> : vector<8x64xf32>
    %50 = tpu.matmul %49, %47, %cst_56 {dimension_numbers = #tpu.dot_dimension_numbers<[1], [0], [0], [1], [0, 0, 1, 1], [], []>} : vector<8x8xf32>, vector<8x64xf32>, vector<8x64xf32> -> vector<8x64xf32>
    %c1_57 = arith.constant 1 : index
    %c0_58 = arith.constant 0 : index
    %c0_59 = arith.constant 0 : index
    %51 = vector.load %arg13[%c1_57, %c0_58, %c0_59] : memref<2x8x8xf32, #tpu.memory_space<vmem>>, vector<1x8x8xf32>
    %52 = vector.shape_cast %51 : vector<1x8x8xf32> to vector<8x8xf32>
    %cst_60 = arith.constant dense<0.000000e+00> : vector<8x64xf32>
    %53 = tpu.matmul %52, %47, %cst_60 {dimension_numbers = #tpu.dot_dimension_numbers<[1], [0], [0], [1], [0, 0, 1, 1], [], []>} : vector<8x8xf32>, vector<8x64xf32>, vector<8x64xf32> -> vector<8x64xf32>
    %c0_61 = arith.constant 0 : index
    %c0_62 = arith.constant 0 : index
    %c0_63 = arith.constant 0 : index
    %54 = vector.load %arg8[%c0_61, %c0_62, %c0_63] : memref<3x64x64xf32, #tpu.memory_space<vmem>>, vector<1x64x64xf32>
    %55 = vector.shape_cast %54 : vector<1x64x64xf32> to vector<64x64xf32>
    %cst_64 = arith.constant dense<0.000000e+00> : vector<8x64xf32>
    %56 = tpu.matmul %50, %55, %cst_64 {dimension_numbers = #tpu.dot_dimension_numbers<[1], [0], [0], [1], [0, 0, 1, 1], [], []>} : vector<8x64xf32>, vector<64x64xf32>, vector<8x64xf32> -> vector<8x64xf32>
    %c1_65 = arith.constant 1 : index
    %c0_66 = arith.constant 0 : index
    %c0_67 = arith.constant 0 : index
    %57 = vector.load %arg8[%c1_65, %c0_66, %c0_67] : memref<3x64x64xf32, #tpu.memory_space<vmem>>, vector<1x64x64xf32>
    %58 = vector.shape_cast %57 : vector<1x64x64xf32> to vector<64x64xf32>
    %cst_68 = arith.constant dense<0.000000e+00> : vector<8x64xf32>
    %59 = tpu.matmul %47, %58, %cst_68 {dimension_numbers = #tpu.dot_dimension_numbers<[1], [0], [0], [1], [0, 0, 1, 1], [], []>} : vector<8x64xf32>, vector<64x64xf32>, vector<8x64xf32> -> vector<8x64xf32>
    %60 = arith.addf %56, %59 : vector<8x64xf32>
    %c2_69 = arith.constant 2 : index
    %c0_70 = arith.constant 0 : index
    %c0_71 = arith.constant 0 : index
    %61 = vector.load %arg8[%c2_69, %c0_70, %c0_71] : memref<3x64x64xf32, #tpu.memory_space<vmem>>, vector<1x64x64xf32>
    %62 = vector.shape_cast %61 : vector<1x64x64xf32> to vector<64x64xf32>
    %cst_72 = arith.constant dense<0.000000e+00> : vector<8x64xf32>
    %63 = tpu.matmul %53, %62, %cst_72 {dimension_numbers = #tpu.dot_dimension_numbers<[1], [0], [0], [1], [0, 0, 1, 1], [], []>} : vector<8x64xf32>, vector<64x64xf32>, vector<8x64xf32> -> vector<8x64xf32>
    %64 = arith.addf %60, %63 : vector<8x64xf32>
    %c0_73 = arith.constant 0 : index
    %c0_74 = arith.constant 0 : index
    %65 = vector.load %arg18[%c0_73, %c0_74] : memref<1x64xf32, #tpu.memory_space<vmem>>, vector<1x64xf32>
    %66 = vector.broadcast %65 : vector<1x64xf32> to vector<8x64xf32>
    %67 = arith.addf %64, %66 : vector<8x64xf32>
    %c0_75 = arith.constant 0 : index
    %c0_76 = arith.constant 0 : index
    %68 = vector.load %arg38[%c0_75, %c0_76] : memref<8x64xf32, #tpu.memory_space<vmem>>, vector<8x64xf32>
    tpu.vector_store %arg38[%c0_75, %c0_76], %67 {strides = array<i32>} : memref<8x64xf32, #tpu.memory_space<vmem>>, vector<8x64xf32>,
    %c0_77 = arith.constant 0 : index
    %c0_78 = arith.constant 0 : index
    %c0_79 = arith.constant 0 : index
    %69 = vector.load %arg4[%c0_77, %c0_78, %c0_79] : memref<1x4x32xf32, #tpu.memory_space<vmem>>, vector<1x4x32xf32>
    %70 = vector.shape_cast %69 : vector<1x4x32xf32> to vector<4x32xf32>
    %c0_80 = arith.constant 0 : index
    %c0_81 = arith.constant 0 : index
    %c0_82 = arith.constant 0 : index
    %71 = vector.load %arg14[%c0_80, %c0_81, %c0_82] : memref<2x4x4xf32, #tpu.memory_space<vmem>>, vector<1x4x4xf32>
    %72 = vector.shape_cast %71 : vector<1x4x4xf32> to vector<4x4xf32>
    %cst_83 = arith.constant dense<0.000000e+00> : vector<4x32xf32>
    %73 = tpu.matmul %72, %70, %cst_83 {dimension_numbers = #tpu.dot_dimension_numbers<[1], [0], [0], [1], [0, 0, 1, 1], [], []>} : vector<4x4xf32>, vector<4x32xf32>, vector<4x32xf32> -> vector<4x32xf32>
    %c1_84 = arith.constant 1 : index
    %c0_85 = arith.constant 0 : index
    %c0_86 = arith.constant 0 : index
    %74 = vector.load %arg14[%c1_84, %c0_85, %c0_86] : memref<2x4x4xf32, #tpu.memory_space<vmem>>, vector<1x4x4xf32>
    %75 = vector.shape_cast %74 : vector<1x4x4xf32> to vector<4x4xf32>
    %cst_87 = arith.constant dense<0.000000e+00> : vector<4x32xf32>
    %76 = tpu.matmul %75, %70, %cst_87 {dimension_numbers = #tpu.dot_dimension_numbers<[1], [0], [0], [1], [0, 0, 1, 1], [], []>} : vector<4x4xf32>, vector<4x32xf32>, vector<4x32xf32> -> vector<4x32xf32>
    %c0_88 = arith.constant 0 : index
    %c0_89 = arith.constant 0 : index
    %c0_90 = arith.constant 0 : index
    %77 = vector.load %arg9[%c0_88, %c0_89, %c0_90] : memref<3x32x32xf32, #tpu.memory_space<vmem>>, vector<1x32x32xf32>
    %78 = vector.shape_cast %77 : vector<1x32x32xf32> to vector<32x32xf32>
    %cst_91 = arith.constant dense<0.000000e+00> : vector<4x32xf32>
    %79 = tpu.matmul %73, %78, %cst_91 {dimension_numbers = #tpu.dot_dimension_numbers<[1], [0], [0], [1], [0, 0, 1, 1], [], []>} : vector<4x32xf32>, vector<32x32xf32>, vector<4x32xf32> -> vector<4x32xf32>
    %c1_92 = arith.constant 1 : index
    %c0_93 = arith.constant 0 : index
    %c0_94 = arith.constant 0 : index
    %80 = vector.load %arg9[%c1_92, %c0_93, %c0_94] : memref<3x32x32xf32, #tpu.memory_space<vmem>>, vector<1x32x32xf32>
    %81 = vector.shape_cast %80 : vector<1x32x32xf32> to vector<32x32xf32>
    %cst_95 = arith.constant dense<0.000000e+00> : vector<4x32xf32>
    %82 = tpu.matmul %70, %81, %cst_95 {dimension_numbers = #tpu.dot_dimension_numbers<[1], [0], [0], [1], [0, 0, 1, 1], [], []>} : vector<4x32xf32>, vector<32x32xf32>, vector<4x32xf32> -> vector<4x32xf32>
    %83 = arith.addf %79, %82 : vector<4x32xf32>
    %c2_96 = arith.constant 2 : index
    %c0_97 = arith.constant 0 : index
    %c0_98 = arith.constant 0 : index
    %84 = vector.load %arg9[%c2_96, %c0_97, %c0_98] : memref<3x32x32xf32, #tpu.memory_space<vmem>>, vector<1x32x32xf32>
    %85 = vector.shape_cast %84 : vector<1x32x32xf32> to vector<32x32xf32>
    %cst_99 = arith.constant dense<0.000000e+00> : vector<4x32xf32>
    %86 = tpu.matmul %76, %85, %cst_99 {dimension_numbers = #tpu.dot_dimension_numbers<[1], [0], [0], [1], [0, 0, 1, 1], [], []>} : vector<4x32xf32>, vector<32x32xf32>, vector<4x32xf32> -> vector<4x32xf32>
    %87 = arith.addf %83, %86 : vector<4x32xf32>
    %c0_100 = arith.constant 0 : index
    %c0_101 = arith.constant 0 : index
    %88 = vector.load %arg19[%c0_100, %c0_101] : memref<1x32xf32, #tpu.memory_space<vmem>>, vector<1x32xf32>
    %89 = vector.broadcast %88 : vector<1x32xf32> to vector<4x32xf32>
    %90 = arith.addf %87, %89 : vector<4x32xf32>
    %c0_102 = arith.constant 0 : index
    %c0_103 = arith.constant 0 : index
    %91 = vector.load %arg39[%c0_102, %c0_103] : memref<4x32xf32, #tpu.memory_space<vmem>>, vector<4x32xf32>
    tpu.vector_store %arg39[%c0_102, %c0_103], %90 {strides = array<i32>} : memref<4x32xf32, #tpu.memory_space<vmem>>, vector<4x32xf32>,
    %c0_104 = arith.constant 0 : index
    %c0_105 = arith.constant 0 : index
    %c0_106 = arith.constant 0 : index
    %92 = vector.load %arg5[%c0_104, %c0_105, %c0_106] : memref<1x2x16xf32, #tpu.memory_space<vmem>>, vector<1x2x16xf32>
    %93 = vector.shape_cast %92 : vector<1x2x16xf32> to vector<2x16xf32>
    %c0_107 = arith.constant 0 : index
    %c0_108 = arith.constant 0 : index
    %c0_109 = arith.constant 0 : index
    %94 = vector.load %arg15[%c0_107, %c0_108, %c0_109] : memref<2x2x2xf32, #tpu.memory_space<vmem>>, vector<1x2x2xf32>
    %95 = vector.shape_cast %94 : vector<1x2x2xf32> to vector<2x2xf32>
    %cst_110 = arith.constant dense<0.000000e+00> : vector<2x16xf32>
    %96 = tpu.matmul %95, %93, %cst_110 {dimension_numbers = #tpu.dot_dimension_numbers<[1], [0], [0], [1], [0, 0, 1, 1], [], []>} : vector<2x2xf32>, vector<2x16xf32>, vector<2x16xf32> -> vector<2x16xf32>
    %c1_111 = arith.constant 1 : index
    %c0_112 = arith.constant 0 : index
    %c0_113 = arith.constant 0 : index
    %97 = vector.load %arg15[%c1_111, %c0_112, %c0_113] : memref<2x2x2xf32, #tpu.memory_space<vmem>>, vector<1x2x2xf32>
    %98 = vector.shape_cast %97 : vector<1x2x2xf32> to vector<2x2xf32>
    %cst_114 = arith.constant dense<0.000000e+00> : vector<2x16xf32>
    %99 = tpu.matmul %98, %93, %cst_114 {dimension_numbers = #tpu.dot_dimension_numbers<[1], [0], [0], [1], [0, 0, 1, 1], [], []>} : vector<2x2xf32>, vector<2x16xf32>, vector<2x16xf32> -> vector<2x16xf32>
    %c0_115 = arith.constant 0 : index
    %c0_116 = arith.constant 0 : index
    %c0_117 = arith.constant 0 : index
    %100 = vector.load %arg10[%c0_115, %c0_116, %c0_117] : memref<3x16x16xf32, #tpu.memory_space<vmem>>, vector<1x16x16xf32>
    %101 = vector.shape_cast %100 : vector<1x16x16xf32> to vector<16x16xf32>
    %cst_118 = arith.constant dense<0.000000e+00> : vector<2x16xf32>
    %102 = tpu.matmul %96, %101, %cst_118 {dimension_numbers = #tpu.dot_dimension_numbers<[1], [0], [0], [1], [0, 0, 1, 1], [], []>} : vector<2x16xf32>, vector<16x16xf32>, vector<2x16xf32> -> vector<2x16xf32>
    %c1_119 = arith.constant 1 : index
    %c0_120 = arith.constant 0 : index
    %c0_121 = arith.constant 0 : index
    %103 = vector.load %arg10[%c1_119, %c0_120, %c0_121] : memref<3x16x16xf32, #tpu.memory_space<vmem>>, vector<1x16x16xf32>
    %104 = vector.shape_cast %103 : vector<1x16x16xf32> to vector<16x16xf32>
    %cst_122 = arith.constant dense<0.000000e+00> : vector<2x16xf32>
    %105 = tpu.matmul %93, %104, %cst_122 {dimension_numbers = #tpu.dot_dimension_numbers<[1], [0], [0], [1], [0, 0, 1, 1], [], []>} : vector<2x16xf32>, vector<16x16xf32>, vector<2x16xf32> -> vector<2x16xf32>
    %106 = arith.addf %102, %105 : vector<2x16xf32>
    %c2_123 = arith.constant 2 : index
    %c0_124 = arith.constant 0 : index
    %c0_125 = arith.constant 0 : index
    %107 = vector.load %arg10[%c2_123, %c0_124, %c0_125] : memref<3x16x16xf32, #tpu.memory_space<vmem>>, vector<1x16x16xf32>
    %108 = vector.shape_cast %107 : vector<1x16x16xf32> to vector<16x16xf32>
    %cst_126 = arith.constant dense<0.000000e+00> : vector<2x16xf32>
    %109 = tpu.matmul %99, %108, %cst_126 {dimension_numbers = #tpu.dot_dimension_numbers<[1], [0], [0], [1], [0, 0, 1, 1], [], []>} : vector<2x16xf32>, vector<16x16xf32>, vector<2x16xf32> -> vector<2x16xf32>
    %110 = arith.addf %106, %109 : vector<2x16xf32>
    %c0_127 = arith.constant 0 : index
    %c0_128 = arith.constant 0 : index
    %111 = vector.load %arg20[%c0_127, %c0_128] : memref<1x16xf32, #tpu.memory_space<vmem>>, vector<1x16xf32>
    %112 = vector.broadcast %111 : vector<1x16xf32> to vector<2x16xf32>
    %113 = arith.addf %110, %112 : vector<2x16xf32>
    %c0_129 = arith.constant 0 : index
    %c0_130 = arith.constant 0 : index
    %114 = vector.load %arg40[%c0_129, %c0_130] : memref<2x16xf32, #tpu.memory_space<vmem>>, vector<2x16xf32>
    tpu.vector_store %arg40[%c0_129, %c0_130], %113 {strides = array<i32>} : memref<2x16xf32, #tpu.memory_space<vmem>>, vector<2x16xf32>,
    %c0_131 = arith.constant 0 : index
    %c0_132 = arith.constant 0 : index
    %115 = vector.load %arg36[%c0_131, %c0_132] : memref<32x256xf32, #tpu.memory_space<vmem>>, vector<32x256xf32>
    %cst_133 = arith.constant 0.000000e+00 : f32
    %116 = vector.broadcast %cst_133 : f32 to vector<32x256xf32>
    %c0_134 = arith.constant 0 : index
    %c0_135 = arith.constant 0 : index
    %c0_136 = arith.constant 0 : index
    %117 = vector.load %arg21[%c0_134, %c0_135, %c0_136] : memref<4x32x32xf32, #tpu.memory_space<vmem>>, vector<1x32x16xf32>
    %118 = vector.shape_cast %117 : vector<1x32x16xf32> to vector<32x16xf32>
    %c0_137 = arith.constant 0 : index
    %c0_138 = arith.constant 0 : index
    %c0_139 = arith.constant 0 : index
    %119 = vector.load %arg26[%c0_137, %c0_138, %c0_139] : memref<4x256x256xf32, #tpu.memory_space<vmem>>, vector<1x128x256xf32>
    %120 = vector.shape_cast %119 : vector<1x128x256xf32> to vector<128x256xf32>
    %c0_140 = arith.constant 0 : index
    %c0_141 = arith.constant 0 : index
    %121 = vector.load %arg37[%c0_140, %c0_141] : memref<16x128xf32, #tpu.memory_space<vmem>>, vector<16x128xf32>
    %cst_142 = arith.constant dense<0.000000e+00> : vector<32x128xf32>
    %122 = tpu.matmul %118, %121, %cst_142 {dimension_numbers = #tpu.dot_dimension_numbers<[1], [0], [0], [1], [0, 0, 1, 1], [], []>} : vector<32x16xf32>, vector<16x128xf32>, vector<32x128xf32> -> vector<32x128xf32>
    %cst_143 = arith.constant dense<0.000000e+00> : vector<32x256xf32>
    %123 = tpu.matmul %122, %120, %cst_143 {dimension_numbers = #tpu.dot_dimension_numbers<[1], [0], [0], [1], [0, 0, 1, 1], [], []>} : vector<32x128xf32>, vector<128x256xf32>, vector<32x256xf32> -> vector<32x256xf32>
    %124 = arith.addf %116, %123 : vector<32x256xf32>
    %c1_144 = arith.constant 1 : index
    %c0_145 = arith.constant 0 : index
    %c0_146 = arith.constant 0 : index
    %125 = vector.load %arg21[%c1_144, %c0_145, %c0_146] : memref<4x32x32xf32, #tpu.memory_space<vmem>>, vector<1x32x8xf32>
    %126 = vector.shape_cast %125 : vector<1x32x8xf32> to vector<32x8xf32>
    %c1_147 = arith.constant 1 : index
    %c0_148 = arith.constant 0 : index
    %c0_149 = arith.constant 0 : index
    %127 = vector.load %arg26[%c1_147, %c0_148, %c0_149] : memref<4x256x256xf32, #tpu.memory_space<vmem>>, vector<1x64x256xf32>
    %128 = vector.shape_cast %127 : vector<1x64x256xf32> to vector<64x256xf32>
    %c0_150 = arith.constant 0 : index
    %c0_151 = arith.constant 0 : index
    %129 = vector.load %arg38[%c0_150, %c0_151] : memref<8x64xf32, #tpu.memory_space<vmem>>, vector<8x64xf32>
    %cst_152 = arith.constant dense<0.000000e+00> : vector<32x64xf32>
    %130 = tpu.matmul %126, %129, %cst_152 {dimension_numbers = #tpu.dot_dimension_numbers<[1], [0], [0], [1], [0, 0, 1, 1], [], []>} : vector<32x8xf32>, vector<8x64xf32>, vector<32x64xf32> -> vector<32x64xf32>
    %cst_153 = arith.constant dense<0.000000e+00> : vector<32x256xf32>
    %131 = tpu.matmul %130, %128, %cst_153 {dimension_numbers = #tpu.dot_dimension_numbers<[1], [0], [0], [1], [0, 0, 1, 1], [], []>} : vector<32x64xf32>, vector<64x256xf32>, vector<32x256xf32> -> vector<32x256xf32>
    %132 = arith.addf %124, %131 : vector<32x256xf32>
    %c2_154 = arith.constant 2 : index
    %c0_155 = arith.constant 0 : index
    %c0_156 = arith.constant 0 : index
    %133 = vector.load %arg21[%c2_154, %c0_155, %c0_156] : memref<4x32x32xf32, #tpu.memory_space<vmem>>, vector<1x32x4xf32>
    %134 = vector.shape_cast %133 : vector<1x32x4xf32> to vector<32x4xf32>
    %c2_157 = arith.constant 2 : index
    %c0_158 = arith.constant 0 : index
    %c0_159 = arith.constant 0 : index
    %135 = vector.load %arg26[%c2_157, %c0_158, %c0_159] : memref<4x256x256xf32, #tpu.memory_space<vmem>>, vector<1x32x256xf32>
    %136 = vector.shape_cast %135 : vector<1x32x256xf32> to vector<32x256xf32>
    %c0_160 = arith.constant 0 : index
    %c0_161 = arith.constant 0 : index
    %137 = vector.load %arg39[%c0_160, %c0_161] : memref<4x32xf32, #tpu.memory_space<vmem>>, vector<4x32xf32>
    %cst_162 = arith.constant dense<0.000000e+00> : vector<32x32xf32>
    %138 = tpu.matmul %134, %137, %cst_162 {dimension_numbers = #tpu.dot_dimension_numbers<[1], [0], [0], [1], [0, 0, 1, 1], [], []>} : vector<32x4xf32>, vector<4x32xf32>, vector<32x32xf32> -> vector<32x32xf32>
    %cst_163 = arith.constant dense<0.000000e+00> : vector<32x256xf32>
    %139 = tpu.matmul %138, %136, %cst_163 {dimension_numbers = #tpu.dot_dimension_numbers<[1], [0], [0], [1], [0, 0, 1, 1], [], []>} : vector<32x32xf32>, vector<32x256xf32>, vector<32x256xf32> -> vector<32x256xf32>
    %140 = arith.addf %132, %139 : vector<32x256xf32>
    %c3 = arith.constant 3 : index
    %c0_164 = arith.constant 0 : index
    %c0_165 = arith.constant 0 : index
    %141 = vector.load %arg21[%c3, %c0_164, %c0_165] : memref<4x32x32xf32, #tpu.memory_space<vmem>>, vector<1x32x2xf32>
    %142 = vector.shape_cast %141 : vector<1x32x2xf32> to vector<32x2xf32>
    %c3_166 = arith.constant 3 : index
    %c0_167 = arith.constant 0 : index
    %c0_168 = arith.constant 0 : index
    %143 = vector.load %arg26[%c3_166, %c0_167, %c0_168] : memref<4x256x256xf32, #tpu.memory_space<vmem>>, vector<1x16x256xf32>
    %144 = vector.shape_cast %143 : vector<1x16x256xf32> to vector<16x256xf32>
    %c0_169 = arith.constant 0 : index
    %c0_170 = arith.constant 0 : index
    %145 = vector.load %arg40[%c0_169, %c0_170] : memref<2x16xf32, #tpu.memory_space<vmem>>, vector<2x16xf32>
    %cst_171 = arith.constant dense<0.000000e+00> : vector<32x16xf32>
    %146 = tpu.matmul %142, %145, %cst_171 {dimension_numbers = #tpu.dot_dimension_numbers<[1], [0], [0], [1], [0, 0, 1, 1], [], []>} : vector<32x2xf32>, vector<2x16xf32>, vector<32x16xf32> -> vector<32x16xf32>
    %cst_172 = arith.constant dense<0.000000e+00> : vector<32x256xf32>
    %147 = tpu.matmul %146, %144, %cst_172 {dimension_numbers = #tpu.dot_dimension_numbers<[1], [0], [0], [1], [0, 0, 1, 1], [], []>} : vector<32x16xf32>, vector<16x256xf32>, vector<32x256xf32> -> vector<32x256xf32>
    %148 = arith.addf %140, %147 : vector<32x256xf32>
    %149 = arith.mulf %115, %148 : vector<32x256xf32>
    %150 = arith.addf %115, %149 : vector<32x256xf32>
    %151 = arith.negf %150 : vector<32x256xf32>
    %152 = math.exp %151 : vector<32x256xf32>
    %cst_173 = arith.constant 1.000000e+00 : f32
    %153 = vector.broadcast %cst_173 : f32 to vector<32x256xf32>
    %154 = arith.addf %153, %152 : vector<32x256xf32>
    %155 = arith.divf %153, %154 : vector<32x256xf32>
    %156 = vector.shape_cast %155 : vector<32x256xf32> to vector<1x32x256xf32>
    %c0_174 = arith.constant 0 : index
    %c0_175 = arith.constant 0 : index
    %c0_176 = arith.constant 0 : index
    %157 = vector.load %arg31[%c0_174, %c0_175, %c0_176] : memref<1x32x256xf32, #tpu.memory_space<vmem>>, vector<1x32x256xf32>
    tpu.vector_store %arg31[%c0_174, %c0_175, %c0_176], %156 {strides = array<i32>} : memref<1x32x256xf32, #tpu.memory_space<vmem>>, vector<1x32x256xf32>,
    %c0_177 = arith.constant 0 : index
    %c0_178 = arith.constant 0 : index
    %158 = vector.load %arg37[%c0_177, %c0_178] : memref<16x128xf32, #tpu.memory_space<vmem>>, vector<16x128xf32>
    %cst_179 = arith.constant 0.000000e+00 : f32
    %159 = vector.broadcast %cst_179 : f32 to vector<16x128xf32>
    %c0_180 = arith.constant 0 : index
    %c0_181 = arith.constant 0 : index
    %c0_182 = arith.constant 0 : index
    %160 = vector.load %arg22[%c0_180, %c0_181, %c0_182] : memref<4x16x32xf32, #tpu.memory_space<vmem>>, vector<1x16x32xf32>
    %161 = vector.shape_cast %160 : vector<1x16x32xf32> to vector<16x32xf32>
    %c0_183 = arith.constant 0 : index
    %c0_184 = arith.constant 0 : index
    %c0_185 = arith.constant 0 : index
    %162 = vector.load %arg27[%c0_183, %c0_184, %c0_185] : memref<4x256x128xf32, #tpu.memory_space<vmem>>, vector<1x256x128xf32>
    %163 = vector.shape_cast %162 : vector<1x256x128xf32> to vector<256x128xf32>
    %c0_186 = arith.constant 0 : index
    %c0_187 = arith.constant 0 : index
    %164 = vector.load %arg36[%c0_186, %c0_187] : memref<32x256xf32, #tpu.memory_space<vmem>>, vector<32x256xf32>
    %cst_188 = arith.constant dense<0.000000e+00> : vector<16x256xf32>
    %165 = tpu.matmul %161, %164, %cst_188 {dimension_numbers = #tpu.dot_dimension_numbers<[1], [0], [0], [1], [0, 0, 1, 1], [], []>} : vector<16x32xf32>, vector<32x256xf32>, vector<16x256xf32> -> vector<16x256xf32>
    %cst_189 = arith.constant dense<0.000000e+00> : vector<16x128xf32>
    %166 = tpu.matmul %165, %163, %cst_189 {dimension_numbers = #tpu.dot_dimension_numbers<[1], [0], [0], [1], [0, 0, 1, 1], [], []>} : vector<16x256xf32>, vector<256x128xf32>, vector<16x128xf32> -> vector<16x128xf32>
    %167 = arith.addf %159, %166 : vector<16x128xf32>
    %c1_190 = arith.constant 1 : index
    %c0_191 = arith.constant 0 : index
    %c0_192 = arith.constant 0 : index
    %168 = vector.load %arg22[%c1_190, %c0_191, %c0_192] : memref<4x16x32xf32, #tpu.memory_space<vmem>>, vector<1x16x8xf32>
    %169 = vector.shape_cast %168 : vector<1x16x8xf32> to vector<16x8xf32>
    %c1_193 = arith.constant 1 : index
    %c0_194 = arith.constant 0 : index
    %c0_195 = arith.constant 0 : index
    %170 = vector.load %arg27[%c1_193, %c0_194, %c0_195] : memref<4x256x128xf32, #tpu.memory_space<vmem>>, vector<1x64x128xf32>
    %171 = vector.shape_cast %170 : vector<1x64x128xf32> to vector<64x128xf32>
    %c0_196 = arith.constant 0 : index
    %c0_197 = arith.constant 0 : index
    %172 = vector.load %arg38[%c0_196, %c0_197] : memref<8x64xf32, #tpu.memory_space<vmem>>, vector<8x64xf32>
    %cst_198 = arith.constant dense<0.000000e+00> : vector<16x64xf32>
    %173 = tpu.matmul %169, %172, %cst_198 {dimension_numbers = #tpu.dot_dimension_numbers<[1], [0], [0], [1], [0, 0, 1, 1], [], []>} : vector<16x8xf32>, vector<8x64xf32>, vector<16x64xf32> -> vector<16x64xf32>
    %cst_199 = arith.constant dense<0.000000e+00> : vector<16x128xf32>
    %174 = tpu.matmul %173, %171, %cst_199 {dimension_numbers = #tpu.dot_dimension_numbers<[1], [0], [0], [1], [0, 0, 1, 1], [], []>} : vector<16x64xf32>, vector<64x128xf32>, vector<16x128xf32> -> vector<16x128xf32>
    %175 = arith.addf %167, %174 : vector<16x128xf32>
    %c2_200 = arith.constant 2 : index
    %c0_201 = arith.constant 0 : index
    %c0_202 = arith.constant 0 : index
    %176 = vector.load %arg22[%c2_200, %c0_201, %c0_202] : memref<4x16x32xf32, #tpu.memory_space<vmem>>, vector<1x16x4xf32>
    %177 = vector.shape_cast %176 : vector<1x16x4xf32> to vector<16x4xf32>
    %c2_203 = arith.constant 2 : index
    %c0_204 = arith.constant 0 : index
    %c0_205 = arith.constant 0 : index
    %178 = vector.load %arg27[%c2_203, %c0_204, %c0_205] : memref<4x256x128xf32, #tpu.memory_space<vmem>>, vector<1x32x128xf32>
    %179 = vector.shape_cast %178 : vector<1x32x128xf32> to vector<32x128xf32>
    %c0_206 = arith.constant 0 : index
    %c0_207 = arith.constant 0 : index
    %180 = vector.load %arg39[%c0_206, %c0_207] : memref<4x32xf32, #tpu.memory_space<vmem>>, vector<4x32xf32>
    %cst_208 = arith.constant dense<0.000000e+00> : vector<16x32xf32>
    %181 = tpu.matmul %177, %180, %cst_208 {dimension_numbers = #tpu.dot_dimension_numbers<[1], [0], [0], [1], [0, 0, 1, 1], [], []>} : vector<16x4xf32>, vector<4x32xf32>, vector<16x32xf32> -> vector<16x32xf32>
    %cst_209 = arith.constant dense<0.000000e+00> : vector<16x128xf32>
    %182 = tpu.matmul %181, %179, %cst_209 {dimension_numbers = #tpu.dot_dimension_numbers<[1], [0], [0], [1], [0, 0, 1, 1], [], []>} : vector<16x32xf32>, vector<32x128xf32>, vector<16x128xf32> -> vector<16x128xf32>
    %183 = arith.addf %175, %182 : vector<16x128xf32>
    %c3_210 = arith.constant 3 : index
    %c0_211 = arith.constant 0 : index
    %c0_212 = arith.constant 0 : index
    %184 = vector.load %arg22[%c3_210, %c0_211, %c0_212] : memref<4x16x32xf32, #tpu.memory_space<vmem>>, vector<1x16x2xf32>
    %185 = vector.shape_cast %184 : vector<1x16x2xf32> to vector<16x2xf32>
    %c3_213 = arith.constant 3 : index
    %c0_214 = arith.constant 0 : index
    %c0_215 = arith.constant 0 : index
    %186 = vector.load %arg27[%c3_213, %c0_214, %c0_215] : memref<4x256x128xf32, #tpu.memory_space<vmem>>, vector<1x16x128xf32>
    %187 = vector.shape_cast %186 : vector<1x16x128xf32> to vector<16x128xf32>
    %c0_216 = arith.constant 0 : index
    %c0_217 = arith.constant 0 : index
    %188 = vector.load %arg40[%c0_216, %c0_217] : memref<2x16xf32, #tpu.memory_space<vmem>>, vector<2x16xf32>
    %cst_218 = arith.constant dense<0.000000e+00> : vector<16x16xf32>
    %189 = tpu.matmul %185, %188, %cst_218 {dimension_numbers = #tpu.dot_dimension_numbers<[1], [0], [0], [1], [0, 0, 1, 1], [], []>} : vector<16x2xf32>, vector<2x16xf32>, vector<16x16xf32> -> vector<16x16xf32>
    %cst_219 = arith.constant dense<0.000000e+00> : vector<16x128xf32>
    %190 = tpu.matmul %189, %187, %cst_219 {dimension_numbers = #tpu.dot_dimension_numbers<[1], [0], [0], [1], [0, 0, 1, 1], [], []>} : vector<16x16xf32>, vector<16x128xf32>, vector<16x128xf32> -> vector<16x128xf32>
    %191 = arith.addf %183, %190 : vector<16x128xf32>
    %192 = arith.mulf %158, %191 : vector<16x128xf32>
    %193 = arith.addf %158, %192 : vector<16x128xf32>
    %194 = arith.negf %193 : vector<16x128xf32>
    %195 = math.exp %194 : vector<16x128xf32>
    %cst_220 = arith.constant 1.000000e+00 : f32
    %196 = vector.broadcast %cst_220 : f32 to vector<16x128xf32>
    %197 = arith.addf %196, %195 : vector<16x128xf32>
    %198 = arith.divf %196, %197 : vector<16x128xf32>
    %199 = vector.shape_cast %198 : vector<16x128xf32> to vector<1x16x128xf32>
    %c0_221 = arith.constant 0 : index
    %c0_222 = arith.constant 0 : index
    %c0_223 = arith.constant 0 : index
    %200 = vector.load %arg32[%c0_221, %c0_222, %c0_223] : memref<1x16x128xf32, #tpu.memory_space<vmem>>, vector<1x16x128xf32>
    tpu.vector_store %arg32[%c0_221, %c0_222, %c0_223], %199 {strides = array<i32>} : memref<1x16x128xf32, #tpu.memory_space<vmem>>, vector<1x16x128xf32>,
    %c0_224 = arith.constant 0 : index
    %c0_225 = arith.constant 0 : index
    %201 = vector.load %arg38[%c0_224, %c0_225] : memref<8x64xf32, #tpu.memory_space<vmem>>, vector<8x64xf32>
    %cst_226 = arith.constant 0.000000e+00 : f32
    %202 = vector.broadcast %cst_226 : f32 to vector<8x64xf32>
    %c0_227 = arith.constant 0 : index
    %c0_228 = arith.constant 0 : index
    %c0_229 = arith.constant 0 : index
    %203 = vector.load %arg23[%c0_227, %c0_228, %c0_229] : memref<4x8x32xf32, #tpu.memory_space<vmem>>, vector<1x8x32xf32>
    %204 = vector.shape_cast %203 : vector<1x8x32xf32> to vector<8x32xf32>
    %c0_230 = arith.constant 0 : index
    %c0_231 = arith.constant 0 : index
    %c0_232 = arith.constant 0 : index
    %205 = vector.load %arg28[%c0_230, %c0_231, %c0_232] : memref<4x256x64xf32, #tpu.memory_space<vmem>>, vector<1x256x64xf32>
    %206 = vector.shape_cast %205 : vector<1x256x64xf32> to vector<256x64xf32>
    %c0_233 = arith.constant 0 : index
    %c0_234 = arith.constant 0 : index
    %207 = vector.load %arg36[%c0_233, %c0_234] : memref<32x256xf32, #tpu.memory_space<vmem>>, vector<32x256xf32>
    %cst_235 = arith.constant dense<0.000000e+00> : vector<8x256xf32>
    %208 = tpu.matmul %204, %207, %cst_235 {dimension_numbers = #tpu.dot_dimension_numbers<[1], [0], [0], [1], [0, 0, 1, 1], [], []>} : vector<8x32xf32>, vector<32x256xf32>, vector<8x256xf32> -> vector<8x256xf32>
    %cst_236 = arith.constant dense<0.000000e+00> : vector<8x64xf32>
    %209 = tpu.matmul %208, %206, %cst_236 {dimension_numbers = #tpu.dot_dimension_numbers<[1], [0], [0], [1], [0, 0, 1, 1], [], []>} : vector<8x256xf32>, vector<256x64xf32>, vector<8x64xf32> -> vector<8x64xf32>
    %210 = arith.addf %202, %209 : vector<8x64xf32>
    %c1_237 = arith.constant 1 : index
    %c0_238 = arith.constant 0 : index
    %c0_239 = arith.constant 0 : index
    %211 = vector.load %arg23[%c1_237, %c0_238, %c0_239] : memref<4x8x32xf32, #tpu.memory_space<vmem>>, vector<1x8x16xf32>
    %212 = vector.shape_cast %211 : vector<1x8x16xf32> to vector<8x16xf32>
    %c1_240 = arith.constant 1 : index
    %c0_241 = arith.constant 0 : index
    %c0_242 = arith.constant 0 : index
    %213 = vector.load %arg28[%c1_240, %c0_241, %c0_242] : memref<4x256x64xf32, #tpu.memory_space<vmem>>, vector<1x128x64xf32>
    %214 = vector.shape_cast %213 : vector<1x128x64xf32> to vector<128x64xf32>
    %c0_243 = arith.constant 0 : index
    %c0_244 = arith.constant 0 : index
    %215 = vector.load %arg37[%c0_243, %c0_244] : memref<16x128xf32, #tpu.memory_space<vmem>>, vector<16x128xf32>
    %cst_245 = arith.constant dense<0.000000e+00> : vector<8x128xf32>
    %216 = tpu.matmul %212, %215, %cst_245 {dimension_numbers = #tpu.dot_dimension_numbers<[1], [0], [0], [1], [0, 0, 1, 1], [], []>} : vector<8x16xf32>, vector<16x128xf32>, vector<8x128xf32> -> vector<8x128xf32>
    %cst_246 = arith.constant dense<0.000000e+00> : vector<8x64xf32>
    %217 = tpu.matmul %216, %214, %cst_246 {dimension_numbers = #tpu.dot_dimension_numbers<[1], [0], [0], [1], [0, 0, 1, 1], [], []>} : vector<8x128xf32>, vector<128x64xf32>, vector<8x64xf32> -> vector<8x64xf32>
    %218 = arith.addf %210, %217 : vector<8x64xf32>
    %c2_247 = arith.constant 2 : index
    %c0_248 = arith.constant 0 : index
    %c0_249 = arith.constant 0 : index
    %219 = vector.load %arg23[%c2_247, %c0_248, %c0_249] : memref<4x8x32xf32, #tpu.memory_space<vmem>>, vector<1x8x4xf32>
    %220 = vector.shape_cast %219 : vector<1x8x4xf32> to vector<8x4xf32>
    %c2_250 = arith.constant 2 : index
    %c0_251 = arith.constant 0 : index
    %c0_252 = arith.constant 0 : index
    %221 = vector.load %arg28[%c2_250, %c0_251, %c0_252] : memref<4x256x64xf32, #tpu.memory_space<vmem>>, vector<1x32x64xf32>
    %222 = vector.shape_cast %221 : vector<1x32x64xf32> to vector<32x64xf32>
    %c0_253 = arith.constant 0 : index
    %c0_254 = arith.constant 0 : index
    %223 = vector.load %arg39[%c0_253, %c0_254] : memref<4x32xf32, #tpu.memory_space<vmem>>, vector<4x32xf32>
    %cst_255 = arith.constant dense<0.000000e+00> : vector<8x32xf32>
    %224 = tpu.matmul %220, %223, %cst_255 {dimension_numbers = #tpu.dot_dimension_numbers<[1], [0], [0], [1], [0, 0, 1, 1], [], []>} : vector<8x4xf32>, vector<4x32xf32>, vector<8x32xf32> -> vector<8x32xf32>
    %cst_256 = arith.constant dense<0.000000e+00> : vector<8x64xf32>
    %225 = tpu.matmul %224, %222, %cst_256 {dimension_numbers = #tpu.dot_dimension_numbers<[1], [0], [0], [1], [0, 0, 1, 1], [], []>} : vector<8x32xf32>, vector<32x64xf32>, vector<8x64xf32> -> vector<8x64xf32>
    %226 = arith.addf %218, %225 : vector<8x64xf32>
    %c3_257 = arith.constant 3 : index
    %c0_258 = arith.constant 0 : index
    %c0_259 = arith.constant 0 : index
    %227 = vector.load %arg23[%c3_257, %c0_258, %c0_259] : memref<4x8x32xf32, #tpu.memory_space<vmem>>, vector<1x8x2xf32>
    %228 = vector.shape_cast %227 : vector<1x8x2xf32> to vector<8x2xf32>
    %c3_260 = arith.constant 3 : index
    %c0_261 = arith.constant 0 : index
    %c0_262 = arith.constant 0 : index
    %229 = vector.load %arg28[%c3_260, %c0_261, %c0_262] : memref<4x256x64xf32, #tpu.memory_space<vmem>>, vector<1x16x64xf32>
    %230 = vector.shape_cast %229 : vector<1x16x64xf32> to vector<16x64xf32>
    %c0_263 = arith.constant 0 : index
    %c0_264 = arith.constant 0 : index
    %231 = vector.load %arg40[%c0_263, %c0_264] : memref<2x16xf32, #tpu.memory_space<vmem>>, vector<2x16xf32>
    %cst_265 = arith.constant dense<0.000000e+00> : vector<8x16xf32>
    %232 = tpu.matmul %228, %231, %cst_265 {dimension_numbers = #tpu.dot_dimension_numbers<[1], [0], [0], [1], [0, 0, 1, 1], [], []>} : vector<8x2xf32>, vector<2x16xf32>, vector<8x16xf32> -> vector<8x16xf32>
    %cst_266 = arith.constant dense<0.000000e+00> : vector<8x64xf32>
    %233 = tpu.matmul %232, %230, %cst_266 {dimension_numbers = #tpu.dot_dimension_numbers<[1], [0], [0], [1], [0, 0, 1, 1], [], []>} : vector<8x16xf32>, vector<16x64xf32>, vector<8x64xf32> -> vector<8x64xf32>
    %234 = arith.addf %226, %233 : vector<8x64xf32>
    %235 = arith.mulf %201, %234 : vector<8x64xf32>
    %236 = arith.addf %201, %235 : vector<8x64xf32>
    %237 = arith.negf %236 : vector<8x64xf32>
    %238 = math.exp %237 : vector<8x64xf32>
    %cst_267 = arith.constant 1.000000e+00 : f32
    %239 = vector.broadcast %cst_267 : f32 to vector<8x64xf32>
    %240 = arith.addf %239, %238 : vector<8x64xf32>
    %241 = arith.divf %239, %240 : vector<8x64xf32>
    %242 = vector.shape_cast %241 : vector<8x64xf32> to vector<1x8x64xf32>
    %c0_268 = arith.constant 0 : index
    %c0_269 = arith.constant 0 : index
    %c0_270 = arith.constant 0 : index
    %243 = vector.load %arg33[%c0_268, %c0_269, %c0_270] : memref<1x8x64xf32, #tpu.memory_space<vmem>>, vector<1x8x64xf32>
    tpu.vector_store %arg33[%c0_268, %c0_269, %c0_270], %242 {strides = array<i32>} : memref<1x8x64xf32, #tpu.memory_space<vmem>>, vector<1x8x64xf32>,
    %c0_271 = arith.constant 0 : index
    %c0_272 = arith.constant 0 : index
    %244 = vector.load %arg39[%c0_271, %c0_272] : memref<4x32xf32, #tpu.memory_space<vmem>>, vector<4x32xf32>
    %cst_273 = arith.constant 0.000000e+00 : f32
    %245 = vector.broadcast %cst_273 : f32 to vector<4x32xf32>
    %c0_274 = arith.constant 0 : index
    %c0_275 = arith.constant 0 : index
    %c0_276 = arith.constant 0 : index
    %246 = vector.load %arg24[%c0_274, %c0_275, %c0_276] : memref<4x4x32xf32, #tpu.memory_space<vmem>>, vector<1x4x32xf32>
    %247 = vector.shape_cast %246 : vector<1x4x32xf32> to vector<4x32xf32>
    %c0_277 = arith.constant 0 : index
    %c0_278 = arith.constant 0 : index
    %c0_279 = arith.constant 0 : index
    %248 = vector.load %arg29[%c0_277, %c0_278, %c0_279] : memref<4x256x32xf32, #tpu.memory_space<vmem>>, vector<1x256x32xf32>
    %249 = vector.shape_cast %248 : vector<1x256x32xf32> to vector<256x32xf32>
    %c0_280 = arith.constant 0 : index
    %c0_281 = arith.constant 0 : index
    %250 = vector.load %arg36[%c0_280, %c0_281] : memref<32x256xf32, #tpu.memory_space<vmem>>, vector<32x256xf32>
    %cst_282 = arith.constant dense<0.000000e+00> : vector<4x256xf32>
    %251 = tpu.matmul %247, %250, %cst_282 {dimension_numbers = #tpu.dot_dimension_numbers<[1], [0], [0], [1], [0, 0, 1, 1], [], []>} : vector<4x32xf32>, vector<32x256xf32>, vector<4x256xf32> -> vector<4x256xf32>
    %cst_283 = arith.constant dense<0.000000e+00> : vector<4x32xf32>
    %252 = tpu.matmul %251, %249, %cst_283 {dimension_numbers = #tpu.dot_dimension_numbers<[1], [0], [0], [1], [0, 0, 1, 1], [], []>} : vector<4x256xf32>, vector<256x32xf32>, vector<4x32xf32> -> vector<4x32xf32>
    %253 = arith.addf %245, %252 : vector<4x32xf32>
    %c1_284 = arith.constant 1 : index
    %c0_285 = arith.constant 0 : index
    %c0_286 = arith.constant 0 : index
    %254 = vector.load %arg24[%c1_284, %c0_285, %c0_286] : memref<4x4x32xf32, #tpu.memory_space<vmem>>, vector<1x4x16xf32>
    %255 = vector.shape_cast %254 : vector<1x4x16xf32> to vector<4x16xf32>
    %c1_287 = arith.constant 1 : index
    %c0_288 = arith.constant 0 : index
    %c0_289 = arith.constant 0 : index
    %256 = vector.load %arg29[%c1_287, %c0_288, %c0_289] : memref<4x256x32xf32, #tpu.memory_space<vmem>>, vector<1x128x32xf32>
    %257 = vector.shape_cast %256 : vector<1x128x32xf32> to vector<128x32xf32>
    %c0_290 = arith.constant 0 : index
    %c0_291 = arith.constant 0 : index
    %258 = vector.load %arg37[%c0_290, %c0_291] : memref<16x128xf32, #tpu.memory_space<vmem>>, vector<16x128xf32>
    %cst_292 = arith.constant dense<0.000000e+00> : vector<4x128xf32>
    %259 = tpu.matmul %255, %258, %cst_292 {dimension_numbers = #tpu.dot_dimension_numbers<[1], [0], [0], [1], [0, 0, 1, 1], [], []>} : vector<4x16xf32>, vector<16x128xf32>, vector<4x128xf32> -> vector<4x128xf32>
    %cst_293 = arith.constant dense<0.000000e+00> : vector<4x32xf32>
    %260 = tpu.matmul %259, %257, %cst_293 {dimension_numbers = #tpu.dot_dimension_numbers<[1], [0], [0], [1], [0, 0, 1, 1], [], []>} : vector<4x128xf32>, vector<128x32xf32>, vector<4x32xf32> -> vector<4x32xf32>
    %261 = arith.addf %253, %260 : vector<4x32xf32>
    %c2_294 = arith.constant 2 : index
    %c0_295 = arith.constant 0 : index
    %c0_296 = arith.constant 0 : index
    %262 = vector.load %arg24[%c2_294, %c0_295, %c0_296] : memref<4x4x32xf32, #tpu.memory_space<vmem>>, vector<1x4x8xf32>
    %263 = vector.shape_cast %262 : vector<1x4x8xf32> to vector<4x8xf32>
    %c2_297 = arith.constant 2 : index
    %c0_298 = arith.constant 0 : index
    %c0_299 = arith.constant 0 : index
    %264 = vector.load %arg29[%c2_297, %c0_298, %c0_299] : memref<4x256x32xf32, #tpu.memory_space<vmem>>, vector<1x64x32xf32>
    %265 = vector.shape_cast %264 : vector<1x64x32xf32> to vector<64x32xf32>
    %c0_300 = arith.constant 0 : index
    %c0_301 = arith.constant 0 : index
    %266 = vector.load %arg38[%c0_300, %c0_301] : memref<8x64xf32, #tpu.memory_space<vmem>>, vector<8x64xf32>
    %cst_302 = arith.constant dense<0.000000e+00> : vector<4x64xf32>
    %267 = tpu.matmul %263, %266, %cst_302 {dimension_numbers = #tpu.dot_dimension_numbers<[1], [0], [0], [1], [0, 0, 1, 1], [], []>} : vector<4x8xf32>, vector<8x64xf32>, vector<4x64xf32> -> vector<4x64xf32>
    %cst_303 = arith.constant dense<0.000000e+00> : vector<4x32xf32>
    %268 = tpu.matmul %267, %265, %cst_303 {dimension_numbers = #tpu.dot_dimension_numbers<[1], [0], [0], [1], [0, 0, 1, 1], [], []>} : vector<4x64xf32>, vector<64x32xf32>, vector<4x32xf32> -> vector<4x32xf32>
    %269 = arith.addf %261, %268 : vector<4x32xf32>
    %c3_304 = arith.constant 3 : index
    %c0_305 = arith.constant 0 : index
    %c0_306 = arith.constant 0 : index
    %270 = vector.load %arg24[%c3_304, %c0_305, %c0_306] : memref<4x4x32xf32, #tpu.memory_space<vmem>>, vector<1x4x2xf32>
    %271 = vector.shape_cast %270 : vector<1x4x2xf32> to vector<4x2xf32>
    %c3_307 = arith.constant 3 : index
    %c0_308 = arith.constant 0 : index
    %c0_309 = arith.constant 0 : index
    %272 = vector.load %arg29[%c3_307, %c0_308, %c0_309] : memref<4x256x32xf32, #tpu.memory_space<vmem>>, vector<1x16x32xf32>
    %273 = vector.shape_cast %272 : vector<1x16x32xf32> to vector<16x32xf32>
    %c0_310 = arith.constant 0 : index
    %c0_311 = arith.constant 0 : index
    %274 = vector.load %arg40[%c0_310, %c0_311] : memref<2x16xf32, #tpu.memory_space<vmem>>, vector<2x16xf32>
    %cst_312 = arith.constant dense<0.000000e+00> : vector<4x16xf32>
    %275 = tpu.matmul %271, %274, %cst_312 {dimension_numbers = #tpu.dot_dimension_numbers<[1], [0], [0], [1], [0, 0, 1, 1], [], []>} : vector<4x2xf32>, vector<2x16xf32>, vector<4x16xf32> -> vector<4x16xf32>
    %cst_313 = arith.constant dense<0.000000e+00> : vector<4x32xf32>
    %276 = tpu.matmul %275, %273, %cst_313 {dimension_numbers = #tpu.dot_dimension_numbers<[1], [0], [0], [1], [0, 0, 1, 1], [], []>} : vector<4x16xf32>, vector<16x32xf32>, vector<4x32xf32> -> vector<4x32xf32>
    %277 = arith.addf %269, %276 : vector<4x32xf32>
    %278 = arith.mulf %244, %277 : vector<4x32xf32>
    %279 = arith.addf %244, %278 : vector<4x32xf32>
    %280 = arith.negf %279 : vector<4x32xf32>
    %281 = math.exp %280 : vector<4x32xf32>
    %cst_314 = arith.constant 1.000000e+00 : f32
    %282 = vector.broadcast %cst_314 : f32 to vector<4x32xf32>
    %283 = arith.addf %282, %281 : vector<4x32xf32>
    %284 = arith.divf %282, %283 : vector<4x32xf32>
    %285 = vector.shape_cast %284 : vector<4x32xf32> to vector<1x4x32xf32>
    %c0_315 = arith.constant 0 : index
    %c0_316 = arith.constant 0 : index
    %c0_317 = arith.constant 0 : index
    %286 = vector.load %arg34[%c0_315, %c0_316, %c0_317] : memref<1x4x32xf32, #tpu.memory_space<vmem>>, vector<1x4x32xf32>
    tpu.vector_store %arg34[%c0_315, %c0_316, %c0_317], %285 {strides = array<i32>} : memref<1x4x32xf32, #tpu.memory_space<vmem>>, vector<1x4x32xf32>,
    %c0_318 = arith.constant 0 : index
    %c0_319 = arith.constant 0 : index
    %287 = vector.load %arg40[%c0_318, %c0_319] : memref<2x16xf32, #tpu.memory_space<vmem>>, vector<2x16xf32>
    %cst_320 = arith.constant 0.000000e+00 : f32
    %288 = vector.broadcast %cst_320 : f32 to vector<2x16xf32>
    %c0_321 = arith.constant 0 : index
    %c0_322 = arith.constant 0 : index
    %c0_323 = arith.constant 0 : index
    %289 = vector.load %arg25[%c0_321, %c0_322, %c0_323] : memref<4x2x32xf32, #tpu.memory_space<vmem>>, vector<1x2x32xf32>
    %290 = vector.shape_cast %289 : vector<1x2x32xf32> to vector<2x32xf32>
    %c0_324 = arith.constant 0 : index
    %c0_325 = arith.constant 0 : index
    %c0_326 = arith.constant 0 : index
    %291 = vector.load %arg30[%c0_324, %c0_325, %c0_326] : memref<4x256x16xf32, #tpu.memory_space<vmem>>, vector<1x256x16xf32>
    %292 = vector.shape_cast %291 : vector<1x256x16xf32> to vector<256x16xf32>
    %c0_327 = arith.constant 0 : index
    %c0_328 = arith.constant 0 : index
    %293 = vector.load %arg36[%c0_327, %c0_328] : memref<32x256xf32, #tpu.memory_space<vmem>>, vector<32x256xf32>
    %cst_329 = arith.constant dense<0.000000e+00> : vector<2x256xf32>
    %294 = tpu.matmul %290, %293, %cst_329 {dimension_numbers = #tpu.dot_dimension_numbers<[1], [0], [0], [1], [0, 0, 1, 1], [], []>} : vector<2x32xf32>, vector<32x256xf32>, vector<2x256xf32> -> vector<2x256xf32>
    %cst_330 = arith.constant dense<0.000000e+00> : vector<2x16xf32>
    %295 = tpu.matmul %294, %292, %cst_330 {dimension_numbers = #tpu.dot_dimension_numbers<[1], [0], [0], [1], [0, 0, 1, 1], [], []>} : vector<2x256xf32>, vector<256x16xf32>, vector<2x16xf32> -> vector<2x16xf32>
    %296 = arith.addf %288, %295 : vector<2x16xf32>
    %c1_331 = arith.constant 1 : index
    %c0_332 = arith.constant 0 : index
    %c0_333 = arith.constant 0 : index
    %297 = vector.load %arg25[%c1_331, %c0_332, %c0_333] : memref<4x2x32xf32, #tpu.memory_space<vmem>>, vector<1x2x16xf32>
    %298 = vector.shape_cast %297 : vector<1x2x16xf32> to vector<2x16xf32>
    %c1_334 = arith.constant 1 : index
    %c0_335 = arith.constant 0 : index
    %c0_336 = arith.constant 0 : index
    %299 = vector.load %arg30[%c1_334, %c0_335, %c0_336] : memref<4x256x16xf32, #tpu.memory_space<vmem>>, vector<1x128x16xf32>
    %300 = vector.shape_cast %299 : vector<1x128x16xf32> to vector<128x16xf32>
    %c0_337 = arith.constant 0 : index
    %c0_338 = arith.constant 0 : index
    %301 = vector.load %arg37[%c0_337, %c0_338] : memref<16x128xf32, #tpu.memory_space<vmem>>, vector<16x128xf32>
    %cst_339 = arith.constant dense<0.000000e+00> : vector<2x128xf32>
    %302 = tpu.matmul %298, %301, %cst_339 {dimension_numbers = #tpu.dot_dimension_numbers<[1], [0], [0], [1], [0, 0, 1, 1], [], []>} : vector<2x16xf32>, vector<16x128xf32>, vector<2x128xf32> -> vector<2x128xf32>
    %cst_340 = arith.constant dense<0.000000e+00> : vector<2x16xf32>
    %303 = tpu.matmul %302, %300, %cst_340 {dimension_numbers = #tpu.dot_dimension_numbers<[1], [0], [0], [1], [0, 0, 1, 1], [], []>} : vector<2x128xf32>, vector<128x16xf32>, vector<2x16xf32> -> vector<2x16xf32>
    %304 = arith.addf %296, %303 : vector<2x16xf32>
    %c2_341 = arith.constant 2 : index
    %c0_342 = arith.constant 0 : index
    %c0_343 = arith.constant 0 : index
    %305 = vector.load %arg25[%c2_341, %c0_342, %c0_343] : memref<4x2x32xf32, #tpu.memory_space<vmem>>, vector<1x2x8xf32>
    %306 = vector.shape_cast %305 : vector<1x2x8xf32> to vector<2x8xf32>
    %c2_344 = arith.constant 2 : index
    %c0_345 = arith.constant 0 : index
    %c0_346 = arith.constant 0 : index
    %307 = vector.load %arg30[%c2_344, %c0_345, %c0_346] : memref<4x256x16xf32, #tpu.memory_space<vmem>>, vector<1x64x16xf32>
    %308 = vector.shape_cast %307 : vector<1x64x16xf32> to vector<64x16xf32>
    %c0_347 = arith.constant 0 : index
    %c0_348 = arith.constant 0 : index
    %309 = vector.load %arg38[%c0_347, %c0_348] : memref<8x64xf32, #tpu.memory_space<vmem>>, vector<8x64xf32>
    %cst_349 = arith.constant dense<0.000000e+00> : vector<2x64xf32>
    %310 = tpu.matmul %306, %309, %cst_349 {dimension_numbers = #tpu.dot_dimension_numbers<[1], [0], [0], [1], [0, 0, 1, 1], [], []>} : vector<2x8xf32>, vector<8x64xf32>, vector<2x64xf32> -> vector<2x64xf32>
    %cst_350 = arith.constant dense<0.000000e+00> : vector<2x16xf32>
    %311 = tpu.matmul %310, %308, %cst_350 {dimension_numbers = #tpu.dot_dimension_numbers<[1], [0], [0], [1], [0, 0, 1, 1], [], []>} : vector<2x64xf32>, vector<64x16xf32>, vector<2x16xf32> -> vector<2x16xf32>
    %312 = arith.addf %304, %311 : vector<2x16xf32>
    %c3_351 = arith.constant 3 : index
    %c0_352 = arith.constant 0 : index
    %c0_353 = arith.constant 0 : index
    %313 = vector.load %arg25[%c3_351, %c0_352, %c0_353] : memref<4x2x32xf32, #tpu.memory_space<vmem>>, vector<1x2x4xf32>
    %314 = vector.shape_cast %313 : vector<1x2x4xf32> to vector<2x4xf32>
    %c3_354 = arith.constant 3 : index
    %c0_355 = arith.constant 0 : index
    %c0_356 = arith.constant 0 : index
    %315 = vector.load %arg30[%c3_354, %c0_355, %c0_356] : memref<4x256x16xf32, #tpu.memory_space<vmem>>, vector<1x32x16xf32>
    %316 = vector.shape_cast %315 : vector<1x32x16xf32> to vector<32x16xf32>
    %c0_357 = arith.constant 0 : index
    %c0_358 = arith.constant 0 : index
    %317 = vector.load %arg39[%c0_357, %c0_358] : memref<4x32xf32, #tpu.memory_space<vmem>>, vector<4x32xf32>
    %cst_359 = arith.constant dense<0.000000e+00> : vector<2x32xf32>
    %318 = tpu.matmul %314, %317, %cst_359 {dimension_numbers = #tpu.dot_dimension_numbers<[1], [0], [0], [1], [0, 0, 1, 1], [], []>} : vector<2x4xf32>, vector<4x32xf32>, vector<2x32xf32> -> vector<2x32xf32>
    %cst_360 = arith.constant dense<0.000000e+00> : vector<2x16xf32>
    %319 = tpu.matmul %318, %316, %cst_360 {dimension_numbers = #tpu.dot_dimension_numbers<[1], [0], [0], [1], [0, 0, 1, 1], [], []>} : vector<2x32xf32>, vector<32x16xf32>, vector<2x16xf32> -> vector<2x16xf32>
    %320 = arith.addf %312, %319 : vector<2x16xf32>
    %321 = arith.mulf %287, %320 : vector<2x16xf32>
    %322 = arith.addf %287, %321 : vector<2x16xf32>
    %323 = arith.negf %322 : vector<2x16xf32>
    %324 = math.exp %323 : vector<2x16xf32>
    %cst_361 = arith.constant 1.000000e+00 : f32
    %325 = vector.broadcast %cst_361 : f32 to vector<2x16xf32>
    %326 = arith.addf %325, %324 : vector<2x16xf32>
    %327 = arith.divf %325, %326 : vector<2x16xf32>
    %328 = vector.shape_cast %327 : vector<2x16xf32> to vector<1x2x16xf32>
    %c0_362 = arith.constant 0 : index
    %c0_363 = arith.constant 0 : index
    %c0_364 = arith.constant 0 : index
    %329 = vector.load %arg35[%c0_362, %c0_363, %c0_364] : memref<1x2x16xf32, #tpu.memory_space<vmem>>, vector<1x2x16xf32>
    tpu.vector_store %arg35[%c0_362, %c0_363, %c0_364], %328 {strides = array<i32>} : memref<1x2x16xf32, #tpu.memory_space<vmem>>, vector<1x2x16xf32>,
    return
  }
  func.func @transform_0(%arg0: i32) -> (i32, i32, i32) {
    %c0_i32 = arith.constant 0 : i32
    %c0_i32_0 = arith.constant 0 : i32
    %c0_i32_1 = arith.constant 0 : i32
    return %arg0, %c0_i32, %c0_i32_0 : i32, i32, i32
  }
  func.func @transform_1(%arg0: i32) -> (i32, i32, i32) {
    %c0_i32 = arith.constant 0 : i32
    %c0_i32_0 = arith.constant 0 : i32
    %c0_i32_1 = arith.constant 0 : i32
    return %arg0, %c0_i32, %c0_i32_0 : i32, i32, i32
  }
  func.func @transform_2(%arg0: i32) -> (i32, i32, i32) {
    %c0_i32 = arith.constant 0 : i32
    %c0_i32_0 = arith.constant 0 : i32
    %c0_i32_1 = arith.constant 0 : i32
    return %arg0, %c0_i32, %c0_i32_0 : i32, i32, i32
  }
  func.func @transform_3(%arg0: i32) -> (i32, i32, i32) {
    %c0_i32 = arith.constant 0 : i32
    %c0_i32_0 = arith.constant 0 : i32
    %c0_i32_1 = arith.constant 0 : i32
    return %arg0, %c0_i32, %c0_i32_0 : i32, i32, i32
  }
  func.func @transform_4(%arg0: i32) -> (i32, i32, i32) {
    %c0_i32 = arith.constant 0 : i32
    %c0_i32_0 = arith.constant 0 : i32
    %c0_i32_1 = arith.constant 0 : i32
    return %arg0, %c0_i32, %c0_i32_0 : i32, i32, i32
  }
  func.func @transform_5(%arg0: i32) -> (i32, i32, i32) {
    %c0_i32 = arith.constant 0 : i32
    %c0_i32_0 = arith.constant 0 : i32
    %c0_i32_1 = arith.constant 0 : i32
    %c0_i32_2 = arith.constant 0 : i32
    return %c0_i32, %c0_i32_0, %c0_i32_1 : i32, i32, i32
  }
  func.func @transform_6(%arg0: i32) -> (i32, i32, i32) {
    %c0_i32 = arith.constant 0 : i32
    %c0_i32_0 = arith.constant 0 : i32
    %c0_i32_1 = arith.constant 0 : i32
    %c0_i32_2 = arith.constant 0 : i32
    return %c0_i32, %c0_i32_0, %c0_i32_1 : i32, i32, i32
  }
  func.func @transform_7(%arg0: i32) -> (i32, i32, i32) {
    %c0_i32 = arith.constant 0 : i32
    %c0_i32_0 = arith.constant 0 : i32
    %c0_i32_1 = arith.constant 0 : i32
    %c0_i32_2 = arith.constant 0 : i32
    return %c0_i32, %c0_i32_0, %c0_i32_1 : i32, i32, i32
  }
  func.func @transform_8(%arg0: i32) -> (i32, i32, i32) {
    %c0_i32 = arith.constant 0 : i32
    %c0_i32_0 = arith.constant 0 : i32
    %c0_i32_1 = arith.constant 0 : i32
    %c0_i32_2 = arith.constant 0 : i32
    return %c0_i32, %c0_i32_0, %c0_i32_1 : i32, i32, i32
  }
  func.func @transform_9(%arg0: i32) -> (i32, i32, i32) {
    %c0_i32 = arith.constant 0 : i32
    %c0_i32_0 = arith.constant 0 : i32
    %c0_i32_1 = arith.constant 0 : i32
    %c0_i32_2 = arith.constant 0 : i32
    return %c0_i32, %c0_i32_0, %c0_i32_1 : i32, i32, i32
  }
  func.func @transform_10(%arg0: i32) -> (i32, i32, i32) {
    %c0_i32 = arith.constant 0 : i32
    %c0_i32_0 = arith.constant 0 : i32
    %c0_i32_1 = arith.constant 0 : i32
    %c0_i32_2 = arith.constant 0 : i32
    return %c0_i32, %c0_i32_0, %c0_i32_1 : i32, i32, i32
  }
  func.func @transform_11(%arg0: i32) -> (i32, i32, i32) {
    %c0_i32 = arith.constant 0 : i32
    %c0_i32_0 = arith.constant 0 : i32
    %c0_i32_1 = arith.constant 0 : i32
    %c0_i32_2 = arith.constant 0 : i32
    return %c0_i32, %c0_i32_0, %c0_i32_1 : i32, i32, i32
  }
  func.func @transform_12(%arg0: i32) -> (i32, i32, i32) {
    %c0_i32 = arith.constant 0 : i32
    %c0_i32_0 = arith.constant 0 : i32
    %c0_i32_1 = arith.constant 0 : i32
    %c0_i32_2 = arith.constant 0 : i32
    return %c0_i32, %c0_i32_0, %c0_i32_1 : i32, i32, i32
  }
  func.func @transform_13(%arg0: i32) -> (i32, i32, i32) {
    %c0_i32 = arith.constant 0 : i32
    %c0_i32_0 = arith.constant 0 : i32
    %c0_i32_1 = arith.constant 0 : i32
    %c0_i32_2 = arith.constant 0 : i32
    return %c0_i32, %c0_i32_0, %c0_i32_1 : i32, i32, i32
  }
  func.func @transform_14(%arg0: i32) -> (i32, i32, i32) {
    %c0_i32 = arith.constant 0 : i32
    %c0_i32_0 = arith.constant 0 : i32
    %c0_i32_1 = arith.constant 0 : i32
    %c0_i32_2 = arith.constant 0 : i32
    return %c0_i32, %c0_i32_0, %c0_i32_1 : i32, i32, i32
  }
  func.func @transform_15(%arg0: i32) -> (i32, i32) {
    %c0_i32 = arith.constant 0 : i32
    %c0_i32_0 = arith.constant 0 : i32
    %c0_i32_1 = arith.constant 0 : i32
    return %c0_i32, %c0_i32_0 : i32, i32
  }
  func.func @transform_16(%arg0: i32) -> (i32, i32) {
    %c0_i32 = arith.constant 0 : i32
    %c0_i32_0 = arith.constant 0 : i32
    %c0_i32_1 = arith.constant 0 : i32
    return %c0_i32, %c0_i32_0 : i32, i32
  }
  func.func @transform_17(%arg0: i32) -> (i32, i32) {
    %c0_i32 = arith.constant 0 : i32
    %c0_i32_0 = arith.constant 0 : i32
    %c0_i32_1 = arith.constant 0 : i32
    return %c0_i32, %c0_i32_0 : i32, i32
  }
  func.func @transform_18(%arg0: i32) -> (i32, i32) {
    %c0_i32 = arith.constant 0 : i32
    %c0_i32_0 = arith.constant 0 : i32
    %c0_i32_1 = arith.constant 0 : i32
    return %c0_i32, %c0_i32_0 : i32, i32
  }
  func.func @transform_19(%arg0: i32) -> (i32, i32) {
    %c0_i32 = arith.constant 0 : i32
    %c0_i32_0 = arith.constant 0 : i32
    %c0_i32_1 = arith.constant 0 : i32
    return %c0_i32, %c0_i32_0 : i32, i32
  }
  func.func @transform_20(%arg0: i32) -> (i32, i32, i32) {
    %c0_i32 = arith.constant 0 : i32
    %c0_i32_0 = arith.constant 0 : i32
    %c0_i32_1 = arith.constant 0 : i32
    %c0_i32_2 = arith.constant 0 : i32
    return %c0_i32, %c0_i32_0, %c0_i32_1 : i32, i32, i32
  }
  func.func @transform_21(%arg0: i32) -> (i32, i32, i32) {
    %c0_i32 = arith.constant 0 : i32
    %c0_i32_0 = arith.constant 0 : i32
    %c0_i32_1 = arith.constant 0 : i32
    %c0_i32_2 = arith.constant 0 : i32
    return %c0_i32, %c0_i32_0, %c0_i32_1 : i32, i32, i32
  }
  func.func @transform_22(%arg0: i32) -> (i32, i32, i32) {
    %c0_i32 = arith.constant 0 : i32
    %c0_i32_0 = arith.constant 0 : i32
    %c0_i32_1 = arith.constant 0 : i32
    %c0_i32_2 = arith.constant 0 : i32
    return %c0_i32, %c0_i32_0, %c0_i32_1 : i32, i32, i32
  }
  func.func @transform_23(%arg0: i32) -> (i32, i32, i32) {
    %c0_i32 = arith.constant 0 : i32
    %c0_i32_0 = arith.constant 0 : i32
    %c0_i32_1 = arith.constant 0 : i32
    %c0_i32_2 = arith.constant 0 : i32
    return %c0_i32, %c0_i32_0, %c0_i32_1 : i32, i32, i32
  }
  func.func @transform_24(%arg0: i32) -> (i32, i32, i32) {
    %c0_i32 = arith.constant 0 : i32
    %c0_i32_0 = arith.constant 0 : i32
    %c0_i32_1 = arith.constant 0 : i32
    %c0_i32_2 = arith.constant 0 : i32
    return %c0_i32, %c0_i32_0, %c0_i32_1 : i32, i32, i32
  }
  func.func @transform_25(%arg0: i32) -> (i32, i32, i32) {
    %c0_i32 = arith.constant 0 : i32
    %c0_i32_0 = arith.constant 0 : i32
    %c0_i32_1 = arith.constant 0 : i32
    %c0_i32_2 = arith.constant 0 : i32
    return %c0_i32, %c0_i32_0, %c0_i32_1 : i32, i32, i32
  }
  func.func @transform_26(%arg0: i32) -> (i32, i32, i32) {
    %c0_i32 = arith.constant 0 : i32
    %c0_i32_0 = arith.constant 0 : i32
    %c0_i32_1 = arith.constant 0 : i32
    %c0_i32_2 = arith.constant 0 : i32
    return %c0_i32, %c0_i32_0, %c0_i32_1 : i32, i32, i32
  }
  func.func @transform_27(%arg0: i32) -> (i32, i32, i32) {
    %c0_i32 = arith.constant 0 : i32
    %c0_i32_0 = arith.constant 0 : i32
    %c0_i32_1 = arith.constant 0 : i32
    %c0_i32_2 = arith.constant 0 : i32
    return %c0_i32, %c0_i32_0, %c0_i32_1 : i32, i32, i32
  }
  func.func @transform_28(%arg0: i32) -> (i32, i32, i32) {
    %c0_i32 = arith.constant 0 : i32
    %c0_i32_0 = arith.constant 0 : i32
    %c0_i32_1 = arith.constant 0 : i32
    %c0_i32_2 = arith.constant 0 : i32
    return %c0_i32, %c0_i32_0, %c0_i32_1 : i32, i32, i32
  }
  func.func @transform_29(%arg0: i32) -> (i32, i32, i32) {
    %c0_i32 = arith.constant 0 : i32
    %c0_i32_0 = arith.constant 0 : i32
    %c0_i32_1 = arith.constant 0 : i32
    %c0_i32_2 = arith.constant 0 : i32
    return %c0_i32, %c0_i32_0, %c0_i32_1 : i32, i32, i32
  }
  func.func @transform_30(%arg0: i32) -> (i32, i32, i32) {
    %c0_i32 = arith.constant 0 : i32
    %c0_i32_0 = arith.constant 0 : i32
    %c0_i32_1 = arith.constant 0 : i32
    return %arg0, %c0_i32, %c0_i32_0 : i32, i32, i32
  }
  func.func @transform_31(%arg0: i32) -> (i32, i32, i32) {
    %c0_i32 = arith.constant 0 : i32
    %c0_i32_0 = arith.constant 0 : i32
    %c0_i32_1 = arith.constant 0 : i32
    return %arg0, %c0_i32, %c0_i32_0 : i32, i32, i32
  }
  func.func @transform_32(%arg0: i32) -> (i32, i32, i32) {
    %c0_i32 = arith.constant 0 : i32
    %c0_i32_0 = arith.constant 0 : i32
    %c0_i32_1 = arith.constant 0 : i32
    return %arg0, %c0_i32, %c0_i32_0 : i32, i32, i32
  }
  func.func @transform_33(%arg0: i32) -> (i32, i32, i32) {
    %c0_i32 = arith.constant 0 : i32
    %c0_i32_0 = arith.constant 0 : i32
    %c0_i32_1 = arith.constant 0 : i32
    return %arg0, %c0_i32, %c0_i32_0 : i32, i32, i32
  }
  func.func @transform_34(%arg0: i32) -> (i32, i32, i32) {
    %c0_i32 = arith.constant 0 : i32
    %c0_i32_0 = arith.constant 0 : i32
    %c0_i32_1 = arith.constant 0 : i32
    return %arg0, %c0_i32, %c0_i32_0 : i32, i32, i32
  }
}

</mosaic_0001>

<bundles_post_ra>
// kernel: tpu_custom_call.1
= control target key start
LH: loop header
LB: loop body
LE: loop exit
PB: predicated region body
PF: predicated region fallthrough
CT: control target
= control target key end

     0   :  { %s7470_s6 = smov 1   ;;  %s7471_s10 = smov 2   ;;  %s9348_s0 = inlined_call_operand.smem [shape: u32[35], index: -1, kind: input, shape index: {}] }
   0x1   :  { %s7544_s5 = sld [smem:[%s9348_s0]]   ;;  %s7472_s14 = smov 3  }
   0x2   :  { %s7549_s9 = sld [smem:[%s9348_s0 + %s7470_s6]]   ;;  %s7473_s18 = smov 4  }
   0x3   :  { %s7554_s13 = sld [smem:[%s9348_s0 + %s7471_s10]]   ;;  %s7474_s22 = smov 5  }
   0x4   :  { %s7559_s17 = sld [smem:[%s9348_s0 + %s7472_s14]]   ;;  %s7475_s26 = smov 6  }
   0x5   :  { %s7564_s21 = sld [smem:[%s9348_s0 + %s7473_s18]]   ;;  %s7476_s30 = smov 7  }
   0x6   :  { %s7569_s25 = sld [smem:[%s9348_s0 + %s7474_s22]]   ;;  %s7477_s4 = smov 8  }
   0x7   :  { %9411 = sst [smem:[#allocation69_spill]] %s7544_s5  ;;  %s7478_s10 = smov 9  }
   0x8   :  { %9412 = sst [smem:[#allocation70_spill]] %s7549_s9  ;;  %s7479_s15 = smov 10  }
   0x9   :  { %9413 = sst [smem:[#allocation71_spill]] %s7554_s13  ;;  %s7480_s20 = smov 11  }
   0xa   :  { %9414 = sst [smem:[#allocation72_spill]] %s7559_s17  ;;  %s7482_s1 = smov 13  }
   0xb   :  { %9415 = sst [smem:[#allocation73_spill]] %s7564_s21  ;;  %s7483_s7 = smov 14  }
   0xc   :  { %9416 = sst [smem:[#allocation74_spill]] %s7569_s25  ;;  %s7485_s22 = smov 16  }
   0xd   :  { %s7574_s29 = sld [smem:[%s9348_s0 + %s7475_s26]]   ;;  %s7481_s26 = smov 12  }
   0xe   :  { %s7579_s3 = sld [smem:[%s9348_s0 + %s7476_s30]]   ;;  %s7486_s28 = smov 17  }
   0xf   :  { %s7584_s8 = sld [smem:[%s9348_s0 + %s7477_s4]]  }
  0x10   :  { %s7589_s14 = sld [smem:[%s9348_s0 + %s7478_s10]]  }
  0x11   :  { %s7594_s19 = sld [smem:[%s9348_s0 + %s7479_s15]]   ;;  %s7484_s15 = smov 15  }
  0x12   :  { %s7599_s24 = sld [smem:[%s9348_s0 + %s7480_s20]]  }
  0x13   :  { %9417 = sst [smem:[#allocation75_spill]] %s7574_s29 }
  0x14   :  { %9418 = sst [smem:[#allocation76_spill]] %s7579_s3 }
  0x15   :  { %9419 = sst [smem:[#allocation77_spill]] %s7584_s8 }
  0x16   :  { %9420 = sst [smem:[#allocation78_spill]] %s7589_s14 }
  0x17   :  { %9421 = sst [smem:[#allocation79_spill]] %s7594_s19 }
  0x18   :  { %9422 = sst [smem:[#allocation80_spill]] %s7599_s24 }
  0x19   :  { %s7604_s30 = sld [smem:[%s9348_s0 + %s7481_s26]]  }
  0x1a   :  { %s7609_s6 = sld [smem:[%s9348_s0 + %s7482_s1]]  }
  0x1b   :  { %s7614_s12 = sld [smem:[%s9348_s0 + %s7483_s7]]   ;;  %s7487_s7 = smov 18  }
  0x1c   :  { %s7619_s20 = sld [smem:[%s9348_s0 + %s7484_s15]]   ;;  %s7488_s15 = smov 19  }
  0x1d   :  { %s7624_s27 = sld [smem:[%s9348_s0 + %s7485_s22]]   ;;  %s7489_s22 = smov 20  }
  0x1e   :  { %s7629_s4 = sld [smem:[%s9348_s0 + %s7486_s28]]   ;;  %s7490_s28 = smov 21  }
  0x1f   :  { %9423 = sst [smem:[#allocation81_spill]] %s7604_s30 }
  0x20   :  { %9424 = sst [smem:[#allocation82_spill]] %s7609_s6 }
  0x21   :  { %9425 = sst [smem:[#allocation83_spill]] %s7614_s12 }
  0x22   :  { %9426 = sst [smem:[#allocation84_spill]] %s7619_s20 }
  0x23   :  { %9427 = sst [smem:[#allocation85_spill]] %s7624_s27 }
  0x24   :  { %9428 = sst [smem:[#allocation86_spill]] %s7629_s4 }
  0x25   :  { %s7634_s25 = sld [smem:[%s9348_s0 + %s7487_s7]]   ;;  %s7491_s7 = smov 22  }
  0x26   :  { %s7639_s21 = sld [smem:[%s9348_s0 + %s7488_s15]]   ;;  %s7492_s15 = smov 23  }
  0x27   :  { %s7644_s13 = sld [smem:[%s9348_s0 + %s7489_s22]]   ;;  %s7493_s22 = smov 24  }
  0x28   :  { %s7649_s5 = sld [smem:[%s9348_s0 + %s7490_s28]]   ;;  %s7494_s28 = smov 25  }
  0x29   :  { %s7654_s4 = sld [smem:[%s9348_s0 + %s7491_s7]]   ;;  %s7495_s7 = smov 26  }
  0x2a   :  { %s7664_s20 = sld [smem:[%s9348_s0 + %s7493_s22]]   ;;  %s7497_s22 = smov 28  }
  0x2b   :  { %9429 = sst [smem:[#allocation87_spill]] %s7634_s25 }
  0x2c   :  { %9430 = sst [smem:[#allocation88_spill]] %s7639_s21 }
  0x2d   :  { %9431 = sst [smem:[#allocation89_spill]] %s7644_s13 }
  0x2e   :  { %9432 = sst [smem:[#allocation90_spill]] %s7649_s5 }
  0x2f   :  { %9433 = sst [smem:[#allocation91_spill]] %s7654_s4 }
  0x30   :  { %s7659_s21 = sld [smem:[%s9348_s0 + %s7492_s15]]   ;;  %s7496_s15 = smov 27  }
  0x31   :  { %9435 = sst [smem:[#allocation93_spill]] %s7664_s20 }
  0x32   :  { %s7669_s5 = sld [smem:[%s9348_s0 + %s7494_s28]]   ;;  %s7498_s28 = smov 29  }
  0x33   :  { %s7674_s6 = sld [smem:[%s9348_s0 + %s7495_s7]]   ;;  %s7499_s7 = smov 30  }
  0x34   :  { %s7684_s24 = sld [smem:[%s9348_s0 + %s7497_s22]]   ;;  %s7501_s22 = smov 32  }
  0x36   :  { %9434 = sst [smem:[#allocation92_spill]] %s7659_s21 }
  0x37   :  { %s7679_s21 = sld [smem:[%s9348_s0 + %s7496_s15]]   ;;  %s7500_s15 = smov 31  }
  0x38   :  { %9436 = sst [smem:[#allocation94_spill]] %s7669_s5 }
  0x39   :  { %9437 = sst [smem:[#allocation95_spill]] %s7674_s6 }
  0x3a   :  { %9439 = sst [smem:[#allocation97_spill]] %s7684_s24 }
  0x3b   :  { %s7689_s5 = sld [smem:[%s9348_s0 + %s7498_s28]]   ;;  %s7502_s28 = smov 33  }
  0x3c   :  { %s7694_s6 = sld [smem:[%s9348_s0 + %s7499_s7]]   ;;  %s7503_s7 = smov 34  }
  0x3d   :  { %9438 = sst [smem:[#allocation96_spill]] %s7679_s21 }
  0x3e   :  { %s7699_s21 = sld [smem:[%s9348_s0 + %s7500_s15]]  }
  0x3f   :  { %s7704_s24 = sld [smem:[%s9348_s0 + %s7501_s22]]  }
  0x41   :  { %9440 = sst [smem:[#allocation98_spill]] %s7689_s5 }
  0x42   :  { %9441 = sst [smem:[#allocation99_spill]] %s7694_s6 }
  0x43   :  { %s7709_s5 = sld [smem:[%s9348_s0 + %s7502_s28]]  }
  0x44   :  { %9442 = sst [smem:[#allocation100_spill]] %s7699_s21 }
  0x45   :  { %9443 = sst [smem:[#allocation101_spill]] %s7704_s24 }
  0x46   :  { %s7714_s6 = sld [smem:[%s9348_s0 + %s7503_s7]]  }
  0x49   :  { %9444 = sst [smem:[#allocation102_spill]] %s7709_s5 }
  0x4c   :  { %9445 = sst [smem:[#allocation103_spill]] %s7714_s6 }
  0x4d   :  { %75 = vsyncpa [#allocation8], 0 }
  0x4e   :  { %77 = vsyncpa [#allocation8 + $0x1], 0 }
  0x4f   :  { %78 = vsyncpa [#allocation11], 0 }
  0x50   :  { %80 = vsyncpa [#allocation11 + $0x1], 0 }
  0x51   :  { %81 = vsyncpa [#allocation14], 0 }
  0x52   :  { %83 = vsyncpa [#allocation14 + $0x1], 0 }
  0x53   :  { %84 = vsyncpa [#allocation17], 0 }
  0x54   :  { %85 = vsyncpa [#allocation20], 0 }
  0x55   :  { %86 = vsyncpa [#allocation23], 0 }
  0x56   :  { %87 = vsyncpa [#allocation26], 0 }
  0x57   :  { %88 = vsyncpa [#allocation29], 0 }
  0x58   :  { %89 = vsyncpa [#allocation32], 0 }
  0x59   :  { %90 = vsyncpa [#allocation35], 0 }
  0x5a   :  { %91 = vsyncpa [#allocation38], 0 }
  0x5b   :  { %92 = vsyncpa [#allocation41], 0 }
  0x5c   :  { %93 = vsyncpa [#allocation44], 0 }
  0x5d   :  { %94 = vsyncpa [#allocation9], 0 }
  0x5e   :  { %96 = vsyncpa [#allocation9 + $0x1], 0 }
  0x5f   :  { %97 = vsyncpa [#allocation48], 0 }
  0x60   :  { %99 = vsyncpa [#allocation48 + $0x1], 0 }
  0x61   :  { %100 = vsyncpa [#allocation51], 0 }
  0x62   :  { %102 = vsyncpa [#allocation51 + $0x1], 0  ;;  %s7716_s0 = smov 0   ;;  %s7718_s15 = smov 0  }
  0x63   :  { %s7720_s16 = smov 0   ;;  %s7722_s18 = smov 0  }
  0x64 LB: > { %s9446_s17 = sld [smem:[#allocation72_spill]]  ;;  %s7740_s23 = sadd.s32 4294967295, %s7468_s18   ;;  %s7460_s15 = sphi %s7718_s15, %s9539_s15   ;;  %s7456_s0 = sphi %s7716_s0, %s9538_s0   ;;  %s7468_s18 = sphi %s7722_s18, %s9535_s18   ;;  %s7464_s16 = sphi %s7720_s16, %s9537_s16  }
  0x65   : > { %s9447_s14 = sld [smem:[#allocation78_spill]]  ;;  %p5642_p0 = scmp.ge.s32.totalorder %s7468_s18, 1 }
  0x66   : > { %s9448_s3 = sld [smem:[#allocation76_spill]]  ;;  %p9387_p1 = scmp.eq.s32.totalorder %s7740_s23, 0 }
  0x67   : > { %s9449_s9 = sld [smem:[#allocation70_spill]]  ;;  %p898_p2 = scmp.lt.s32.totalorder %s7468_s18, 3 }
  0x68   : > { %s9450_s30 = sld [smem:[#allocation81_spill]]  ;;  %s7504_s28 = smov [#allocation16]  }
  0x69   : > { %s9451_s27 = sld [smem:[#allocation85_spill]]  ;;  %p7745_p3 = pnand %p5642_p0, %p898_p2 }
  0x6a   : > { %s9452_s25 = sld [smem:[#allocation87_spill]]  ;;  %s7749_s1 = sshll.u32 %s7504_s28, 4  ;;  %s915_s1 = int_to_ptr.vmem [resolvable:$true] %s7749_s1 }
  0x6b   : > { %s9453_s20 = sld [smem:[#allocation93_spill]]  ;;  %p6194_p4 = pneg %p7745_p3 }
  0x6c   : > { %s9454_s19 = sld [smem:[#allocation79_spill]]  ;;  %s7505_s11 = smov [#allocation19]  }
  0x6d   : > { %s9455_s13 = sld [smem:[#allocation89_spill]]  ;;  %p7758_p6 = pnand %p6194_p4, %p9387_p1 }
  0x6e   : > { %s9456_s12 = sld [smem:[#allocation83_spill]]  ;;  %s7765_s28 = sshll.u32 %s7505_s11, 4  ;;  %s943_s28 = int_to_ptr.vmem [resolvable:$true] %s7765_s28 }
  0x6f   : > { %s9457_s4 = sld [smem:[#allocation91_spill]]  ;;  %p7770_p8 = pneg %p7758_p6 }
  0x70   : > { %s9458_s8 = sld [smem:[#allocation77_spill]] }
  0x71   : > { %s9459_s29 = sld [smem:[#allocation75_spill]] }
  0x72   : > { %9460 = sst [smem:[#allocation104_spill]] %s7464_s16  ;;  %s968_s10 = sshll.u32 %s9454_s19, 4  ;;  %s7785_s10 = int_to_ptr.hbm [resolvable:$true] %s968_s10 }
  0x73   : > { %s9461_s26 = scalar_select %p7745_p3, 1, 0 }
  0x75   : > { %9462 = sst [smem:[#allocation105_spill]] %s9461_s26 }
  0x76   : > { %s940_s2 = sshll.u32 %s9458_s8, 4  ;;  %s7762_s2 = int_to_ptr.hbm [resolvable:$true] %s940_s2 }
  0x77   : > { %s912_s22 = sshll.u32 %s9459_s29, 4  ;;  %s6491_s21 = scalar_lea.hbm %s9459_s29, 384  ;;  %s7737_s22 = int_to_ptr.hbm [resolvable:$true] %s912_s22 }
  0x78   : > { %s6484_s6 = sshra.s32 %s7737_s22, 4  ;;  %s6485_s6 = int_to_ptr.hbm [resolvable:$true] %s6484_s6 }
  0x79   : > { %s6486_s24 = scalar_lea.hbm %s6485_s6, 384  ;;  %p6492_p11 = scmp.lt.s32.totalorder %s6485_s6, %s9459_s29 }
  0x7a   : > { %p6487_p7 = scmp.ne.s32.totalorder %s6485_s6, %s6486_s24  ;;  %p6493_p12 = scmp.lt.s32.totalorder %s6491_s21, %s6486_s24 }
  0x7c   : > { %p6489_p9 = pnand %p7770_p8, %p6487_p7  ;;  %p6494_p13 = por %p6493_p12, %p6492_p11 }
  0x7e   : > { %p6490_p10 = pneg %p6489_p9 }
  0x80   : > { %p6495_p0 = pnand %p6494_p13, %p6490_p10 }
  0x82   : > { %6498 = shalt.err (!%p6495_p0)
}
  0x83   : > { %s9373_s11 = smov 128   ;;  %s9377_s26 = smov 8  }
  0x84   : > { %6197 = dma.hbm_to_vmem [thread:$0]  (!%p7758_p6), %s7737_s22, 6144, %s915_s1, [#allocation17], %s9373_s11, %s9373_s11, %s9377_s26  }
  0x85   : > { %s6514_s21 = sshra.s32 %s7762_s2, 4  ;;  %s6521_s6 = scalar_lea.hbm %s9458_s8, 96  ;;  %s6515_s21 = int_to_ptr.hbm [resolvable:$true] %s6514_s21 }
  0x86   : > { %s6516_s24 = scalar_lea.hbm %s6515_s21, 96  ;;  %p6522_p9 = scmp.lt.s32.totalorder %s6515_s21, %s9458_s8 }
  0x87   : > { %p6517_p2 = scmp.ne.s32.totalorder %s6515_s21, %s6516_s24  ;;  %p6523_p10 = scmp.lt.s32.totalorder %s6521_s6, %s6516_s24 }
  0x89   : > { %p6519_p4 = pnand %p6517_p2, %p7770_p8  ;;  %p6524_p11 = por %p6523_p10, %p6522_p9 }
  0x8b   : > { %p6520_p7 = pneg %p6519_p4 }
  0x8d   : > { %p6525_p12 = pnand %p6524_p11, %p6520_p7 }
  0x8f   : > { %6528 = shalt.err (!%p6525_p12)
}
  0x90   : > { %6203 = dma.hbm_to_vmem [thread:$0]  (!%p7758_p6), %s7762_s2, 1536, %s943_s28, [#allocation20], %s9373_s11, %s9373_s11, %s9377_s26  }
  0x91   : > { %s996_s22 = sshll.u32 %s9450_s30, 4  ;;  %s7508_s1 = smov [#allocation22]   ;;  %s7799_s22 = int_to_ptr.hbm [resolvable:$true] %s996_s22 }
  0x92   : > { %s970_s29 = sshll.u32 %s7508_s1, 4  ;;  %s6544_s21 = sshra.s32 %s7785_s10, 4  ;;  %s971_s29 = int_to_ptr.vmem [resolvable:$true] %s970_s29  ;;  %s6545_s21 = int_to_ptr.hbm [resolvable:$true] %s6544_s21 }
  0x93   : > { %s6546_s24 = scalar_lea.hbm %s6545_s21, 64  ;;  %s6551_s6 = scalar_lea.hbm %s9454_s19, 64 }
  0x94   : > { %p6547_p13 = scmp.ne.s32.totalorder %s6545_s21, %s6546_s24  ;;  %p6552_p4 = scmp.lt.s32.totalorder %s6545_s21, %s9454_s19 }
  0x95   : > { %p6553_p7 = scmp.lt.s32.totalorder %s6551_s6, %s6546_s24 }
  0x96   : > { %p6549_p0 = pnand %p6547_p13, %p7770_p8 }
  0x97   : > { %p6554_p9 = por %p6553_p7, %p6552_p4 }
  0x98   : > { %p6550_p2 = pneg %p6549_p0 }
  0x9a   : > { %p6555_p10 = pnand %p6554_p9, %p6550_p2 }
  0x9c   : > { %6558 = shalt.err (!%p6555_p10)
}
  0x9d   : > { %6209 = dma.hbm_to_vmem [thread:$0]  (!%p7758_p6), %s7785_s10, 1024, %s971_s29, [#allocation23], %s9373_s11, %s9373_s11, %s9377_s26  }
  0x9e   : > { %s7509_s2 = smov [#allocation25]   ;;  %s1024_s1 = sshll.u32 %s9456_s12, 4  ;;  %s7813_s1 = int_to_ptr.hbm [resolvable:$true] %s1024_s1 }
  0x9f   : > { %s998_s28 = sshll.u32 %s7509_s2, 4  ;;  %s6574_s21 = sshra.s32 %s7799_s22, 4  ;;  %s999_s28 = int_to_ptr.vmem [resolvable:$true] %s998_s28  ;;  %s6575_s21 = int_to_ptr.hbm [resolvable:$true] %s6574_s21 }
  0xa0   : > { %s6576_s24 = scalar_lea.hbm %s6575_s21, 16  ;;  %s6581_s6 = scalar_lea.hbm %s9450_s30, 16 }
  0xa1   : > { %p6577_p11 = scmp.ne.s32.totalorder %s6575_s21, %s6576_s24  ;;  %p6582_p0 = scmp.lt.s32.totalorder %s6575_s21, %s9450_s30 }
  0xa2   : > { %p6583_p2 = scmp.lt.s32.totalorder %s6581_s6, %s6576_s24 }
  0xa3   : > { %p6579_p12 = pnand %p6577_p11, %p7770_p8 }
  0xa4   : > { %p6584_p4 = por %p6583_p2, %p6582_p0 }
  0xa5   : > { %p6580_p13 = pneg %p6579_p12 }
  0xa7   : > { %p6585_p7 = pnand %p6584_p4, %p6580_p13 }
  0xa9   : > { %6588 = shalt.err (!%p6585_p7)
}
  0xaa   : > { %6215 = dma.hbm_to_vmem [thread:$0]  (!%p7758_p6), %s7799_s22, 256, %s999_s28, [#allocation26], %s9373_s11, %s9373_s11, %s9377_s26  }
  0xab   : > { %s7510_s29 = smov [#allocation28]   ;;  %s1051_s2 = sshll.u32 %s9451_s27, 4  ;;  %s1052_s2 = int_to_ptr.hbm [resolvable:$true] %s1051_s2 }
  0xac   : > { %s1026_s10 = sshll.u32 %s7510_s29, 4  ;;  %s6604_s21 = sshra.s32 %s7813_s1, 4  ;;  %s1027_s10 = int_to_ptr.vmem [resolvable:$true] %s1026_s10  ;;  %s6605_s21 = int_to_ptr.hbm [resolvable:$true] %s6604_s21 }
  0xad   : > { %s6606_s24 = scalar_lea.hbm %s6605_s21, 4  ;;  %s6611_s6 = scalar_lea.hbm %s9456_s12, 4 }
  0xae   : > { %p6607_p9 = scmp.ne.s32.totalorder %s6605_s21, %s6606_s24  ;;  %p6612_p12 = scmp.lt.s32.totalorder %s6605_s21, %s9456_s12 }
  0xaf   : > { %p6613_p13 = scmp.lt.s32.totalorder %s6611_s6, %s6606_s24 }
  0xb0   : > { %p6609_p10 = pnand %p6607_p9, %p7770_p8 }
  0xb1   : > { %p6614_p0 = por %p6613_p13, %p6612_p12 }
  0xb2   : > { %p6610_p11 = pneg %p6609_p10 }
  0xb4   : > { %p6615_p2 = pnand %p6614_p0, %p6610_p11 }
  0xb6   : > { %6618 = shalt.err (!%p6615_p2)
}
  0xb7   : > { %s9375_s8 = smov 32   ;;  %s7512_s22 = smov 2  }
  0xb8   : > { %6221 = dma.hbm_to_vmem [thread:$0]  (!%p7758_p6), %s7813_s1, 64, %s1027_s10, [#allocation29], %s9375_s8, %s9375_s8, %s7512_s22  }
  0xb9   : > { %s7513_s28 = smov [#allocation31]   ;;  %s1075_s21 = sshll.u32 %s9452_s25, 4  ;;  %s7839_s21 = int_to_ptr.hbm [resolvable:$true] %s1075_s21 }
  0xba   : > { %s1053_s29 = sshll.u32 %s7513_s28, 4  ;;  %s6634_s24 = sshra.s32 %s1052_s2, 4  ;;  %s1054_s29 = int_to_ptr.vmem [resolvable:$true] %s1053_s29  ;;  %s6635_s24 = int_to_ptr.hbm [resolvable:$true] %s6634_s24 }
  0xbb   : > { %s6636_s6 = scalar_lea.hbm %s6635_s24, 1  ;;  %s6641_s11 = scalar_lea.hbm %s9451_s27, 1 }
  0xbc   : > { %p6637_p4 = scmp.ne.s32.totalorder %s6635_s24, %s6636_s6  ;;  %p6642_p10 = scmp.lt.s32.totalorder %s6635_s24, %s9451_s27 }
  0xbd   : > { %p6643_p11 = scmp.lt.s32.totalorder %s6641_s11, %s6636_s6 }
  0xbe   : > { %p6639_p7 = pnand %p6637_p4, %p7770_p8 }
  0xbf   : > { %p6644_p12 = por %p6643_p11, %p6642_p10 }
  0xc0   : > { %p6640_p9 = pneg %p6639_p7 }
  0xc2   : > { %p6645_p13 = pnand %p6644_p12, %p6640_p9 }
  0xc4   : > { %6648 = shalt.err (!%p6645_p13)
}
  0xc5   : > { %6227 = dma.hbm_to_vmem [thread:$0]  (!%p7758_p6), %s1052_s2, 16, %s1054_s29, [#allocation32]  }
  0xc6   : > { %s1098_s1 = sshll.u32 %s9455_s13, 4  ;;  %s7514_s10 = smov [#allocation34]   ;;  %s7848_s1 = int_to_ptr.hbm [resolvable:$true] %s1098_s1 }
  0xc7   : > { %s1077_s28 = sshll.u32 %s7514_s10, 4  ;;  %s6664_s8 = sshra.s32 %s7839_s21, 4  ;;  %s1078_s28 = int_to_ptr.vmem [resolvable:$true] %s1077_s28  ;;  %s6665_s8 = int_to_ptr.hbm [resolvable:$true] %s6664_s8 }
  0xc8   : > { %s6666_s11 = scalar_lea.hbm %s6665_s8, 1  ;;  %s6671_s24 = scalar_lea.hbm %s9452_s25, 1 }
  0xc9   : > { %p6667_p0 = scmp.ne.s32.totalorder %s6665_s8, %s6666_s11  ;;  %p6672_p7 = scmp.lt.s32.totalorder %s6665_s8, %s9452_s25 }
  0xca   : > { %p6673_p9 = scmp.lt.s32.totalorder %s6671_s24, %s6666_s11 }
  0xcb   : > { %p6669_p2 = pnand %p6667_p0, %p7770_p8 }
  0xcc   : > { %p6674_p10 = por %p6673_p9, %p6672_p7 }
  0xcd   : > { %p6670_p4 = pneg %p6669_p2 }
  0xcf   : > { %p6675_p11 = pnand %p6674_p10, %p6670_p4 }
  0xd1   : > { %6678 = shalt.err (!%p6675_p11)
}
  0xd2   : > { %6233 = dma.hbm_to_vmem [thread:$0]  (!%p7758_p6), %s7839_s21, 16, %s1078_s28, [#allocation35]  }
  0xd3   : > { %s7515_s2 = smov [#allocation37]   ;;  %s1126_s6 = sshll.u32 %s9457_s4, 4  ;;  %s7859_s6 = int_to_ptr.hbm [resolvable:$true] %s1126_s6 }
  0xd4   : > { %s1100_s29 = sshll.u32 %s7515_s2, 4  ;;  %s6694_s8 = sshra.s32 %s7848_s1, 4  ;;  %s1101_s29 = int_to_ptr.vmem [resolvable:$true] %s1100_s29  ;;  %s6695_s8 = int_to_ptr.hbm [resolvable:$true] %s6694_s8 }
  0xd5   : > { %s6696_s10 = scalar_lea.hbm %s6695_s8, 128  ;;  %s6701_s11 = scalar_lea.hbm %s9455_s13, 128 }
  0xd6   : > { %p6697_p12 = scmp.ne.s32.totalorder %s6695_s8, %s6696_s10  ;;  %p6702_p2 = scmp.lt.s32.totalorder %s6695_s8, %s9455_s13 }
  0xd7   : > { %p6703_p4 = scmp.lt.s32.totalorder %s6701_s11, %s6696_s10 }
  0xd8   : > { %p6699_p13 = pnand %p6697_p12, %p7770_p8 }
  0xd9   : > { %p6704_p7 = por %p6703_p4, %p6702_p2 }
  0xda   : > { %p6700_p0 = pneg %p6699_p13 }
  0xdc   : > { %p6705_p9 = pnand %p6704_p7, %p6700_p0 }
  0xde   : > { %6708 = shalt.err (!%p6705_p9)
}
  0xdf   : > { %s9465_s21 = smov 128   ;;  %s1154_s28 = sshll.u32 %s9453_s20, 4  ;;  %s7873_s28 = int_to_ptr.hbm [resolvable:$true] %s1154_s28 }
  0xe0   : > { %6239 = dma.hbm_to_vmem [thread:$0]  (!%p7758_p6), %s7848_s1, 2048, %s1101_s29, [#allocation38], %s9465_s21, %s9465_s21, %s9377_s26  }
  0xe1   : > { %s7516_s24 = smov [#allocation40]   ;;  %s6724_s8 = sshra.s32 %s7859_s6, 4  ;;  %s6725_s8 = int_to_ptr.hbm [resolvable:$true] %s6724_s8 }
  0xe2   : > { %s1128_s2 = sshll.u32 %s7516_s24, 4  ;;  %s6726_s10 = scalar_lea.hbm %s6725_s8, 32  ;;  %s1129_s2 = int_to_ptr.vmem [resolvable:$true] %s1128_s2 }
  0xe3   : > { %p6727_p10 = scmp.ne.s32.totalorder %s6725_s8, %s6726_s10  ;;  %s6731_s11 = scalar_lea.hbm %s9457_s4, 32 }
  0xe4   : > { %p6732_p13 = scmp.lt.s32.totalorder %s6725_s8, %s9457_s4  ;;  %p6733_p0 = scmp.lt.s32.totalorder %s6731_s11, %s6726_s10 }
  0xe5   : > { %p6729_p11 = pnand %p6727_p10, %p7770_p8 }
  0xe6   : > { %p6734_p2 = por %p6733_p0, %p6732_p13 }
  0xe7   : > { %p6730_p12 = pneg %p6729_p11 }
  0xe9   : > { %p6735_p4 = pnand %p6734_p2, %p6730_p12 }
  0xeb   : > { %6738 = shalt.err (!%p6735_p4)
}
  0xec   : > { %6245 = dma.hbm_to_vmem [thread:$0]  (!%p7758_p6), %s7859_s6, 512, %s1129_s2, [#allocation41], %s9465_s21, %s9465_s21, %s9377_s26  }
  0xed   : > { %s7517_s1 = smov [#allocation43]   ;;  %s6754_s24 = sshra.s32 %s7873_s28, 4  ;;  %s6755_s24 = int_to_ptr.hbm [resolvable:$true] %s6754_s24 }
  0xee   : > { %s1156_s29 = sshll.u32 %s7517_s1, 4  ;;  %s6756_s8 = scalar_lea.hbm %s6755_s24, 8  ;;  %s1157_s29 = int_to_ptr.vmem [resolvable:$true] %s1156_s29 }
  0xef   : > { %p6757_p7 = scmp.ne.s32.totalorder %s6755_s24, %s6756_s8  ;;  %s6761_s10 = scalar_lea.hbm %s9453_s20, 8 }
  0xf0   : > { %p6762_p11 = scmp.lt.s32.totalorder %s6755_s24, %s9453_s20  ;;  %p6763_p12 = scmp.lt.s32.totalorder %s6761_s10, %s6756_s8 }
  0xf1   : > { %p6759_p9 = pnand %p6757_p7, %p7770_p8 }
  0xf2   : > { %p6764_p13 = por %p6763_p12, %p6762_p11 }
  0xf3   : > { %p6760_p10 = pneg %p6759_p9 }
  0xf5   : > { %p6765_p0 = pnand %p6764_p13, %p6760_p10 }
  0xf7   : > { %6768 = shalt.err (!%p6765_p0)
}
  0xf8   : > { %s9466_s6 = smov 32   ;;  %s9376_s2 = sadd.s32 4294967294, %s7468_s18  }
  0xf9   : > { %6251 = dma.hbm_to_vmem [thread:$0]  (!%p7758_p6), %s7873_s28, 128, %s1157_s29, [#allocation44], %s9466_s6, %s9466_s6, %s7512_s22  }
  0xfa   : > { %s7899_s11 = sadd.s32 1, %s7468_s18   ;;  %s115_s24 = sadd.s32 1, %s7464_s16 }
  0xfb   : > { %9467 = sst [smem:[#allocation106_spill]] %s7899_s11  ;;  %s112_s1 = ssub.s32 %s7468_s18, %s7899_s11 }
  0xfc   : > { %p113_p2 = scmp.eq.s32.totalorder %s112_s1, 0  ;;  %p122_p4 = scmp.ne.s32.totalorder %s7464_s16, %s7460_s15 }
  0xfd   : > { %p123_p7 = scmp.eq.s32.totalorder %s7468_s18, 0  ;;  %p128_p9 = scmp.ne.s32.totalorder %s7460_s15, %s7456_s0 }
  0xfe   : > { %s7910_s8 = scalar_select %p113_p2, %s7464_s16, %s115_s24  }
  0xff   : > { %p124_p10 = por %p123_p7, %p122_p4  ;;  %p7914_p11 = por %p9387_p1, %p128_p9 }
 0x100   : > { %9468 = sst [smem:[#allocation107_spill]] %s7910_s8  ;;  %p781_p12 = scmp.eq.s32.totalorder %s7740_s23, 1 }
 0x101   : > { %p787_p13 = scmp.eq.s32.totalorder %s9376_s2, 1  ;;  %p6307_p0 = scmp.lt.s32.totalorder %s7468_s18, 2 }
 0x102   : > { %s7923_s22 = sand.u32 1, %s7464_s16   ;;  %p7925_p5 = por %p781_p12, %p122_p4 }
 0x103   : > { %p7929_p2 = por %p787_p13, %p128_p9  ;;  %p7933_p7 = pnand %p6307_p0, %p124_p10 }
 0x104   : > { %s9388_s1 = sand.u32 1, %s7468_s18   ;;  %s5667_s24 = sshll.u32 %s7923_s22, 4 }
 0x105   : > { %s9471_s29 = scalar_select %p7929_p2, 1, 0 }
 0x106   : > { %s6091_s2 = sshll.u32 %s7468_s18, 4  ;;  %s1222_s26 = scalar_lea.vmem [#allocation10], %s5667_s24 }
 0x107   : > { %s1230_s4 = sshll.u32 %s1222_s26, 4  ;;  %s1227_s12 = scalar_lea.hbm %s9449_s9, %s6091_s2  ;;  %s1231_s4 = int_to_ptr.vmem [resolvable:$true] %s1230_s4 }
 0x108   : > { %s1228_s13 = sshll.u32 %s1227_s12, 4  ;;  %s5672_s19 = sshll.u32 %s7923_s22, 2  ;;  %s1229_s13 = int_to_ptr.hbm [resolvable:$true] %s1228_s13 }
 0x109   : > { %s7944_s20 = scalar_lea.sflag [#allocation11], %s9388_s1  ;;  %s6784_s25 = sshra.s32 %s1229_s13, 4  ;;  %s6785_s25 = int_to_ptr.hbm [resolvable:$true] %s6784_s25 }
 0x10a   : > { %s6786_s27 = scalar_lea.hbm %s6785_s25, 16  ;;  %p7948_p9 = pneg %p7933_p7 }
 0x10b   : > { %p6787_p4 = scmp.ne.s32.totalorder %s6785_s25, %s6786_s27  ;;  %s6791_s26 = scalar_lea.hbm %s9449_s9, 32 }
 0x10c   : > { %p6792_p13 = scmp.lt.s32.totalorder %s6785_s25, %s9449_s9  ;;  %p6793_p0 = scmp.lt.s32.totalorder %s6791_s26, %s6786_s27 }
 0x10d   : > { %p6789_p10 = pnand %p7948_p9, %p6787_p4 }
 0x10e   : > { %p6794_p1 = por %p6793_p0, %p6792_p13 }
 0x10f   : > { %p6790_p12 = pneg %p6789_p10 }
 0x111   : > { %p6795_p2 = pnand %p6794_p1, %p6790_p12 }
 0x113   : > { %6798 = shalt.err (!%p6795_p2)
}
 0x114   : > { %s9474_s12 = smov 8   ;;  %s5673_s2 = sshll.u32 %s7468_s18, 2 }
 0x115   : > { %6261 = dma.hbm_to_vmem [thread:$0]  (!%p7933_p7), %s1229_s13, 256, %s1231_s4, %s7944_s20, %s9465_s21, %s9465_s21, %s9474_s12  }
 0x116   : > { %s1267_s25 = scalar_lea.hbm %s9446_s17, %s5673_s2  ;;  %s1263_s27 = scalar_lea.vmem [#allocation13], %s5672_s19 }
 0x117   : > { %s1271_s24 = sshll.u32 %s1263_s27, 4  ;;  %s1269_s26 = sshll.u32 %s1267_s25, 4  ;;  %s1272_s24 = int_to_ptr.vmem [resolvable:$true] %s1271_s24  ;;  %s1270_s26 = int_to_ptr.hbm [resolvable:$true] %s1269_s26 }
 0x118   : > { %s926_s1 = sshll.u32 %s9448_s3, 4  ;;  %s9475_s9 = sand.u32 1, %s7468_s18   ;;  %s927_s1 = int_to_ptr.hbm [resolvable:$true] %s926_s1 }
 0x119   : > { %s7967_s8 = scalar_lea.sflag [#allocation14], %s9475_s9  ;;  %s6814_s16 = sshra.s32 %s1270_s26, 4  ;;  %s6815_s16 = int_to_ptr.hbm [resolvable:$true] %s6814_s16 }
 0x11a   : > { %s6816_s11 = scalar_lea.hbm %s6815_s16, 4  ;;  %s6821_s13 = scalar_lea.hbm %s9446_s17, 8 }
 0x11b   : > { %p6817_p1 = scmp.ne.s32.totalorder %s6815_s16, %s6816_s11  ;;  %p6822_p10 = scmp.lt.s32.totalorder %s6815_s16, %s9446_s17 }
 0x11c   : > { %p6823_p12 = scmp.lt.s32.totalorder %s6821_s13, %s6816_s11 }
 0x11d   : > { %p6819_p2 = pnand %p6817_p1, %p7948_p9 }
 0x11e   : > { %p6824_p13 = por %p6823_p12, %p6822_p10 }
 0x11f   : > { %p6820_p4 = pneg %p6819_p2 }
 0x121   : > { %p6825_p0 = pnand %p6824_p13, %p6820_p4 }
 0x123   : > { %6828 = shalt.err (!%p6825_p0)
}
 0x124   : > { %6267 = dma.hbm_to_vmem [thread:$0]  (!%p7933_p7), %s1270_s26, 64, %s1272_s24, %s7967_s8  }
 0x125   : > { %s7518_s9 = smov [#allocation18]   ;;  %s954_s4 = sshll.u32 %s9447_s14, 4  ;;  %s7977_s4 = int_to_ptr.hbm [resolvable:$true] %s954_s4 }
 0x126   : > { %s928_s19 = sshll.u32 %s7518_s9, 4  ;;  %s6844_s16 = sshra.s32 %s927_s1, 4  ;;  %s929_s19 = int_to_ptr.vmem [resolvable:$true] %s928_s19  ;;  %s6845_s16 = int_to_ptr.hbm [resolvable:$true] %s6844_s16 }
 0x127   : > { %s6846_s11 = scalar_lea.hbm %s6845_s16, 192  ;;  %s6851_s2 = scalar_lea.hbm %s9448_s3, 192 }
 0x128   : > { %p6847_p1 = scmp.ne.s32.totalorder %s6845_s16, %s6846_s11  ;;  %p6852_p10 = scmp.lt.s32.totalorder %s6845_s16, %s9448_s3 }
 0x129   : > { %p6853_p12 = scmp.lt.s32.totalorder %s6851_s2, %s6846_s11 }
 0x12a   : > { %p6849_p2 = pnand %p6847_p1, %p7770_p8 }
 0x12b   : > { %p6854_p13 = por %p6853_p12, %p6852_p10 }
 0x12c   : > { %p6850_p4 = pneg %p6849_p2 }
 0x12e   : > { %p6855_p0 = pnand %p6854_p13, %p6850_p4 }
 0x130   : > { %6858 = shalt.err (!%p6855_p0)
}
 0x131   : > { %s9476_s25 = sld [smem:[#allocation80_spill]]  ;;  %s7519_s24 = smov [#allocation21]  }
 0x132   : > { %6200 = dma.hbm_to_vmem [thread:$0]  (!%p7758_p6), %s927_s1, 3072, %s929_s19, [#allocation17], %s9465_s21, %s9465_s21, %s9474_s12  }
 0x133   : > { %s956_s26 = sshll.u32 %s7519_s24, 4  ;;  %s6874_s13 = sshra.s32 %s7977_s4, 4  ;;  %s957_s26 = int_to_ptr.vmem [resolvable:$true] %s956_s26  ;;  %s6875_s13 = int_to_ptr.hbm [resolvable:$true] %s6874_s13 }
 0x134   : > { %s6876_s9 = scalar_lea.hbm %s6875_s13, 48  ;;  %s6881_s16 = scalar_lea.hbm %s9447_s14, 48 }
 0x135   : > { %p6877_p1 = scmp.ne.s32.totalorder %s6875_s13, %s6876_s9  ;;  %p6882_p10 = scmp.lt.s32.totalorder %s6875_s13, %s9447_s14 }
 0x136   : > { %p6883_p12 = scmp.lt.s32.totalorder %s6881_s16, %s6876_s9 }
 0x137   : > { %s982_s27 = sshll.u32 %s9476_s25, 4  ;;  %p6879_p2 = pnand %p6877_p1, %p7770_p8  ;;  %s7989_s27 = int_to_ptr.hbm [resolvable:$true] %s982_s27 }
 0x138   : > { %p6884_p13 = por %p6883_p12, %p6882_p10 }
 0x139   : > { %p6880_p4 = pneg %p6879_p2 }
 0x13b   : > { %p6885_p0 = pnand %p6884_p13, %p6880_p4 }
 0x13d   : > { %6888 = shalt.err (!%p6885_p0)
}
 0x13e   : > { %s9477_s1 = sld [smem:[#allocation82_spill]]  ;;  %s7520_s19 = smov [#allocation24]  }
 0x13f   : > { %6206 = dma.hbm_to_vmem [thread:$0]  (!%p7758_p6), %s7977_s4, 768, %s957_s26, [#allocation20], %s9465_s21, %s9465_s21, %s9474_s12  }
 0x140   : > { %s984_s11 = sshll.u32 %s7520_s19, 4  ;;  %s6904_s24 = sshra.s32 %s7989_s27, 4  ;;  %s985_s11 = int_to_ptr.vmem [resolvable:$true] %s984_s11  ;;  %s6905_s24 = int_to_ptr.hbm [resolvable:$true] %s6904_s24 }
 0x141   : > { %s6906_s13 = scalar_lea.hbm %s6905_s24, 32  ;;  %s6911_s9 = scalar_lea.hbm %s9476_s25, 32 }
 0x142   : > { %p6907_p1 = scmp.ne.s32.totalorder %s6905_s24, %s6906_s13  ;;  %p6912_p10 = scmp.lt.s32.totalorder %s6905_s24, %s9476_s25 }
 0x143   : > { %p6913_p12 = scmp.lt.s32.totalorder %s6911_s9, %s6906_s13 }
 0x144   : > { %s1010_s2 = sshll.u32 %s9477_s1, 4  ;;  %p6909_p2 = pnand %p6907_p1, %p7770_p8  ;;  %s8003_s2 = int_to_ptr.hbm [resolvable:$true] %s1010_s2 }
 0x145   : > { %p6914_p13 = por %p6913_p12, %p6912_p10 }
 0x146   : > { %p6910_p4 = pneg %p6909_p2 }
 0x148   : > { %p6915_p0 = pnand %p6914_p13, %p6910_p4 }
 0x14a   : > { %6918 = shalt.err (!%p6915_p0)
}
 0x14b   : > { %s9478_s4 = sld [smem:[#allocation84_spill]]  ;;  %s7521_s26 = smov [#allocation27]  }
 0x14c   : > { %6212 = dma.hbm_to_vmem [thread:$0]  (!%p7758_p6), %s7989_s27, 512, %s985_s11, [#allocation23], %s9465_s21, %s9465_s21, %s9474_s12  }
 0x14d   : > { %s1012_s16 = sshll.u32 %s7521_s26, 4  ;;  %s6934_s24 = sshra.s32 %s8003_s2, 4  ;;  %s1013_s16 = int_to_ptr.vmem [resolvable:$true] %s1012_s16  ;;  %s6935_s24 = int_to_ptr.hbm [resolvable:$true] %s6934_s24 }
 0x14e   : > { %s6936_s13 = scalar_lea.hbm %s6935_s24, 8  ;;  %s6941_s9 = scalar_lea.hbm %s9477_s1, 8 }
 0x14f   : > { %p6937_p1 = scmp.ne.s32.totalorder %s6935_s24, %s6936_s13  ;;  %p6942_p10 = scmp.lt.s32.totalorder %s6935_s24, %s9477_s1 }
 0x150   : > { %p6943_p12 = scmp.lt.s32.totalorder %s6941_s9, %s6936_s13 }
 0x151   : > { %s1039_s19 = sshll.u32 %s9478_s4, 4  ;;  %p6939_p2 = pnand %p6937_p1, %p7770_p8  ;;  %s1040_s19 = int_to_ptr.hbm [resolvable:$true] %s1039_s19 }
 0x152   : > { %p6944_p13 = por %p6943_p12, %p6942_p10 }
 0x153   : > { %p6940_p4 = pneg %p6939_p2 }
 0x155   : > { %p6945_p0 = pnand %p6944_p13, %p6940_p4 }
 0x157   : > { %6948 = shalt.err (!%p6945_p0)
}
 0x158   : > { %s9396_s3 = smov 64   ;;  %s9479_s27 = sld [smem:[#allocation86_spill]] }
 0x159   : > { %s9397_s11 = smov 4   ;;  %s7524_s26 = smov [#allocation30]  }
 0x15a   : > { %6218 = dma.hbm_to_vmem [thread:$0]  (!%p7758_p6), %s8003_s2, 128, %s1013_s16, [#allocation26], %s9396_s3, %s9396_s3, %s9397_s11  }
 0x15b   : > { %s1041_s24 = sshll.u32 %s7524_s26, 4  ;;  %s6964_s9 = sshra.s32 %s1040_s19, 4  ;;  %s1042_s24 = int_to_ptr.vmem [resolvable:$true] %s1041_s24  ;;  %s6965_s9 = int_to_ptr.hbm [resolvable:$true] %s6964_s9 }
 0x15c   : > { %s6966_s1 = scalar_lea.hbm %s6965_s9, 2  ;;  %s6971_s14 = scalar_lea.hbm %s9478_s4, 2 }
 0x15d   : > { %p6967_p1 = scmp.ne.s32.totalorder %s6965_s9, %s6966_s1  ;;  %p6972_p10 = scmp.lt.s32.totalorder %s6965_s9, %s9478_s4 }
 0x15e   : > { %s1063_s13 = sshll.u32 %s9479_s27, 4  ;;  %p6973_p12 = scmp.lt.s32.totalorder %s6971_s14, %s6966_s1  ;;  %s8029_s13 = int_to_ptr.hbm [resolvable:$true] %s1063_s13 }
 0x15f   : > { %p6969_p2 = pnand %p6967_p1, %p7770_p8 }
 0x160   : > { %p6974_p13 = por %p6973_p12, %p6972_p10 }
 0x161   : > { %p6970_p4 = pneg %p6969_p2 }
 0x163   : > { %p6975_p0 = pnand %p6974_p13, %p6970_p4 }
 0x165   : > { %6978 = shalt.err (!%p6975_p0)
}
 0x166   : > { %s9480_s2 = sld [smem:[#allocation88_spill]]  ;;  %s7525_s26 = smov [#allocation33]  }
 0x167   : > { %6224 = dma.hbm_to_vmem [thread:$0]  (!%p7758_p6), %s1040_s19, 32, %s1042_s24, [#allocation29]  }
 0x168   : > { %s1065_s3 = sshll.u32 %s7525_s26, 4  ;;  %s6994_s11 = sshra.s32 %s8029_s13, 4  ;;  %s1066_s3 = int_to_ptr.vmem [resolvable:$true] %s1065_s3  ;;  %s6995_s11 = int_to_ptr.hbm [resolvable:$true] %s6994_s11 }
 0x169   : > { %s6996_s14 = scalar_lea.hbm %s6995_s11, 1  ;;  %s7001_s1 = scalar_lea.hbm %s9479_s27, 1 }
 0x16a   : > { %p6997_p1 = scmp.ne.s32.totalorder %s6995_s11, %s6996_s14  ;;  %p7002_p10 = scmp.lt.s32.totalorder %s6995_s11, %s9479_s27 }
 0x16b   : > { %p7003_p12 = scmp.lt.s32.totalorder %s7001_s1, %s6996_s14 }
 0x16c   : > { %s1087_s16 = sshll.u32 %s9480_s2, 4  ;;  %p6999_p2 = pnand %p6997_p1, %p7770_p8  ;;  %s8038_s16 = int_to_ptr.hbm [resolvable:$true] %s1087_s16 }
 0x16d   : > { %p7004_p13 = por %p7003_p12, %p7002_p10 }
 0x16e   : > { %p7000_p4 = pneg %p6999_p2 }
 0x170   : > { %p7005_p0 = pnand %p7004_p13, %p7000_p4 }
 0x172   : > { %7008 = shalt.err (!%p7005_p0)
}
 0x173   : > { %s9481_s19 = sld [smem:[#allocation90_spill]]  ;;  %s7526_s24 = smov [#allocation36]  }
 0x174   : > { %6230 = dma.hbm_to_vmem [thread:$0]  (!%p7758_p6), %s8029_s13, 16, %s1066_s3, [#allocation32]  }
 0x175   : > { %s1089_s9 = sshll.u32 %s7526_s24, 4  ;;  %s7024_s11 = sshra.s32 %s8038_s16, 4  ;;  %s1090_s9 = int_to_ptr.vmem [resolvable:$true] %s1089_s9  ;;  %s7025_s11 = int_to_ptr.hbm [resolvable:$true] %s7024_s11 }
 0x176   : > { %s7026_s14 = scalar_lea.hbm %s7025_s11, 1  ;;  %s7031_s1 = scalar_lea.hbm %s9480_s2, 1 }
 0x177   : > { %p7027_p1 = scmp.ne.s32.totalorder %s7025_s11, %s7026_s14  ;;  %p7032_p10 = scmp.lt.s32.totalorder %s7025_s11, %s9480_s2 }
 0x178   : > { %p7033_p12 = scmp.lt.s32.totalorder %s7031_s1, %s7026_s14 }
 0x179   : > { %s1112_s26 = sshll.u32 %s9481_s19, 4  ;;  %p7029_p2 = pnand %p7027_p1, %p7770_p8  ;;  %s8049_s26 = int_to_ptr.hbm [resolvable:$true] %s1112_s26 }
 0x17a   : > { %p7034_p13 = por %p7033_p12, %p7032_p10 }
 0x17b   : > { %p7030_p4 = pneg %p7029_p2 }
 0x17d   : > { %p7035_p0 = pnand %p7034_p13, %p7030_p4 }
 0x17f   : > { %7038 = shalt.err (!%p7035_p0)
}
 0x180   : > { %s9482_s3 = sld [smem:[#allocation92_spill]]  ;;  %s7527_s24 = smov [#allocation39]  }
 0x181   : > { %6236 = dma.hbm_to_vmem [thread:$0]  (!%p7758_p6), %s8038_s16, 16, %s1090_s9, [#allocation35]  }
 0x182   : > { %s1114_s4 = sshll.u32 %s7527_s24, 4  ;;  %s7054_s11 = sshra.s32 %s8049_s26, 4  ;;  %s1115_s4 = int_to_ptr.vmem [resolvable:$true] %s1114_s4  ;;  %s7055_s11 = int_to_ptr.hbm [resolvable:$true] %s7054_s11 }
 0x183   : > { %s7056_s14 = scalar_lea.hbm %s7055_s11, 64  ;;  %s7061_s1 = scalar_lea.hbm %s9481_s19, 64 }
 0x184   : > { %p7057_p1 = scmp.ne.s32.totalorder %s7055_s11, %s7056_s14  ;;  %p7062_p10 = scmp.lt.s32.totalorder %s7055_s11, %s9481_s19 }
 0x185   : > { %p7063_p12 = scmp.lt.s32.totalorder %s7061_s1, %s7056_s14 }
 0x186   : > { %s1140_s13 = sshll.u32 %s9482_s3, 4  ;;  %p7059_p2 = pnand %p7057_p1, %p7770_p8  ;;  %s8060_s13 = int_to_ptr.hbm [resolvable:$true] %s1140_s13 }
 0x187   : > { %p7064_p13 = por %p7063_p12, %p7062_p10 }
 0x188   : > { %p7060_p4 = pneg %p7059_p2 }
 0x18a   : > { %p7065_p0 = pnand %p7064_p13, %p7060_p4 }
 0x18c   : > { %7068 = shalt.err (!%p7065_p0)
}
 0x18d   : > { %s9483_s16 = sld [smem:[#allocation95_spill]]  ;;  %s7528_s24 = smov [#allocation42]  }
 0x18e   : > { %6242 = dma.hbm_to_vmem [thread:$0]  (!%p7758_p6), %s8049_s26, 1024, %s1115_s4, [#allocation38], %s9465_s21, %s9465_s21, %s9474_s12  }
 0x18f   : > { %s1142_s2 = sshll.u32 %s7528_s24, 4  ;;  %s7084_s11 = sshra.s32 %s8060_s13, 4  ;;  %s1143_s2 = int_to_ptr.vmem [resolvable:$true] %s1142_s2  ;;  %s7085_s11 = int_to_ptr.hbm [resolvable:$true] %s7084_s11 }
 0x190   : > { %s7086_s14 = scalar_lea.hbm %s7085_s11, 16  ;;  %s7091_s1 = scalar_lea.hbm %s9482_s3, 16 }
 0x191   : > { %p7087_p1 = scmp.ne.s32.totalorder %s7085_s11, %s7086_s14  ;;  %p7092_p10 = scmp.lt.s32.totalorder %s7085_s11, %s9482_s3 }
 0x192   : > { %p7093_p12 = scmp.lt.s32.totalorder %s7091_s1, %s7086_s14 }
 0x193   : > { %s9484_s9 = smov %s9483_s16  ;;  %s1171_s17 = sshll.u32 %s9483_s16, 4  ;;  %s8074_s17 = int_to_ptr.hbm [resolvable:$true] %s1171_s17 }
 0x194   : > { %p7089_p2 = pnand %p7087_p1, %p7770_p8  ;;  %p7094_p13 = por %p7093_p12, %p7092_p10 }
 0x196   : > { %p7090_p4 = pneg %p7089_p2 }
 0x198   : > { %p7095_p0 = pnand %p7094_p13, %p7090_p4 }
 0x19a   : > { %7098 = shalt.err (!%p7095_p0)
}
 0x19b   : > { %s9485_s4 = smov 4   ;;  %s9486_s26 = smov 64  }
 0x19c   : > { %6248 = dma.hbm_to_vmem [thread:$0]  (!%p7758_p6), %s8060_s13, 256, %s1143_s2, [#allocation41], %s9486_s26, %s9486_s26, %s9485_s4  }
 0x19d   : > { %s7529_s16 = smov [#allocation45]   ;;  %s5664_s19 = sshll.u32 %s7923_s22, 6 }
 0x19e   : > { %s1173_s24 = sshll.u32 %s7529_s16, 4  ;;  %s7114_s11 = sshra.s32 %s8074_s17, 4  ;;  %s1174_s24 = int_to_ptr.vmem [resolvable:$true] %s1173_s24  ;;  %s7115_s11 = int_to_ptr.hbm [resolvable:$true] %s7114_s11 }
 0x19f   : > { %s7116_s14 = scalar_lea.hbm %s7115_s11, 1024  ;;  %s7121_s1 = scalar_lea.hbm %s9484_s9, 1024 }
 0x1a0   : > { %p7117_p1 = scmp.ne.s32.totalorder %s7115_s11, %s7116_s14  ;;  %p7122_p10 = scmp.lt.s32.totalorder %s7115_s11, %s9484_s9 }
 0x1a1   : > { %p7123_p12 = scmp.lt.s32.totalorder %s7121_s1, %s7116_s14 }
 0x1a2   : > { %p7119_p2 = pnand %p7117_p1, %p7770_p8 }
 0x1a3   : > { %p7124_p13 = por %p7123_p12, %p7122_p10 }
 0x1a4   : > { %p7120_p4 = pneg %p7119_p2 }
 0x1a6   : > { %p7125_p0 = pnand %p7124_p13, %p7120_p4 }
 0x1a8   : > { %7128 = shalt.err (!%p7125_p0)
}
 0x1a9   : > { %s9487_s2 = sld [smem:[#allocation69_spill]]  ;;  %s6090_s5 = sshll.u32 %s7468_s18, 6 }
 0x1aa   : > { %6254 = dma.hbm_to_vmem [thread:$0]  (!%p7758_p6), %s8074_s17, 16384, %s1174_s24, [#allocation44], %s9465_s21, %s9465_s21, %s9474_s12  }
 0x1ab   : > { %s1200_s13 = scalar_lea.vmem [#allocation7], %s5664_s19  ;;  %s1197_s11 = scalar_lea.sflag [#allocation8], %s7923_s22 }
 0x1ac   : > { %s1208_s4 = sshll.u32 %s1200_s13, 4  ;;  %s1209_s4 = int_to_ptr.vmem [resolvable:$true] %s1208_s4 }
 0x1af   : > { %s1205_s26 = scalar_lea.hbm %s9487_s2, %s6090_s5  ;;  %s7151_s1 = scalar_lea.hbm %s9487_s2, 128 }
 0x1b0   : > { %s1206_s16 = sshll.u32 %s1205_s26, 4  ;;  %s1207_s16 = int_to_ptr.hbm [resolvable:$true] %s1206_s16 }
 0x1b1   : > { %s7144_s7 = sshra.s32 %s1207_s16, 4  ;;  %s7145_s7 = int_to_ptr.hbm [resolvable:$true] %s7144_s7 }
 0x1b2   : > { %s7146_s14 = scalar_lea.hbm %s7145_s7, 64  ;;  %p7152_p4 = scmp.lt.s32.totalorder %s7145_s7, %s9487_s2 }
 0x1b3   : > { %p7147_p8 = scmp.ne.s32.totalorder %s7145_s7, %s7146_s14  ;;  %p7153_p10 = scmp.lt.s32.totalorder %s7151_s1, %s7146_s14 }
 0x1b5   : > { %p7149_p1 = pnand %p7147_p8, %p7948_p9  ;;  %p7154_p6 = por %p7153_p10, %p7152_p4 }
 0x1b7   : > { %p7150_p2 = pneg %p7149_p1 }
 0x1b9   : > { %p7155_p12 = pnand %p7154_p6, %p7150_p2 }
 0x1bb   : > { %7158 = shalt.err (!%p7155_p12)
}
 0x1bc   : > { %s7530_s17 = smov 256   ;;  %s9488_s21 = sld [smem:[#allocation71_spill]] }
 0x1bd   : > { %s7531_s12 = smov 16   ;;  %s5670_s19 = sshll.u32 %s7923_s22, 3 }
 0x1be   : > { %6258 = dma.hbm_to_vmem [thread:$0]  (!%p7933_p7), %s1207_s16, 1024, %s1209_s4, %s1197_s11, %s7530_s17, %s7530_s17, %s7531_s12  }
 0x1bf   : > { %s5671_s24 = sshll.u32 %s7468_s18, 3  ;;  %s1244_s26 = scalar_lea.vmem [#allocation12], %s5670_s19 }
 0x1c0   : > { %s1252_s7 = sshll.u32 %s1244_s26, 4  ;;  %s1253_s7 = int_to_ptr.vmem [resolvable:$true] %s1252_s7 }
 0x1c2   : > { %s1248_s5 = scalar_lea.hbm %s9488_s21, %s5671_s24  ;;  %s7181_s2 = scalar_lea.hbm %s9488_s21, 16 }
 0x1c3   : > { %s1250_s13 = sshll.u32 %s1248_s5, 4  ;;  %s1251_s13 = int_to_ptr.hbm [resolvable:$true] %s1250_s13 }
 0x1c4   : > { %s7174_s14 = sshra.s32 %s1251_s13, 4  ;;  %s7175_s14 = int_to_ptr.hbm [resolvable:$true] %s7174_s14 }
 0x1c5   : > { %s7176_s1 = scalar_lea.hbm %s7175_s14, 8  ;;  %p7182_p1 = scmp.lt.s32.totalorder %s7175_s14, %s9488_s21 }
 0x1c6   : > { %p7177_p13 = scmp.ne.s32.totalorder %s7175_s14, %s7176_s1  ;;  %p7183_p2 = scmp.lt.s32.totalorder %s7181_s2, %s7176_s1 }
 0x1c8   : > { %p7179_p0 = pnand %p7177_p13, %p7948_p9  ;;  %p7184_p4 = por %p7183_p2, %p7182_p1 }
 0x1ca   : > { %p7180_p8 = pneg %p7179_p0 }
 0x1cc   : > { %p7185_p10 = pnand %p7184_p4, %p7180_p8 }
 0x1ce   : > { %7188 = shalt.err (!%p7185_p10)
}
 0x1cf   : > { %s9489_s4 = sld [smem:[#allocation73_spill]]  ;;  %s5674_s16 = sshll.u32 %s7923_s22, 1 }
 0x1d0   : > { %6264 = dma.hbm_to_vmem [thread:$0]  (!%p7933_p7), %s1251_s13, 128, %s1253_s7, %s7944_s20  }
 0x1d1   : > { %s5675_s11 = sshll.u32 %s7468_s18, 1  ;;  %s1282_s19 = scalar_lea.vmem [#allocation15], %s5674_s16 }
 0x1d2   : > { %s1290_s24 = sshll.u32 %s1282_s19, 4  ;;  %s1291_s24 = int_to_ptr.vmem [resolvable:$true] %s1290_s24 }
 0x1d5   : > { %s1286_s17 = scalar_lea.hbm %s9489_s4, %s5675_s11  ;;  %s7211_s26 = scalar_lea.hbm %s9489_s4, 4 }
 0x1d6   : > { %s1288_s12 = sshll.u32 %s1286_s17, 4  ;;  %s1289_s12 = int_to_ptr.hbm [resolvable:$true] %s1288_s12 }
 0x1d7   : > { %s7204_s2 = sshra.s32 %s1289_s12, 4  ;;  %s7205_s2 = int_to_ptr.hbm [resolvable:$true] %s7204_s2 }
 0x1d8   : > { %s7206_s5 = scalar_lea.hbm %s7205_s2, 2  ;;  %p7212_p0 = scmp.lt.s32.totalorder %s7205_s2, %s9489_s4 }
 0x1d9   : > { %p7207_p6 = scmp.ne.s32.totalorder %s7205_s2, %s7206_s5  ;;  %p7213_p8 = scmp.lt.s32.totalorder %s7211_s26, %s7206_s5 }
 0x1db   : > { %p7209_p12 = pnand %p7207_p6, %p7948_p9  ;;  %p7214_p1 = por %p7213_p8, %p7212_p0 }
 0x1dd   : > { %p7210_p13 = pneg %p7209_p12 }
 0x1df   : > { %p7215_p2 = pnand %p7214_p1, %p7210_p13 }
 0x1e1   : > { %7218 = shalt.err (!%p7215_p2)
}
 0x1e2   : > { %6270 = dma.hbm_to_vmem [thread:$0]  (!%p7933_p7), %s1289_s12, 32, %s1291_s24, %s7967_s8  }
 0x1e3   : > { %1299 = sbr.rel (%p7745_p3) target bundleno = 2102 (0x836), region = 140 }
 0x1e8   : > { %s8131_s22 = sand.u32 1, %s7460_s15  }
 0x1e9   : > { %s5677_s30 = sshll.u32 %s8131_s22, 6  ;;  %s1302_s13 = scalar_lea.sflag [#allocation8], %s8131_s22 }
 0x1ea   : > { %s8137_s7 = scalar_lea.vmem [#allocation7], %s5677_s30 }
 0x1eb   : > { %7391 = dma.done.wait (%p7914_p11), %s1302_s13, 1024  }
 0x1ec   : > { %7393 = vsyncadd (%p7914_p11), %s1302_s13, 4294966272  ;;  %s8144_s8 = sand.u32 1, %s7740_s23   ;;  %s5678_s6 = sshll.u32 %s8131_s22, 4 }
 0x1ed   : > { %s1312_s14 = scalar_lea.sflag [#allocation11], %s8144_s8  ;;  %s8150_s1 = scalar_lea.vmem [#allocation10], %s5678_s6 }
 0x1ee   : > { %7395 = dma.done.wait (%p7914_p11), %s1312_s14, 384  }
 0x1ef   : > { %7397 = vsyncadd (%p7914_p11), %s1312_s14, 4294966912  ;;  %s5679_s16 = sshll.u32 %s8131_s22, 3  ;;  %s5680_s11 = sshll.u32 %s8131_s22, 2 }
 0x1f0   : > { %s8160_s17 = scalar_lea.vmem [#allocation12], %s5679_s16  ;;  %s1332_s12 = scalar_lea.sflag [#allocation14], %s8144_s8 }
 0x1f1   : > { %s8165_s19 = scalar_lea.vmem [#allocation13], %s5680_s11 }
 0x1f2   : > { %7399 = dma.done.wait (%p7914_p11), %s1332_s12, 96  }
 0x1f3   : > { %7401 = vsyncadd (%p7914_p11), %s1332_s12, 4294967200  ;;  %s9403_s24 = sshll.u32 %s8131_s22, 1  ;;  %p9491_p3 = scmp.eq.s32.totalorder %s7740_s23, 0 }
 0x1f4   : > { %s8174_s2 = scalar_lea.vmem [#allocation15], %s9403_s24 }
 0x1f5   : > { %7403 = dma.done.wait (%p9491_p3), [#allocation17], 9216   ;;  %p9492_p7 = pmov %p9491_p3 }
 0x1f6   : > { %p9493_p9 = pmov %p9491_p3 }
 0x1f7   : > { %7405 = vsyncadd (%p9492_p7), [#allocation17], 4294958080 }
 0x1f8   : > { %7407 = dma.done.wait (%p9493_p9), [#allocation20], 2304   ;;  %p9494_p4 = pmov %p9491_p3 }
 0x1f9   : > { %p9495_p11 = pmov %p9491_p3 }
 0x1fa   : > { %7409 = vsyncadd (%p9494_p4), [#allocation20], 4294964992 }
 0x1fb   : > { %7411 = dma.done.wait (%p9495_p11), [#allocation23], 1536   ;;  %p9496_p10 = pmov %p9491_p3 }
 0x1fc   : > { %p9497_p6 = pmov %p9491_p3 }
 0x1fd   : > { %7413 = vsyncadd (%p9496_p10), [#allocation23], 4294965760 }
 0x1fe   : > { %7415 = dma.done.wait (%p9497_p6), [#allocation26], 384   ;;  %p9498_p12 = pmov %p9491_p3 }
 0x1ff   : > { %p9499_p13 = pmov %p9491_p3 }
 0x200   : > { %7417 = vsyncadd (%p9498_p12), [#allocation26], 4294966912 }
 0x201   : > { %7419 = dma.done.wait (%p9499_p13), [#allocation29], 96   ;;  %p9500_p0 = pmov %p9491_p3 }
 0x203   : > { %7421 = vsyncadd (%p9500_p0), [#allocation29], 4294967200  ;;  %p9501_p8 = pmov %p9500_p0 }
 0x204   : > { %p9502_p1 = pmov %p9500_p0 }
 0x205   : > { %7423 = dma.done.wait (%p9501_p8), [#allocation32], 32  }
 0x206   : > { %7425 = vsyncadd (%p9502_p1), [#allocation32], 4294967264  ;;  %p9503_p2 = pmov %p9500_p0 }
 0x207   : > { %p9504_p3 = pmov %p9500_p0 }
 0x208   : > { %7427 = dma.done.wait (%p9503_p2), [#allocation35], 32  }
 0x209   : > { %7429 = vsyncadd (%p9504_p3), [#allocation35], 4294967264  ;;  %p9505_p7 = pmov %p9500_p0 }
 0x20a   : > { %p9506_p9 = pmov %p9500_p0 }
 0x20b   : > { %7431 = dma.done.wait (%p9505_p7), [#allocation38], 3072  }
 0x20c   : > { %7433 = vsyncadd (%p9506_p9), [#allocation38], 4294964224  ;;  %p9507_p4 = pmov %p9500_p0 }
 0x20d   : > { %p9508_p11 = pmov %p9500_p0 }
 0x20e   : > { %7435 = dma.done.wait (%p9507_p4), [#allocation41], 768  }
 0x20f   : > { %7437 = vsyncadd (%p9508_p11), [#allocation41], 4294966528  ;;  %p9509_p10 = pmov %p9500_p0 }
 0x210   : > { %p9510_p6 = pmov %p9500_p0 }
 0x211   : > { %7439 = dma.done.wait (%p9509_p10), [#allocation44], 16512  }
 0x212   : > { %7441 = vsyncadd (%p9510_p6), [#allocation44], 4294950784  ;;  %v8217_v0 = vld [vmem:[%s8137_s7 + $0x30] sm:$0xff]  ;;  %v8220_v1 = vld [vmem:[%s8137_s7 + $0x38] sm:$0xff]  ;;  %s9511_s10 = sld [smem:[#allocation74_spill]]  ;;  %vm1583_vm0 = vcmask 261120  }
 0x213   : > { %v8223_v2 = vld [vmem:[%s8137_s7 + $0x20] sm:$0xff]  ;;  %1608 = vmatpush.msra.mxu0 %v8217_v0  ;;  %1637 = vmatpush.msra.mxu1 %v8220_v1  ;;  %v8228_v3 = vld [vmem:[%s8137_s7 + $0x28] sm:$0xff]  ;;  %v8231_v4 = vld [vmem:[%s8137_s7 + $0x10] sm:$0xff]  ;;  %vm2305_vm1 = vcmask 130048   ;;  %vm2498_vm2 = vcmask 64512   ;;  %vm2656_vm3 = vcmask 1043456  }
 0x214   : > { %v8234_v5 = vld [vmem:[%s8137_s7 + $0x18] sm:$0xff]  ;;  %1683 = vmatpush.msra.mxu2 %v8217_v0  ;;  %1712 = vmatpush.msra.mxu3 %v8220_v1  ;;  %v8241_v6 = vld [vmem:[%s8137_s7] sm:$0xff]  ;;  %v8244_v7 = vld [vmem:[%s8137_s7 + $0x8] sm:$0xff]  ;;  %vm2801_vm4 = vcmask 1041408   ;;  %vm2564_vm5 = vcmask 523264   ;;  %vm2797_vm6 = vcmask 15360  }
 0x215   : > { %1609 = vmatpush.msra.mxu0 %v8223_v2  ;;  %1638 = vmatpush.msra.mxu1 %v8228_v3  ;;  %v1579_v8 = vld [vmem:[#allocation22] sm:$0xff]  ;;  %v1580_v20 = vld [vmem:[#allocation22 + $0x8] sm:$0xff]  ;;  %v1581_v34 = vld [vmem:[#allocation22 + $0x10] sm:$0xff]  ;;  %vm2652_vm7 = vcmask 31744   ;;  %s9516_s5 = sld [smem:[#allocation94_spill]]  ;;  %vm2793_vm8 = vcmask 257024  }
 0x216   : > { %1684 = vmatpush.msra.mxu2 %v8223_v2  ;;  %1713 = vmatpush.msra.mxu3 %v8228_v3  ;;  %v1655_v9 = vld [vmem:[#allocation22 + $0x20] sm:$0xff]  ;;  %v1656_v23 = vld [vmem:[#allocation22 + $0x28] sm:$0xff]  ;;  %v1657_v37 = vld [vmem:[#allocation22 + $0x30] sm:$0xff]  ;;  %vm2932_vm9 = vcmask 123904   ;;  %s9521_s26 = sld [smem:[#allocation96_spill]]  ;;  %s8928_s20 = scalar_lea.vmem [#allocation46], %s5677_s30 }
 0x217   : > { %1610 = vmatpush.msra.mxu0 %v8231_v4  ;;  %1639 = vmatpush.msra.mxu1 %v8234_v5  ;;  %v1582_v48 = vld [vmem:[#allocation22 + $0x18] sm:$0xff]  ;;  %s9522_s30 = sld [smem:[#allocation97_spill]]  ;;  %s9151_s7 = scalar_lea.vmem [#allocation47], %s5678_s6 }
 0x218   : > { %1685 = vmatpush.msra.mxu2 %v8231_v4  ;;  %1714 = vmatpush.msra.mxu3 %v8234_v5  ;;  %v5753_v10 = vld [vmem:[%s9511_s10 + $0x2f0] sm:$0xff]  ;;  %v5754_v12 = vld [vmem:[%s9511_s10 + $0x2f8] sm:$0xff]  ;;  %v5751_v14 = vld [vmem:[%s9511_s10 + $0x2e0] sm:$0xff]  ;;  %s9523_s13 = sld [smem:[#allocation98_spill]]  ;;  %s9263_s6 = scalar_lea.vmem [#allocation49], %s5679_s16 }
 0x219   : > { %1611 = vmatpush.msra.mxu0 %v8241_v6  ;;  %1640 = vmatpush.msra.mxu1 %v8244_v7  ;;  %v5785_v11 = vld [vmem:[%s9511_s10 + $0x3f0] sm:$0xff]  ;;  %v5786_v13 = vld [vmem:[%s9511_s10 + $0x3f8] sm:$0xff]  ;;  %v5783_v15 = vld [vmem:[%s9511_s10 + $0x3e0] sm:$0xff]  ;;  %s9526_s14 = sld [smem:[#allocation100_spill]]  ;;  %s6093_s16 = sshll.u32 %s7740_s23, 4 }
 0x21a   : > { %5707 = vmatmul.msk.f32.vlgmr.msra.gmra.mxu0 %vm1583_vm0, %v1579_v8  ;;  %5711 = vmatmul.msk.f32.vlgmr.msra.gmra.mxu1 %vm1583_vm0, %v1579_v8  ;;  %v5752_v16 = vld [vmem:[%s9511_s10 + $0x2e8] sm:$0xff]  ;;  %v5749_v18 = vld [vmem:[%s9511_s10 + $0x2d0] sm:$0xff]  ;;  %v5750_v21 = vld [vmem:[%s9511_s10 + $0x2d8] sm:$0xff]  ;;  %s5087_s12 = sshll.u32 %s9151_s7, 4  ;;  %s5088_s12 = int_to_ptr.vmem [resolvable:$true] %s5087_s12 }
 0x21b   : > { %1686 = vmatpush.msra.mxu2 %v8241_v6  ;;  %1715 = vmatpush.msra.mxu3 %v8244_v7  ;;  %v5784_v17 = vld [vmem:[%s9511_s10 + $0x3e8] sm:$0xff]  ;;  %v5781_v19 = vld [vmem:[%s9511_s10 + $0x3d0] sm:$0xff]  ;;  %v5782_v22 = vld [vmem:[%s9511_s10 + $0x3d8] sm:$0xff] }
 0x21c   : > { %5715 = vmatmul.msk.f32.vlgmr.msra.gmra.mxu2 %vm1583_vm0, %v1655_v9  ;;  %5719 = vmatmul.msk.f32.vlgmr.msra.gmra.mxu3 %vm1583_vm0, %v1655_v9  ;;  %v5747_v24 = vld [vmem:[%s9511_s10 + $0x2c0] sm:$0xff]  ;;  %v5748_v26 = vld [vmem:[%s9511_s10 + $0x2c8] sm:$0xff]  ;;  %v5745_v28 = vld [vmem:[%s9511_s10 + $0x2b0] sm:$0xff] }
 0x21d   : > { %1858 = vmatpush.msrb.mxu0 %v5753_v10  ;;  %1887 = vmatpush.msrb.mxu1 %v5785_v11  ;;  %v5779_v25 = vld [vmem:[%s9511_s10 + $0x3c0] sm:$0xff]  ;;  %v5780_v27 = vld [vmem:[%s9511_s10 + $0x3c8] sm:$0xff]  ;;  %v5777_v29 = vld [vmem:[%s9511_s10 + $0x3b0] sm:$0xff] }
 0x21e   : > { %1916 = vmatpush.msrb.mxu2 %v5754_v12  ;;  %1945 = vmatpush.msrb.mxu3 %v5786_v13  ;;  %v5746_v30 = vld [vmem:[%s9511_s10 + $0x2b8] sm:$0xff]  ;;  %v5743_v32 = vld [vmem:[%s9511_s10 + $0x2a0] sm:$0xff]  ;;  %v5744_v35 = vld [vmem:[%s9511_s10 + $0x2a8] sm:$0xff] }
 0x21f   : > { %1859 = vmatpush.msrb.mxu0 %v5751_v14  ;;  %1888 = vmatpush.msrb.mxu1 %v5783_v15  ;;  %v5778_v31 = vld [vmem:[%s9511_s10 + $0x3b8] sm:$0xff]  ;;  %v5775_v33 = vld [vmem:[%s9511_s10 + $0x3a0] sm:$0xff]  ;;  %v5776_v36 = vld [vmem:[%s9511_s10 + $0x3a8] sm:$0xff]  ;;  %s7254_s4 = scalar_lea.hbm %s9526_s14, 32 }
 0x220   : > { %1917 = vmatpush.msrb.mxu2 %v5752_v16  ;;  %1946 = vmatpush.msrb.mxu3 %v5784_v17  ;;  %v5741_v38 = vld [vmem:[%s9511_s10 + $0x290] sm:$0xff]  ;;  %v5742_v40 = vld [vmem:[%s9511_s10 + $0x298] sm:$0xff]  ;;  %v5739_v42 = vld [vmem:[%s9511_s10 + $0x280] sm:$0xff] }
 0x221   : > { %1860 = vmatpush.msrb.mxu0 %v5749_v18  ;;  %1889 = vmatpush.msrb.mxu1 %v5781_v19  ;;  %v5773_v39 = vld [vmem:[%s9511_s10 + $0x390] sm:$0xff]  ;;  %v5774_v41 = vld [vmem:[%s9511_s10 + $0x398] sm:$0xff]  ;;  %v5771_v43 = vld [vmem:[%s9511_s10 + $0x380] sm:$0xff] }
 0x222   : > { %5708 = vmatmul.msk.f32.gmra.mxu0 %vm1583_vm0, %v1580_v20  ;;  %5712 = vmatmul.msk.f32.gmra.mxu1 %vm1583_vm0, %v1580_v20  ;;  %v5740_v44 = vld [vmem:[%s9511_s10 + $0x288] sm:$0xff]  ;;  %v5737_v46 = vld [vmem:[%s9511_s10 + $0x270] sm:$0xff]  ;;  %v5738_v49 = vld [vmem:[%s9511_s10 + $0x278] sm:$0xff] }
 0x223   : > { %1918 = vmatpush.msrb.mxu2 %v5750_v21  ;;  %1947 = vmatpush.msrb.mxu3 %v5782_v22  ;;  %v5772_v45 = vld [vmem:[%s9511_s10 + $0x388] sm:$0xff]  ;;  %v5769_v47 = vld [vmem:[%s9511_s10 + $0x370] sm:$0xff]  ;;  %v5770_v50 = vld [vmem:[%s9511_s10 + $0x378] sm:$0xff] }
 0x224   : > { %5716 = vmatmul.msk.f32.gmra.mxu2 %vm1583_vm0, %v1656_v23  ;;  %5720 = vmatmul.msk.f32.gmra.mxu3 %vm1583_vm0, %v1656_v23  ;;  %v1658_v51 = vld [vmem:[#allocation22 + $0x38] sm:$0xff]  ;;  %v5735_v52 = vld [vmem:[%s9511_s10 + $0x260] sm:$0xff]  ;;  %v5736_v54 = vld [vmem:[%s9511_s10 + $0x268] sm:$0xff] }
 0x225   : > { %1861 = vmatpush.msrb.mxu0 %v5747_v24  ;;  %1890 = vmatpush.msrb.mxu1 %v5779_v25  ;;  %v5767_v53 = vld [vmem:[%s9511_s10 + $0x360] sm:$0xff]  ;;  %v5768_v55 = vld [vmem:[%s9511_s10 + $0x368] sm:$0xff]  ;;  %v5733_v56 = vld [vmem:[%s9511_s10 + $0x250] sm:$0xff] }
 0x226   : > { %1919 = vmatpush.msrb.mxu2 %v5748_v26  ;;  %1948 = vmatpush.msrb.mxu3 %v5780_v27  ;;  %v5765_v57 = vld [vmem:[%s9511_s10 + $0x350] sm:$0xff]  ;;  %v5734_v58 = vld [vmem:[%s9511_s10 + $0x258] sm:$0xff]  ;;  %v5731_v60 = vld [vmem:[%s9511_s10 + $0x240] sm:$0xff] }
 0x227   : > { %1862 = vmatpush.msrb.mxu0 %v5745_v28  ;;  %1891 = vmatpush.msrb.mxu1 %v5777_v29  ;;  %v5766_v59 = vld [vmem:[%s9511_s10 + $0x358] sm:$0xff]  ;;  %v5763_v61 = vld [vmem:[%s9511_s10 + $0x340] sm:$0xff]  ;;  %v5732_v62 = vld [vmem:[%s9511_s10 + $0x248] sm:$0xff] }
 0x228   : > { %1920 = vmatpush.msrb.mxu2 %v5746_v30  ;;  %1949 = vmatpush.msrb.mxu3 %v5778_v31  ;;  %v5764_v63 = vld [vmem:[%s9511_s10 + $0x348] sm:$0xff]  ;;  %v5729_v8 = vld [vmem:[%s9511_s10 + $0x230] sm:$0xff]  ;;  %v5730_v10 = vld [vmem:[%s9511_s10 + $0x238] sm:$0xff] }
 0x229   : > { %1863 = vmatpush.msrb.mxu0 %v5743_v32  ;;  %1892 = vmatpush.msrb.mxu1 %v5775_v33  ;;  %v5761_v9 = vld [vmem:[%s9511_s10 + $0x330] sm:$0xff]  ;;  %v5762_v11 = vld [vmem:[%s9511_s10 + $0x338] sm:$0xff]  ;;  %v5727_v12 = vld [vmem:[%s9511_s10 + $0x220] sm:$0xff] }
 0x22a   : > { %5709 = vmatmul.msk.f32.gmra.mxu0 %vm1583_vm0, %v1581_v34  ;;  %5713 = vmatmul.msk.f32.gmra.mxu1 %vm1583_vm0, %v1581_v34  ;;  %v5759_v13 = vld [vmem:[%s9511_s10 + $0x320] sm:$0xff]  ;;  %v5728_v14 = vld [vmem:[%s9511_s10 + $0x228] sm:$0xff]  ;;  %v5725_v16 = vld [vmem:[%s9511_s10 + $0x210] sm:$0xff] }
 0x22b   : > { %1921 = vmatpush.msrb.mxu2 %v5744_v35  ;;  %1950 = vmatpush.msrb.mxu3 %v5776_v36  ;;  %v5760_v15 = vld [vmem:[%s9511_s10 + $0x328] sm:$0xff]  ;;  %v5757_v17 = vld [vmem:[%s9511_s10 + $0x310] sm:$0xff]  ;;  %v5726_v18 = vld [vmem:[%s9511_s10 + $0x218] sm:$0xff] }
 0x22c   : > { %5717 = vmatmul.msk.f32.gmra.mxu2 %vm1583_vm0, %v1657_v37  ;;  %5721 = vmatmul.msk.f32.gmra.mxu3 %vm1583_vm0, %v1657_v37  ;;  %v5758_v19 = vld [vmem:[%s9511_s10 + $0x318] sm:$0xff]  ;;  %v5723_v20 = vld [vmem:[%s9511_s10 + $0x200] sm:$0xff]  ;;  %v5724_v22 = vld [vmem:[%s9511_s10 + $0x208] sm:$0xff] }
 0x22d   : > { %1864 = vmatpush.msrb.mxu0 %v5741_v38  ;;  %1893 = vmatpush.msrb.mxu1 %v5773_v39  ;;  %v5755_v21 = vld [vmem:[%s9511_s10 + $0x300] sm:$0xff]  ;;  %v5756_v23 = vld [vmem:[%s9511_s10 + $0x308] sm:$0xff]  ;;  %v1759_v24 = vld [vmem:[%s9511_s10 + $0xf0] sm:$0xff] }
 0x22e   : > { %1922 = vmatpush.msrb.mxu2 %v5742_v40  ;;  %1951 = vmatpush.msrb.mxu3 %v5774_v41  ;;  %v1791_v25 = vld [vmem:[%s9511_s10 + $0x1f0] sm:$0xff]  ;;  %v1760_v26 = vld [vmem:[%s9511_s10 + $0xf8] sm:$0xff]  ;;  %v1757_v28 = vld [vmem:[%s9511_s10 + $0xe0] sm:$0xff] }
 0x22f   : > { %1865 = vmatpush.msrb.mxu0 %v5739_v42  ;;  %1894 = vmatpush.msrb.mxu1 %v5771_v43  ;;  %v1792_v27 = vld [vmem:[%s9511_s10 + $0x1f8] sm:$0xff]  ;;  %v1789_v29 = vld [vmem:[%s9511_s10 + $0x1e0] sm:$0xff]  ;;  %v1758_v30 = vld [vmem:[%s9511_s10 + $0xe8] sm:$0xff] }
 0x230   : > { %1923 = vmatpush.msrb.mxu2 %v5740_v44  ;;  %1952 = vmatpush.msrb.mxu3 %v5772_v45  ;;  %v1790_v31 = vld [vmem:[%s9511_s10 + $0x1e8] sm:$0xff]  ;;  %v1755_v32 = vld [vmem:[%s9511_s10 + $0xd0] sm:$0xff]  ;;  %v1756_v34 = vld [vmem:[%s9511_s10 + $0xd8] sm:$0xff] }
 0x231   : > { %1866 = vmatpush.msrb.mxu0 %v5737_v46  ;;  %1895 = vmatpush.msrb.mxu1 %v5769_v47  ;;  %v1787_v33 = vld [vmem:[%s9511_s10 + $0x1d0] sm:$0xff]  ;;  %v1785_v35 = vld [vmem:[%s9511_s10 + $0x1c0] sm:$0xff]  ;;  %v1754_v36 = vld [vmem:[%s9511_s10 + $0xc8] sm:$0xff] }
 0x232   : > { %5710 = vmatmul.msk.f32.gmra.mxu0 %vm1583_vm0, %v1582_v48  ;;  %5714 = vmatmul.msk.f32.gmra.mxu1 %vm1583_vm0, %v1582_v48  ;;  %v1786_v37 = vld [vmem:[%s9511_s10 + $0x1c8] sm:$0xff]  ;;  %v1751_v38 = vld [vmem:[%s9511_s10 + $0xb0] sm:$0xff]  ;;  %v1752_v40 = vld [vmem:[%s9511_s10 + $0xb8] sm:$0xff] }
 0x233   : > { %1924 = vmatpush.msrb.mxu2 %v5738_v49  ;;  %1953 = vmatpush.msrb.mxu3 %v5770_v50  ;;  %v1783_v39 = vld [vmem:[%s9511_s10 + $0x1b0] sm:$0xff]  ;;  %v1784_v41 = vld [vmem:[%s9511_s10 + $0x1b8] sm:$0xff]  ;;  %v1749_v42 = vld [vmem:[%s9511_s10 + $0xa0] sm:$0xff] }
 0x234   : > { %5718 = vmatmul.msk.f32.gmra.mxu2 %vm1583_vm0, %v1658_v51  ;;  %5722 = vmatmul.msk.f32.gmra.mxu3 %vm1583_vm0, %v1658_v51  ;;  %v1781_v43 = vld [vmem:[%s9511_s10 + $0x1a0] sm:$0xff]  ;;  %v1750_v44 = vld [vmem:[%s9511_s10 + $0xa8] sm:$0xff]  ;;  %v1747_v46 = vld [vmem:[%s9511_s10 + $0x90] sm:$0xff] }
 0x235   : > { %1867 = vmatpush.msrb.mxu0 %v5735_v52  ;;  %1896 = vmatpush.msrb.mxu1 %v5767_v53  ;;  %v1782_v45 = vld [vmem:[%s9511_s10 + $0x1a8] sm:$0xff]  ;;  %v1779_v47 = vld [vmem:[%s9511_s10 + $0x190] sm:$0xff]  ;;  %v1748_v48 = vld [vmem:[%s9511_s10 + $0x98] sm:$0xff] }
 0x236   : > { %1925 = vmatpush.msrb.mxu2 %v5736_v54  ;;  %1954 = vmatpush.msrb.mxu3 %v5768_v55  ;;  %v1777_v49 = vld [vmem:[%s9511_s10 + $0x180] sm:$0xff]  ;;  %v1746_v50 = vld [vmem:[%s9511_s10 + $0x88] sm:$0xff]  ;;  %v1743_v52 = vld [vmem:[%s9511_s10 + $0x70] sm:$0xff] }
 0x237   : > { %1868 = vmatpush.msrb.mxu0 %v5733_v56  ;;  %1897 = vmatpush.msrb.mxu1 %v5765_v57  ;;  %v1778_v51 = vld [vmem:[%s9511_s10 + $0x188] sm:$0xff]  ;;  %v1775_v53 = vld [vmem:[%s9511_s10 + $0x170] sm:$0xff]  ;;  %v1744_v54 = vld [vmem:[%s9511_s10 + $0x78] sm:$0xff] }
 0x238   : > { %1926 = vmatpush.msrb.mxu2 %v5734_v58  ;;  %1955 = vmatpush.msrb.mxu3 %v5766_v59  ;;  %v1776_v55 = vld [vmem:[%s9511_s10 + $0x178] sm:$0xff]  ;;  %v1741_v56 = vld [vmem:[%s9511_s10 + $0x60] sm:$0xff]  ;;  %v1742_v58 = vld [vmem:[%s9511_s10 + $0x68] sm:$0xff] }
 0x239   : > { %1869 = vmatpush.msrb.mxu0 %v5731_v60  ;;  %1898 = vmatpush.msrb.mxu1 %v5763_v61  ;;  %v1773_v57 = vld [vmem:[%s9511_s10 + $0x160] sm:$0xff]  ;;  %v1774_v59 = vld [vmem:[%s9511_s10 + $0x168] sm:$0xff]  ;;  %v1739_v60 = vld [vmem:[%s9511_s10 + $0x50] sm:$0xff] }
 0x23a   : > { %1927 = vmatpush.msrb.mxu2 %v5732_v62  ;;  %1956 = vmatpush.msrb.mxu3 %v5764_v63  ;;  %v1771_v61 = vld [vmem:[%s9511_s10 + $0x150] sm:$0xff]  ;;  %v1740_v62 = vld [vmem:[%s9511_s10 + $0x58] sm:$0xff]  ;;  %v1769_v63 = vld [vmem:[%s9511_s10 + $0x140] sm:$0xff] }
 0x23b   : > { %1870 = vmatpush.msrb.mxu0 %v5729_v8  ;;  %1899 = vmatpush.msrb.mxu1 %v5761_v9  ;;  %v1738_v8 = vld [vmem:[%s9511_s10 + $0x48] sm:$0xff] }
 0x23c   : > { %1928 = vmatpush.msrb.mxu2 %v5730_v10  ;;  %1957 = vmatpush.msrb.mxu3 %v5762_v11  ;;  %v1770_v9 = vld [vmem:[%s9511_s10 + $0x148] sm:$0xff]  ;;  %v1735_v10 = vld [vmem:[%s9511_s10 + $0x30] sm:$0xff] }
 0x23d   : > { %1871 = vmatpush.msrb.mxu0 %v5727_v12  ;;  %1900 = vmatpush.msrb.mxu1 %v5759_v13  ;;  %v1767_v11 = vld [vmem:[%s9511_s10 + $0x130] sm:$0xff]  ;;  %v1736_v12 = vld [vmem:[%s9511_s10 + $0x38] sm:$0xff] }
 0x23e   : > { %1929 = vmatpush.msrb.mxu2 %v5728_v14  ;;  %1958 = vmatpush.msrb.mxu3 %v5760_v15  ;;  %v1768_v13 = vld [vmem:[%s9511_s10 + $0x138] sm:$0xff]  ;;  %v1733_v14 = vld [vmem:[%s9511_s10 + $0x20] sm:$0xff] }
 0x23f   : > { %1872 = vmatpush.msrb.mxu0 %v5725_v16  ;;  %1901 = vmatpush.msrb.mxu1 %v5757_v17  ;;  %v1765_v15 = vld [vmem:[%s9511_s10 + $0x120] sm:$0xff]  ;;  %v1734_v16 = vld [vmem:[%s9511_s10 + $0x28] sm:$0xff] }
 0x240   : > { %1930 = vmatpush.msrb.mxu2 %v5726_v18  ;;  %1959 = vmatpush.msrb.mxu3 %v5758_v19  ;;  %v1766_v17 = vld [vmem:[%s9511_s10 + $0x128] sm:$0xff]  ;;  %v1731_v18 = vld [vmem:[%s9511_s10 + $0x10] sm:$0xff] }
 0x241   : > { %1873 = vmatpush.msrb.mxu0 %v5723_v20  ;;  %1902 = vmatpush.msrb.mxu1 %v5755_v21  ;;  %v1763_v19 = vld [vmem:[%s9511_s10 + $0x110] sm:$0xff]  ;;  %v1732_v20 = vld [vmem:[%s9511_s10 + $0x18] sm:$0xff]  ;;  %v1761_v21 = vld [vmem:[%s9511_s10 + $0x100] sm:$0xff] }
 0x242   : > { %1931 = vmatpush.msrb.mxu2 %v5724_v22  ;;  %1960 = vmatpush.msrb.mxu3 %v5756_v23  ;;  %v1730_v22 = vld [vmem:[%s9511_s10 + $0x8] sm:$0xff] }
 0x243   : > { %1874 = vmatmul.f32.vlgmr.msrb.gmra.mxu0 %v8241_v6  ;;  %1903 = vmatmul.f32.vlgmr.msrb.gmra.mxu1 %v8244_v7  ;;  %v1762_v23 = vld [vmem:[%s9511_s10 + $0x108] sm:$0xff] }
 0x244   : > { %1932 = vmatmul.f32.vlgmr.msrb.gmra.mxu2 %v8241_v6  ;;  %1961 = vmatmul.f32.vlgmr.msrb.gmra.mxu3 %v8244_v7  ;;  %v1788_v6 = vld [vmem:[%s9511_s10 + $0x1d8] sm:$0xff]  ;;  %v1753_v7 = vld [vmem:[%s9511_s10 + $0xc0] sm:$0xff] }
 0x245   : > { %1974 = vmatpush.msra.mxu0 %v1759_v24  ;;  %2003 = vmatpush.msra.mxu1 %v1791_v25  ;;  %v5817_v24 = vld [vmem:[%s9511_s10 + $0x4f0] sm:$0xff] }
 0x246   : > { %2032 = vmatpush.msra.mxu2 %v1760_v26  ;;  %2061 = vmatpush.msra.mxu3 %v1792_v27  ;;  %v5849_v25 = vld [vmem:[%s9511_s10 + $0x5f0] sm:$0xff]  ;;  %v5818_v26 = vld [vmem:[%s9511_s10 + $0x4f8] sm:$0xff] }
 0x247   : > { %1975 = vmatpush.msra.mxu0 %v1757_v28  ;;  %2004 = vmatpush.msra.mxu1 %v1789_v29  ;;  %v5850_v27 = vld [vmem:[%s9511_s10 + $0x5f8] sm:$0xff]  ;;  %v5815_v28 = vld [vmem:[%s9511_s10 + $0x4e0] sm:$0xff] }
 0x248   : > { %2033 = vmatpush.msra.mxu2 %v1758_v30  ;;  %2062 = vmatpush.msra.mxu3 %v1790_v31  ;;  %v5847_v29 = vld [vmem:[%s9511_s10 + $0x5e0] sm:$0xff]  ;;  %v5816_v30 = vld [vmem:[%s9511_s10 + $0x4e8] sm:$0xff] }
 0x249   : > { %1976 = vmatpush.msra.mxu0 %v1755_v32  ;;  %2005 = vmatpush.msra.mxu1 %v1787_v33  ;;  %v5848_v31 = vld [vmem:[%s9511_s10 + $0x5e8] sm:$0xff]  ;;  %v5813_v32 = vld [vmem:[%s9511_s10 + $0x4d0] sm:$0xff] }
 0x24a   : > { %2034 = vmatpush.msra.mxu2 %v1756_v34  ;;  %2063 = vmatpush.msra.mxu3 %v1788_v6  ;;  %v5845_v33 = vld [vmem:[%s9511_s10 + $0x5d0] sm:$0xff]  ;;  %v5814_v34 = vld [vmem:[%s9511_s10 + $0x4d8] sm:$0xff] }
 0x24b   : > { %1977 = vmatpush.msra.mxu0 %v1753_v7  ;;  %2006 = vmatpush.msra.mxu1 %v1785_v35  ;;  %v5846_v6 = vld [vmem:[%s9511_s10 + $0x5d8] sm:$0xff]  ;;  %v5811_v7 = vld [vmem:[%s9511_s10 + $0x4c0] sm:$0xff] }
 0x24c   : > { %2035 = vmatpush.msra.mxu2 %v1754_v36  ;;  %2064 = vmatpush.msra.mxu3 %v1786_v37  ;;  %v5843_v35 = vld [vmem:[%s9511_s10 + $0x5c0] sm:$0xff]  ;;  %v5812_v36 = vld [vmem:[%s9511_s10 + $0x4c8] sm:$0xff] }
 0x24d   : > { %1877 = vmatmul.f32.gmra.mxu0 %v8231_v4  ;;  %1906 = vmatmul.f32.gmra.mxu1 %v8234_v5  ;;  %v5844_v37 = vld [vmem:[%s9511_s10 + $0x5c8] sm:$0xff] }
 0x24e   : > { %1935 = vmatmul.f32.gmra.mxu2 %v8231_v4  ;;  %1964 = vmatmul.f32.gmra.mxu3 %v8234_v5  ;;  %v1780_v4 = vld [vmem:[%s9511_s10 + $0x198] sm:$0xff]  ;;  %v1745_v5 = vld [vmem:[%s9511_s10 + $0x80] sm:$0xff] }
 0x24f   : > { %1978 = vmatpush.msra.mxu0 %v1751_v38  ;;  %2007 = vmatpush.msra.mxu1 %v1783_v39  ;;  %v5809_v38 = vld [vmem:[%s9511_s10 + $0x4b0] sm:$0xff] }
 0x250   : > { %2036 = vmatpush.msra.mxu2 %v1752_v40  ;;  %2065 = vmatpush.msra.mxu3 %v1784_v41  ;;  %v5841_v39 = vld [vmem:[%s9511_s10 + $0x5b0] sm:$0xff]  ;;  %v5810_v40 = vld [vmem:[%s9511_s10 + $0x4b8] sm:$0xff] }
 0x251   : > { %1979 = vmatpush.msra.mxu0 %v1749_v42  ;;  %2008 = vmatpush.msra.mxu1 %v1781_v43  ;;  %v5842_v41 = vld [vmem:[%s9511_s10 + $0x5b8] sm:$0xff]  ;;  %v5807_v42 = vld [vmem:[%s9511_s10 + $0x4a0] sm:$0xff] }
 0x252   : > { %2037 = vmatpush.msra.mxu2 %v1750_v44  ;;  %2066 = vmatpush.msra.mxu3 %v1782_v45  ;;  %v5839_v43 = vld [vmem:[%s9511_s10 + $0x5a0] sm:$0xff]  ;;  %v5808_v44 = vld [vmem:[%s9511_s10 + $0x4a8] sm:$0xff] }
 0x253   : > { %1980 = vmatpush.msra.mxu0 %v1747_v46  ;;  %2009 = vmatpush.msra.mxu1 %v1779_v47  ;;  %v5840_v45 = vld [vmem:[%s9511_s10 + $0x5a8] sm:$0xff]  ;;  %v5805_v46 = vld [vmem:[%s9511_s10 + $0x490] sm:$0xff] }
 0x254   : > { %2038 = vmatpush.msra.mxu2 %v1748_v48  ;;  %2067 = vmatpush.msra.mxu3 %v1780_v4  ;;  %v5837_v47 = vld [vmem:[%s9511_s10 + $0x590] sm:$0xff]  ;;  %v5806_v48 = vld [vmem:[%s9511_s10 + $0x498] sm:$0xff] }
 0x255   : > { %1981 = vmatpush.msra.mxu0 %v1745_v5  ;;  %2010 = vmatpush.msra.mxu1 %v1777_v49  ;;  %v5838_v4 = vld [vmem:[%s9511_s10 + $0x598] sm:$0xff]  ;;  %v5803_v5 = vld [vmem:[%s9511_s10 + $0x480] sm:$0xff] }
 0x256   : > { %2039 = vmatpush.msra.mxu2 %v1746_v50  ;;  %2068 = vmatpush.msra.mxu3 %v1778_v51  ;;  %v5835_v49 = vld [vmem:[%s9511_s10 + $0x580] sm:$0xff]  ;;  %v5804_v50 = vld [vmem:[%s9511_s10 + $0x488] sm:$0xff] }
 0x257   : > { %1880 = vmatmul.f32.gmra.mxu0 %v8223_v2  ;;  %1909 = vmatmul.f32.gmra.mxu1 %v8228_v3  ;;  %v5836_v51 = vld [vmem:[%s9511_s10 + $0x588] sm:$0xff] }
 0x258   : > { %1938 = vmatmul.f32.gmra.mxu2 %v8223_v2  ;;  %1967 = vmatmul.f32.gmra.mxu3 %v8228_v3  ;;  %v1772_v2 = vld [vmem:[%s9511_s10 + $0x158] sm:$0xff]  ;;  %v1737_v3 = vld [vmem:[%s9511_s10 + $0x40] sm:$0xff] }
 0x259   : > { %1982 = vmatpush.msra.mxu0 %v1743_v52  ;;  %2011 = vmatpush.msra.mxu1 %v1775_v53  ;;  %v5801_v52 = vld [vmem:[%s9511_s10 + $0x470] sm:$0xff] }
 0x25a   : > { %2040 = vmatpush.msra.mxu2 %v1744_v54  ;;  %2069 = vmatpush.msra.mxu3 %v1776_v55  ;;  %v5833_v53 = vld [vmem:[%s9511_s10 + $0x570] sm:$0xff]  ;;  %v5802_v54 = vld [vmem:[%s9511_s10 + $0x478] sm:$0xff] }
 0x25b   : > { %1983 = vmatpush.msra.mxu0 %v1741_v56  ;;  %2012 = vmatpush.msra.mxu1 %v1773_v57  ;;  %v5834_v55 = vld [vmem:[%s9511_s10 + $0x578] sm:$0xff]  ;;  %v5799_v56 = vld [vmem:[%s9511_s10 + $0x460] sm:$0xff] }
 0x25c   : > { %2041 = vmatpush.msra.mxu2 %v1742_v58  ;;  %2070 = vmatpush.msra.mxu3 %v1774_v59  ;;  %v5831_v57 = vld [vmem:[%s9511_s10 + $0x560] sm:$0xff]  ;;  %v5800_v58 = vld [vmem:[%s9511_s10 + $0x468] sm:$0xff] }
 0x25d   : > { %1984 = vmatpush.msra.mxu0 %v1739_v60  ;;  %2013 = vmatpush.msra.mxu1 %v1771_v61  ;;  %v5832_v59 = vld [vmem:[%s9511_s10 + $0x568] sm:$0xff]  ;;  %v5797_v60 = vld [vmem:[%s9511_s10 + $0x450] sm:$0xff] }
 0x25e   : > { %2042 = vmatpush.msra.mxu2 %v1740_v62  ;;  %2071 = vmatpush.msra.mxu3 %v1772_v2  ;;  %v5829_v61 = vld [vmem:[%s9511_s10 + $0x550] sm:$0xff]  ;;  %v5798_v62 = vld [vmem:[%s9511_s10 + $0x458] sm:$0xff] }
 0x25f   : > { %1985 = vmatpush.msra.mxu0 %v1737_v3  ;;  %2014 = vmatpush.msra.mxu1 %v1769_v63  ;;  %v5830_v2 = vld [vmem:[%s9511_s10 + $0x558] sm:$0xff]  ;;  %v5795_v3 = vld [vmem:[%s9511_s10 + $0x440] sm:$0xff] }
 0x260   : > { %2043 = vmatpush.msra.mxu2 %v1738_v8  ;;  %2072 = vmatpush.msra.mxu3 %v1770_v9  ;;  %v5827_v63 = vld [vmem:[%s9511_s10 + $0x540] sm:$0xff]  ;;  %v5796_v8 = vld [vmem:[%s9511_s10 + $0x448] sm:$0xff] }
 0x261   : > { %1883 = vmatmul.f32.gmra.mxu0 %v8217_v0  ;;  %1912 = vmatmul.f32.gmra.mxu1 %v8220_v1  ;;  %v5828_v9 = vld [vmem:[%s9511_s10 + $0x548] sm:$0xff] }
 0x262   : > { %1941 = vmatmul.f32.gmra.mxu2 %v8217_v0  ;;  %1970 = vmatmul.f32.gmra.mxu3 %v8220_v1  ;;  %v1764_v0 = vld [vmem:[%s9511_s10 + $0x118] sm:$0xff]  ;;  %v1729_v1 = vld [vmem:[%s9511_s10] sm:$0xff] }
 0x263   : > { %1986 = vmatpush.msra.mxu0 %v1735_v10  ;;  %2015 = vmatpush.msra.mxu1 %v1767_v11  ;;  %v5793_v10 = vld [vmem:[%s9511_s10 + $0x430] sm:$0xff] }
 0x264   : > { %2044 = vmatpush.msra.mxu2 %v1736_v12  ;;  %2073 = vmatpush.msra.mxu3 %v1768_v13  ;;  %v5825_v11 = vld [vmem:[%s9511_s10 + $0x530] sm:$0xff]  ;;  %v5794_v12 = vld [vmem:[%s9511_s10 + $0x438] sm:$0xff] }
 0x265   : > { %1987 = vmatpush.msra.mxu0 %v1733_v14  ;;  %2016 = vmatpush.msra.mxu1 %v1765_v15  ;;  %v5826_v13 = vld [vmem:[%s9511_s10 + $0x538] sm:$0xff]  ;;  %v5791_v14 = vld [vmem:[%s9511_s10 + $0x420] sm:$0xff] }
 0x266   : > { %2045 = vmatpush.msra.mxu2 %v1734_v16  ;;  %2074 = vmatpush.msra.mxu3 %v1766_v17  ;;  %v5823_v15 = vld [vmem:[%s9511_s10 + $0x520] sm:$0xff]  ;;  %v5792_v16 = vld [vmem:[%s9511_s10 + $0x428] sm:$0xff] }
 0x267   : > { %1988 = vmatpush.msra.mxu0 %v1731_v18  ;;  %2017 = vmatpush.msra.mxu1 %v1763_v19  ;;  %v5824_v17 = vld [vmem:[%s9511_s10 + $0x528] sm:$0xff]  ;;  %v5789_v18 = vld [vmem:[%s9511_s10 + $0x410] sm:$0xff] }
 0x268   : > { %2046 = vmatpush.msra.mxu2 %v1732_v20  ;;  %2075 = vmatpush.msra.mxu3 %v1764_v0  ;;  %v5821_v19 = vld [vmem:[%s9511_s10 + $0x510] sm:$0xff]  ;;  %v5790_v20 = vld [vmem:[%s9511_s10 + $0x418] sm:$0xff] }
 0x269   : > { %1989 = vmatpush.msra.mxu0 %v1729_v1  ;;  %2018 = vmatpush.msra.mxu1 %v1761_v21  ;;  %v5822_v0 = vld [vmem:[%s9511_s10 + $0x518] sm:$0xff] }
 0x26a   : > { %2047 = vmatpush.msra.mxu2 %v1730_v22  ;;  %2076 = vmatpush.msra.mxu3 %v1762_v23  ;;  %v5787_v22 = vld [vmem:[%s9511_s10 + $0x400] sm:$0xff] }
 0x26b   : > { %2155 = vmatpush.msrb.mxu0 %v5817_v24  ;;  %2184 = vmatpush.msrb.mxu1 %v5849_v25  ;;  %v5819_v23 = vld [vmem:[%s9511_s10 + $0x500] sm:$0xff]  ;;  %v5788_v24 = vld [vmem:[%s9511_s10 + $0x408] sm:$0xff] }
 0x26c   : > { %2213 = vmatpush.msrb.mxu2 %v5818_v26  ;;  %2242 = vmatpush.msrb.mxu3 %v5850_v27  ;;  %v5820_v25 = vld [vmem:[%s9511_s10 + $0x508] sm:$0xff]  ;;  %v2398_v27 = vld [vmem:[#allocation16 + $0xf0] sm:$0xff] }
 0x26d   : > { %2156 = vmatpush.msrb.mxu0 %v5815_v28  ;;  %2185 = vmatpush.msrb.mxu1 %v5847_v29  ;;  %v2399_v26 = vld [vmem:[#allocation16 + $0xf8] sm:$0xff] }
 0x26e   : > { %2214 = vmatpush.msrb.mxu2 %v5816_v30  ;;  %2243 = vmatpush.msrb.mxu3 %v5848_v31  ;;  %v2397_v30 = vld [vmem:[#allocation16 + $0xe8] sm:$0xff]  ;;  %v2396_v31 = vld [vmem:[#allocation16 + $0xe0] sm:$0xff] }
 0x26f   : > { %2157 = vmatpush.msrb.mxu0 %v5813_v32  ;;  %2186 = vmatpush.msrb.mxu1 %v5845_v33  ;;  %v2395_v32 = vld [vmem:[#allocation16 + $0xd8] sm:$0xff] }
 0x270   : > { %2215 = vmatpush.msrb.mxu2 %v5814_v34  ;;  %2244 = vmatpush.msrb.mxu3 %v5846_v6  ;;  %v2394_v6 = vld [vmem:[#allocation16 + $0xd0] sm:$0xff] }
 0x271   : > { %2158 = vmatpush.msrb.mxu0 %v5811_v7  ;;  %2187 = vmatpush.msrb.mxu1 %v5843_v35  ;;  %v2393_v7 = vld [vmem:[#allocation16 + $0xc8] sm:$0xff]  ;;  %v2392_v35 = vld [vmem:[#allocation16 + $0xc0] sm:$0xff] }
 0x272   : > { %2216 = vmatpush.msrb.mxu2 %v5812_v36  ;;  %2245 = vmatpush.msrb.mxu3 %v5844_v37 }
 0x273   : > { %2159 = vmatpush.msrb.mxu0 %v5809_v38  ;;  %2188 = vmatpush.msrb.mxu1 %v5841_v39 }
 0x274   : > { %2217 = vmatpush.msrb.mxu2 %v5810_v40  ;;  %2246 = vmatpush.msrb.mxu3 %v5842_v41  ;;  %v2391_v40 = vld [vmem:[#allocation16 + $0xb8] sm:$0xff]  ;;  %v2390_v41 = vld [vmem:[#allocation16 + $0xb0] sm:$0xff] }
 0x275   : > { %2160 = vmatpush.msrb.mxu0 %v5807_v42  ;;  %2189 = vmatpush.msrb.mxu1 %v5839_v43  ;;  %v2302_v42 = vld [vmem:[%s8150_s1 + $0x8] sm:$0xff]  ;;  %v2301_v43 = vld [vmem:[%s8150_s1] sm:$0xff]  ;;  %s1563_s1 = scalar_lea.vmem [#allocation50], %s5680_s11 }
 0x276   : > { %2218 = vmatpush.msrb.mxu2 %v5808_v44  ;;  %2247 = vmatpush.msrb.mxu3 %v5840_v45  ;;  %v2389_v44 = vld [vmem:[#allocation16 + $0xa8] sm:$0xff]  ;;  %v2388_v45 = vld [vmem:[#allocation16 + $0xa0] sm:$0xff] }
 0x277   : > { %2161 = vmatpush.msrb.mxu0 %v5805_v46  ;;  %2190 = vmatpush.msrb.mxu1 %v5837_v47 }
 0x278   : > { %2219 = vmatpush.msrb.mxu2 %v5806_v48  ;;  %2248 = vmatpush.msrb.mxu3 %v5838_v4  ;;  %v2387_v48 = vld [vmem:[#allocation16 + $0x98] sm:$0xff]  ;;  %v2386_v4 = vld [vmem:[#allocation16 + $0x90] sm:$0xff] }
 0x279   : > { %2162 = vmatpush.msrb.mxu0 %v5803_v5  ;;  %2191 = vmatpush.msrb.mxu1 %v5835_v49  ;;  %v2385_v5 = vld [vmem:[#allocation16 + $0x88] sm:$0xff]  ;;  %v2384_v49 = vld [vmem:[#allocation16 + $0x80] sm:$0xff] }
 0x27a   : > { %2220 = vmatpush.msrb.mxu2 %v5804_v50  ;;  %2249 = vmatpush.msrb.mxu3 %v5836_v51  ;;  %v8483_v50 = vld [vmem:[%s8160_s17] sm:$0xff]  ;;  %s5086_s17 = scalar_lea.hbm %s9526_s14, %s6093_s16 }
 0x27b   : > { %2163 = vmatpush.msrb.mxu0 %v5801_v52  ;;  %2192 = vmatpush.msrb.mxu1 %v5833_v53 }
 0x27c   : > { %2221 = vmatpush.msrb.mxu2 %v5802_v54  ;;  %2250 = vmatpush.msrb.mxu3 %v5834_v55  ;;  %v2303_v55 = vld [vmem:[#allocation24] sm:$0xff] }
 0x27d   : > { %2164 = vmatpush.msrb.mxu0 %v5799_v56  ;;  %2193 = vmatpush.msrb.mxu1 %v5831_v57  ;;  %v2336_v56 = vld [vmem:[#allocation24 + $0x10] sm:$0xff]  ;;  %v2304_v57 = vld [vmem:[#allocation24 + $0x8] sm:$0xff] }
 0x27e   : > { %2222 = vmatpush.msrb.mxu2 %v5800_v58  ;;  %2251 = vmatpush.msrb.mxu3 %v5832_v59  ;;  %v2337_v58 = vld [vmem:[#allocation24 + $0x18] sm:$0xff]  ;;  %v2497_v59 = vld [vmem:[#allocation25] sm:$0xff] }
 0x27f   : > { %2165 = vmatpush.msrb.mxu0 %v5797_v60  ;;  %2194 = vmatpush.msrb.mxu1 %v5829_v61  ;;  %v2523_v60 = vld [vmem:[#allocation25 + $0x8] sm:$0xff] }
 0x280   : > { %2223 = vmatpush.msrb.mxu2 %v5798_v62  ;;  %2252 = vmatpush.msrb.mxu3 %v5830_v2 }
 0x281   : > { %2166 = vmatpush.msrb.mxu0 %v5795_v3  ;;  %2195 = vmatpush.msrb.mxu1 %v5827_v63 }
 0x282   : > { %2224 = vmatpush.msrb.mxu2 %v5796_v8  ;;  %2253 = vmatpush.msrb.mxu3 %v5828_v9 }
 0x283   : > { %2167 = vmatpush.msrb.mxu0 %v5793_v10  ;;  %2196 = vmatpush.msrb.mxu1 %v5825_v11 }
 0x284   : > { %2225 = vmatpush.msrb.mxu2 %v5794_v12  ;;  %2254 = vmatpush.msrb.mxu3 %v5826_v13 }
 0x285   : > { %2168 = vmatpush.msrb.mxu0 %v5791_v14  ;;  %2197 = vmatpush.msrb.mxu1 %v5823_v15 }
 0x286   : > { %2226 = vmatpush.msrb.mxu2 %v5792_v16  ;;  %2255 = vmatpush.msrb.mxu3 %v5824_v17  ;;  %v2382_v17 = vld [vmem:[#allocation16 + $0x78] sm:$0xff] }
 0x287   : > { %2169 = vmatpush.msrb.mxu0 %v5789_v18  ;;  %2198 = vmatpush.msrb.mxu1 %v5821_v19  ;;  %v2381_v18 = vld [vmem:[#allocation16 + $0x70] sm:$0xff]  ;;  %v2380_v19 = vld [vmem:[#allocation16 + $0x68] sm:$0xff] }
 0x288   : > { %2227 = vmatpush.msrb.mxu2 %v5790_v20  ;;  %2256 = vmatpush.msrb.mxu3 %v5822_v0 }
 0x289   : > { %2170 = vmatpush.msrb.mxu0 %v5787_v22  ;;  %2199 = vmatpush.msrb.mxu1 %v5819_v23  ;;  %v2378_v22 = vld [vmem:[#allocation16 + $0x58] sm:$0xff] }
 0x28a   : > { %2228 = vmatpush.msrb.mxu2 %v5788_v24  ;;  %2257 = vmatpush.msrb.mxu3 %v5820_v25  ;;  %v2462_v23 = vld [vmem:[#allocation16 + $0x178] sm:$0xff]  ;;  %v2377_v24 = vld [vmem:[#allocation16 + $0x50] sm:$0xff] }
 0x28b   : > { %v2461_v25 = vld [vmem:[#allocation16 + $0x170] sm:$0xff] }
 0x297   : > { %v1613_v1 = vpop.f32.mrf.mxu0  ;;  %v1642_v21 = vpop.f32.mrf.mxu1 }
 0x298   : > { %1990 = vmatmul.f32.vlgmr.msra.gmra.mxu0 %v1613_v1  ;;  %2019 = vmatmul.f32.vlgmr.msra.gmra.mxu1 %v1642_v21 }
 0x299   : > { %2048 = vmatmul.f32.vlgmr.msra.gmra.mxu2 %v1613_v1  ;;  %2077 = vmatmul.f32.vlgmr.msra.gmra.mxu3 %v1642_v21  ;;  %v2379_v21 = vld [vmem:[#allocation16 + $0x60] sm:$0xff] }
 0x29a   : > { %2400 = vmatpush.msra.mxu2 %v2399_v26  ;;  %2326 = vmatpush.msra.mxu0 %v2302_v42  ;;  %v2376_v26 = vld [vmem:[#allocation16 + $0x48] sm:$0xff] }
 0x29b   : > { %2358 = vmatpush.msra.mxu1 %v2302_v42  ;;  %2423 = vmatpush.msra.mxu3 %v2382_v17  ;;  %v2447_v17 = vld [vmem:[#allocation16 + $0x100] sm:$0xff] }
 0x29c   : > { %2401 = vmatpush.msra.mxu2 %v2398_v27  ;;  %2327 = vmatpush.msra.mxu0 %v2301_v43  ;;  %v2460_v27 = vld [vmem:[#allocation16 + $0x168] sm:$0xff] }
 0x29d   : > { %2359 = vmatpush.msra.mxu1 %v2301_v43  ;;  %2424 = vmatpush.msra.mxu3 %v2381_v18  ;;  %v2560_v18 = vld [vmem:[#allocation18 + $0x60] sm:$0xff] }
 0x29e   : > { %2402 = vmatpush.msra.mxu2 %v2397_v30 }
 0x29f   : > { %v1616_v28 = vpop.f32.mrf.mxu0  ;;  %v1645_v29 = vpop.f32.mrf.mxu1  ;;  %2425 = vmatpush.msra.mxu3 %v2380_v19  ;;  %v2554_v19 = vld [vmem:[#allocation18 + $0x38] sm:$0xff] }
 0x2a0   : > { %1993 = vmatmul.f32.gmra.mxu0 %v1616_v28  ;;  %2022 = vmatmul.f32.gmra.mxu1 %v1645_v29  ;;  %v1688_v36 = vpop.f32.mrf.mxu2  ;;  %v1717_v37 = vpop.f32.mrf.mxu3 }
 0x2a1   : > { %2051 = vmatmul.f32.gmra.mxu2 %v1616_v28  ;;  %2080 = vmatmul.f32.gmra.mxu3 %v1645_v29 }
 0x2a2   : > { %2403 = vmatpush.msra.mxu2 %v2396_v31  ;;  %2426 = vmatpush.msra.mxu3 %v2379_v21  ;;  %v2375_v31 = vld [vmem:[#allocation16 + $0x40] sm:$0xff]  ;;  %v2619_v21 = vld [vmem:[#allocation18 + $0xb8] sm:$0xff] }
 0x2a4   : > { %2404 = vmatpush.msra.mxu2 %v2395_v32  ;;  %2427 = vmatpush.msra.mxu3 %v2378_v22  ;;  %v2459_v32 = vld [vmem:[#allocation16 + $0x160] sm:$0xff]  ;;  %v2559_v22 = vld [vmem:[#allocation18 + $0x58] sm:$0xff] }
 0x2a6   : > { %2405 = vmatpush.msra.mxu2 %v2394_v6  ;;  %2428 = vmatpush.msra.mxu3 %v2377_v24  ;;  %v2373_v6 = vld [vmem:[#allocation16 + $0x30] sm:$0xff] }
 0x2a7   : > { %v1619_v33 = vpop.f32.mrf.mxu0  ;;  %v1648_v34 = vpop.f32.mrf.mxu1  ;;  %v2618_v24 = vld [vmem:[#allocation18 + $0xb0] sm:$0xff] }
 0x2a8   : > { %1996 = vmatmul.f32.gmra.mxu0 %v1619_v33  ;;  %2025 = vmatmul.f32.gmra.mxu1 %v1648_v34  ;;  %v1691_v46 = vpop.f32.mrf.mxu2  ;;  %v1720_v47 = vpop.f32.mrf.mxu3 }
 0x2a9   : > { %2054 = vmatmul.f32.gmra.mxu2 %v1619_v33  ;;  %2083 = vmatmul.f32.gmra.mxu3 %v1648_v34  ;;  %v2374_v33 = vld [vmem:[#allocation16 + $0x38] sm:$0xff] }
 0x2aa   : > { %2406 = vmatpush.msra.mxu2 %v2393_v7  ;;  %2429 = vmatpush.msra.mxu3 %v2376_v26  ;;  %v2458_v34 = vld [vmem:[#allocation16 + $0x158] sm:$0xff]  ;;  %v2457_v7 = vld [vmem:[#allocation16 + $0x150] sm:$0xff]  ;;  %v2552_v26 = vld [vmem:[#allocation18 + $0x28] sm:$0xff] }
 0x2ac   : > { %2407 = vmatpush.msra.mxu2 %v2392_v35  ;;  %2430 = vmatpush.msra.mxu3 %v2375_v31  ;;  %v2372_v35 = vld [vmem:[#allocation16 + $0x28] sm:$0xff] }
 0x2ad   : > { %v2557_v31 = vld [vmem:[#allocation18 + $0x48] sm:$0xff] }
 0x2ae   : > { %2408 = vmatpush.msra.mxu2 %v2391_v40  ;;  %2431 = vmatpush.msra.mxu3 %v2374_v33  ;;  %v2371_v40 = vld [vmem:[#allocation16 + $0x20] sm:$0xff] }
 0x2af   : > { %v1622_v38 = vpop.f32.mrf.mxu0  ;;  %v1651_v39 = vpop.f32.mrf.mxu1  ;;  %v2616_v33 = vld [vmem:[#allocation18 + $0xa0] sm:$0xff] }
 0x2b0   : > { %1999 = vmatmul.f32.gmra.mxu0 %v1622_v38  ;;  %2028 = vmatmul.f32.gmra.mxu1 %v1651_v39  ;;  %v1694_v51 = vpop.f32.mrf.mxu2  ;;  %v1723_v52 = vpop.f32.mrf.mxu3 }
 0x2b1   : > { %2057 = vmatmul.f32.gmra.mxu2 %v1622_v38  ;;  %2086 = vmatmul.f32.gmra.mxu3 %v1651_v39 }
 0x2b2   : > { %2409 = vmatpush.msra.mxu2 %v2390_v41  ;;  %2432 = vmatpush.msra.mxu3 %v2373_v6  ;;  %v2455_v41 = vld [vmem:[#allocation16 + $0x140] sm:$0xff] }
 0x2b3   : > { %v2556_v6 = vld [vmem:[#allocation18 + $0x40] sm:$0xff] }
 0x2b4   : > { %2410 = vmatpush.msra.mxu2 %v2389_v44  ;;  %2433 = vmatpush.msra.mxu3 %v2372_v35  ;;  %v2369_v44 = vld [vmem:[#allocation16 + $0x10] sm:$0xff]  ;;  %v2615_v35 = vld [vmem:[#allocation18 + $0x98] sm:$0xff] }
 0x2b6   : > { %2411 = vmatpush.msra.mxu2 %v2388_v45  ;;  %2434 = vmatpush.msra.mxu3 %v2371_v40  ;;  %v2453_v45 = vld [vmem:[#allocation16 + $0x130] sm:$0xff] }
 0x2b8   : > { %2171 = vmatmul.f32.vlgmr.msrb.gmra.mxu0 %v1688_v36  ;;  %2200 = vmatmul.f32.vlgmr.msrb.gmra.mxu1 %v1717_v37  ;;  %v1697_v53 = vpop.f32.mrf.mxu2  ;;  %v1726_v54 = vpop.f32.mrf.mxu3 }
 0x2b9   : > { %2229 = vmatmul.f32.vlgmr.msrb.gmra.mxu2 %v1688_v36  ;;  %2258 = vmatmul.f32.vlgmr.msrb.gmra.mxu3 %v1717_v37  ;;  %v2456_v36 = vld [vmem:[#allocation16 + $0x148] sm:$0xff] }
 0x2ba   : > { %2412 = vmatpush.msra.mxu2 %v2387_v48  ;;  %2517 = vmatpush.msrb.mxu1 %v8483_v50 }
 0x2bb   : > { %2463 = vmatpush.msrb.mxu0 %v2462_v23  ;;  %v2553_v23 = vld [vmem:[#allocation18 + $0x30] sm:$0xff] }
 0x2bc   : > { %2413 = vmatpush.msra.mxu2 %v2386_v4 }
 0x2bd   : > { %2464 = vmatpush.msrb.mxu0 %v2461_v25  ;;  %v2558_v25 = vld [vmem:[#allocation18 + $0x50] sm:$0xff] }
 0x2be   : > { %2414 = vmatpush.msra.mxu2 %v2385_v5 }
 0x2bf   : > { %2465 = vmatpush.msrb.mxu0 %v2460_v27  ;;  %v2617_v27 = vld [vmem:[#allocation18 + $0xa8] sm:$0xff] }
 0x2c0   : > { %2174 = vmatmul.f32.gmra.mxu0 %v1691_v46  ;;  %2203 = vmatmul.f32.gmra.mxu1 %v1720_v47  ;;  %v8493_v61 = vpop.f32.mrf.mxu0  ;;  %v8495_v62 = vpop.f32.mrf.mxu1 }
 0x2c1   : > { %2232 = vmatmul.f32.gmra.mxu2 %v1691_v46  ;;  %2261 = vmatmul.f32.gmra.mxu3 %v1720_v47  ;;  %v2368_v46 = vld [vmem:[#allocation16 + $0x8] sm:$0xff] }
 0x2c2   : > { %2415 = vmatpush.msra.mxu2 %v2384_v49  ;;  %2466 = vmatpush.msrb.mxu0 %v2459_v32  ;;  %v2452_v47 = vld [vmem:[#allocation16 + $0x128] sm:$0xff]  ;;  %v2367_v49 = vld [vmem:[#allocation16] sm:$0xff] }
 0x2c3   : > { %v2551_v32 = vld [vmem:[#allocation18 + $0x20] sm:$0xff] }
 0x2c4   : > { %2542 = vmatpush.msrb.mxu2 %v8483_v50  ;;  %2467 = vmatpush.msrb.mxu0 %v2458_v34 }
 0x2c6   : > { %2468 = vmatpush.msrb.mxu0 %v2457_v7  ;;  %v2550_v7 = vld [vmem:[#allocation18 + $0x18] sm:$0xff] }
 0x2c7   : > { %v8497_v2 = vpop.f32.mrf.mxu2 }
 0x2c8   : > { %2177 = vmatmul.f32.gmra.mxu0 %v1694_v51  ;;  %2206 = vmatmul.f32.gmra.mxu1 %v1723_v52 }
 0x2c9   : > { %2235 = vmatmul.f32.gmra.mxu2 %v1694_v51  ;;  %2264 = vmatmul.f32.gmra.mxu3 %v1723_v52  ;;  %v2451_v51 = vld [vmem:[#allocation16 + $0x120] sm:$0xff]  ;;  %v2450_v52 = vld [vmem:[#allocation16 + $0x118] sm:$0xff] }
 0x2ca   : > { %v8499_v3 = vpop.f32.mrf.mxu0  ;;  %v8501_v63 = vpop.f32.mrf.mxu1  ;;  %2469 = vmatpush.msrb.mxu0 %v2456_v36 }
 0x2cc   : > { %2470 = vmatpush.msrb.mxu0 %v2455_v41  ;;  %v2549_v41 = vld [vmem:[#allocation18 + $0x10] sm:$0xff] }
 0x2d0   : > { %2180 = vmatmul.f32.gmra.mxu0 %v1697_v53  ;;  %2209 = vmatmul.f32.gmra.mxu1 %v1726_v54 }
 0x2d1   : > { %2238 = vmatmul.f32.gmra.mxu2 %v1697_v53  ;;  %2267 = vmatmul.f32.gmra.mxu3 %v1726_v54  ;;  %v8503_v8 = vpop.f32.mrf.mxu2  ;;  %v2563_v53 = vld [vmem:[#allocation18 + $0x78] sm:$0xff]  ;;  %v2449_v54 = vld [vmem:[#allocation16 + $0x110] sm:$0xff] }
 0x2d4   : > { %v8505_v9 = vpop.f32.mrf.mxu0  ;;  %v8507_v10 = vpop.f32.mrf.mxu1 }
 0x2d8   : > { %5851 = vmatmul.msk.f32.vlgmr.msra.gmra.mxu0 %vm2305_vm1, %v2303_v55  ;;  %5853 = vmatmul.msk.f32.vlgmr.msra.gmra.mxu1 %vm2305_vm1, %v2336_v56  ;;  %v2562_v55 = vld [vmem:[#allocation18 + $0x70] sm:$0xff]  ;;  %v2448_v56 = vld [vmem:[#allocation16 + $0x108] sm:$0xff] }
 0x2d9   : > { %2416 = vmatmul.f32.vlgmr.msra.gmra.mxu2 %v2301_v43  ;;  %v2454_v43 = vld [vmem:[#allocation16 + $0x138] sm:$0xff]  ;;  %2599 = vmatpush.msra.mxu1 %v2554_v19  ;;  %v2710_v19 = vld [vmem:[#allocation19 + $0x20] sm:$0xff] }
 0x2da   : > { %2471 = vmatpush.msrb.mxu0 %v2454_v43  ;;  %2631 = vmatpush.msra.mxu2 %v2619_v21  ;;  %v2548_v43 = vld [vmem:[#allocation18 + $0x8] sm:$0xff] }
 0x2db   : > { %v8509_v11 = vpop.f32.mrf.mxu2  ;;  %2600 = vmatpush.msra.mxu1 %v2553_v23 }
 0x2dc   : > { %2472 = vmatpush.msrb.mxu0 %v2453_v45  ;;  %2632 = vmatpush.msra.mxu2 %v2618_v24  ;;  %v2547_v45 = vld [vmem:[#allocation18] sm:$0xff]  ;;  %v8574_v24 = vpop.f32.mrf.mxu3 }
 0x2dd   : > { %2601 = vmatpush.msra.mxu1 %v2552_v26  ;;  %v2796_v26 = vld [vmem:[#allocation28] sm:$0x3] }
 0x2de   : > { %v8511_v12 = vpop.f32.mrf.mxu0  ;;  %v8513_v13 = vpop.f32.mrf.mxu1  ;;  %2473 = vmatpush.msrb.mxu0 %v2452_v47  ;;  %2633 = vmatpush.msra.mxu2 %v2617_v27 }
 0x2df   : > { %2602 = vmatpush.msra.mxu1 %v2551_v32 }
 0x2e0   : > { %5852 = vmatmul.msk.f32.gmra.mxu0 %vm2305_vm1, %v2304_v57  ;;  %5854 = vmatmul.msk.f32.gmra.mxu1 %vm2305_vm1, %v2337_v58  ;;  %v2561_v57 = vld [vmem:[#allocation18 + $0x68] sm:$0xff] }
 0x2e1   : > { %2419 = vmatmul.f32.gmra.mxu2 %v2302_v42  ;;  %v2370_v42 = vld [vmem:[#allocation16 + $0x18] sm:$0xff]  ;;  %2474 = vmatpush.msrb.mxu0 %v2451_v51 }
 0x2e2   : > { %2435 = vmatpush.msra.mxu3 %v2370_v42  ;;  %2634 = vmatpush.msra.mxu2 %v2616_v33  ;;  %v2614_v42 = vld [vmem:[#allocation18 + $0x90] sm:$0xff] }
 0x2e3   : > { %2475 = vmatpush.msrb.mxu0 %v2450_v52  ;;  %2603 = vmatpush.msra.mxu1 %v2550_v7 }
 0x2e4   : > { %2436 = vmatpush.msra.mxu3 %v2369_v44  ;;  %2635 = vmatpush.msra.mxu2 %v2615_v35  ;;  %v2613_v44 = vld [vmem:[#allocation18 + $0x88] sm:$0xff]  ;;  %v8583_v33 = vpop.f32.mrf.mxu3 }
 0x2e5   : > { %v8515_v14 = vpop.f32.mrf.mxu2  ;;  %2476 = vmatpush.msrb.mxu0 %v2449_v54  ;;  %2604 = vmatpush.msra.mxu1 %v2549_v41 }
 0x2e6   : > { %2437 = vmatpush.msra.mxu3 %v2368_v46  ;;  %2636 = vmatpush.msra.mxu2 %v2614_v42  ;;  %v2612_v46 = vld [vmem:[#allocation18 + $0x80] sm:$0xff] }
 0x2e7   : > { %2477 = vmatpush.msrb.mxu0 %v2448_v56  ;;  %2605 = vmatpush.msra.mxu1 %v2548_v43  ;;  %v2713_v56 = vld [vmem:[#allocation19 + $0x38] sm:$0xff] }
 0x2e8   : > { %5855 = vmatmul.msk.f32.vlgmr.msrb.gmra.mxu1 %vm2498_vm2, %v2497_v59  ;;  %2438 = vmatpush.msra.mxu3 %v2367_v49 }
 0x2e9   : > { %5856 = vmatmul.msk.f32.vlgmr.msrb.gmra.mxu2 %vm2498_vm2, %v2523_v60  ;;  %2478 = vmatpush.msrb.mxu0 %v2447_v17  ;;  %v8568_v17 = vld [vmem:[%s8174_s2] sm:$0x3]  ;;  %s5043_s2 = scalar_lea.sflag [#allocation48], %s8144_s8 }
 0x2ea   : > { %2576 = vmatpush.msrb.mxu3 %v2563_v53  ;;  %2637 = vmatpush.msra.mxu2 %v2613_v44  ;;  %v2650_v53 = vld [vmem:[%s8165_s19] sm:$0xf]  ;;  %s5089_s19 = sshll.u32 %s5086_s17, 4  ;;  %s5090_s19 = int_to_ptr.hbm [resolvable:$true] %s5089_s19 }
 0x2eb   : > { %2606 = vmatpush.msra.mxu1 %v2547_v45  ;;  %5867 = vmatpush.msk.msra.mxu0 %vm2801_vm4, %v8568_v17  ;;  %s7248_s24 = sshra.s32 %s5090_s19, 4  ;;  %s7249_s24 = int_to_ptr.hbm [resolvable:$true] %s7248_s24 }
 0x2ec   : > { %2577 = vmatpush.msrb.mxu3 %v2562_v55  ;;  %2638 = vmatpush.msra.mxu2 %v2612_v46  ;;  %v8590_v7 = vpop.f32.mrf.mxu3  ;;  %s7250_s3 = scalar_lea.hbm %s7249_s24, 16  ;;  %p7255_p8 = scmp.lt.s32.totalorder %s7249_s24, %s9526_s14 }
 0x2ed   : > { %2728 = vmatpush.msrb.mxu1 %v2713_v56  ;;  %v2706_v56 = vld [vmem:[#allocation19 + $0x8] sm:$0xff]  ;;  %p7251_p12 = scmp.ne.s32.totalorder %s7249_s24, %s7250_s3  ;;  %p7256_p1 = scmp.lt.s32.totalorder %s7254_s4, %s7250_s3 }
 0x2ee   : > { %2578 = vmatpush.msrb.mxu3 %v2561_v57  ;;  %v2712_v57 = vld [vmem:[#allocation19 + $0x30] sm:$0xff] }
 0x2ef   : > { %2729 = vmatpush.msrb.mxu1 %v2712_v57  ;;  %p7252_p13 = pnand %p7251_p12, %p7925_p5  ;;  %p7257_p2 = por %p7256_p1, %p7255_p8 }
 0x2f0   : > { %2579 = vmatpush.msrb.mxu3 %v2560_v18  ;;  %v2711_v18 = vld [vmem:[#allocation19 + $0x28] sm:$0xff] }
 0x2f1   : > { %2730 = vmatpush.msrb.mxu1 %v2711_v18  ;;  %v2705_v18 = vld [vmem:[#allocation19] sm:$0xff]  ;;  %p7253_p0 = pneg %p7252_p13 }
 0x2f2   : > { %2580 = vmatpush.msrb.mxu3 %v2559_v22 }
 0x2f3   : > { %2731 = vmatpush.msrb.mxu1 %v2710_v19  ;;  %v2763_v19 = vld [vmem:[#allocation19 + $0x58] sm:$0xff]  ;;  %p7258_p3 = pnand %p7257_p2, %p7253_p0 }
 0x2f4   : > { %2581 = vmatpush.msrb.mxu3 %v2558_v25  ;;  %v8592_v35 = vpop.f32.mrf.mxu3 }
 0x2f6   : > { %2582 = vmatpush.msrb.mxu3 %v2557_v31  ;;  %v2651_v31 = vld [vmem:[#allocation27] sm:$0xf] }
 0x2f8   : > { %2583 = vmatpush.msrb.mxu3 %v2556_v6  ;;  %v2826_v6 = vld [vmem:[#allocation28 + $0x2] sm:$0x3] }
 0x315   : > { %v8517_v15 = vpop.f32.mrf.mxu0  ;;  %v8519_v16 = vpop.f32.mrf.mxu1 }
 0x31c   : > { %v8521_v20 = vpop.f32.mrf.mxu2  ;;  %v8594_v41 = vpop.f32.mrf.mxu3 }
 0x31d   : > { %v8523_v0 = vpop.f32.mrf.mxu0  ;;  %v8525_v1 = vpop.f32.mrf.mxu1  ;;  %9513 = vst [vmem:[#allocation109_spill] sm:$0xff] %v8594_v41  ;;  %v2902_v41 = vld [vmem:[#allocation21 + $0x28] sm:$0xff] }
 0x324   : > { %v8527_v28 = vpop.f32.mrf.mxu2  ;;  %v8596_v42 = vpop.f32.mrf.mxu3 }
 0x325   : > { %v8529_v29 = vpop.f32.mrf.mxu0  ;;  %v8531_v30 = vpop.f32.mrf.mxu1  ;;  %9514 = vst [vmem:[#allocation110_spill] sm:$0xff] %v8596_v42 }
 0x32c   : > { %v8533_v37 = vpop.f32.mrf.mxu2  ;;  %v8598_v43 = vpop.f32.mrf.mxu3 }
 0x32d   : > { %v8535_v38 = vpop.f32.mrf.mxu0  ;;  %v8537_v39 = vpop.f32.mrf.mxu1 }
 0x334   : > { %v8539_v48 = vpop.f32.mrf.mxu2  ;;  %v8600_v44 = vpop.f32.mrf.mxu3 }
 0x335   : > { %v8541_v4 = vpop.f32.mrf.mxu0  ;;  %v8543_v5 = vpop.f32.mrf.mxu1 }
 0x33c   : > { %v8545_v58 = vpop.f32.mrf.mxu2  ;;  %v8602_v45 = vpop.f32.mrf.mxu3 }
 0x33d   : > { %9512 = vst [vmem:[#allocation108_spill] sm:$0xff] %v8545_v58  ;;  %v8547_v59 = vpop.f32.mrf.mxu0  ;;  %v8549_v60 = vpop.f32.mrf.mxu1 }
 0x33e   : > { %9515 = vst [vmem:[#allocation111_spill] sm:$0xff] %v8602_v45 }
 0x344   : > { %v8551_v34 = vpop.f32.mrf.mxu2  ;;  %v8604_v46 = vpop.f32.mrf.mxu3 }
 0x345   : > { %v8553_v36 = vpop.f32.mrf.mxu0  ;;  %v8555_v40 = vpop.f32.mrf.mxu1 }
 0x34c   : > { %v8557_v47 = vpop.f32.mrf.mxu2 }
 0x34d   : > { %v8559_v49 = vpop.f32.mrf.mxu0  ;;  %v8561_v51 = vpop.f32.mrf.mxu1 }
 0x354   : > { %v8563_v52 = vpop.f32.mrf.mxu2 }
 0x355   : > { %v2329_v54 = vpop.f32.mrf.mxu0  ;;  %v2361_v55 = vpop.f32.mrf.mxu1 }
 0x356   : > { %2439 = vmatmul.f32.vlgmr.msra.gmra.mxu3 %v2329_v54  ;;  %2479 = vmatmul.f32.vlgmr.msrb.gmra.mxu0 %v2361_v55  ;;  %v2708_v54 = vld [vmem:[#allocation19 + $0x18] sm:$0xff]  ;;  %v2707_v55 = vld [vmem:[#allocation19 + $0x10] sm:$0xff] }
 0x357   : > { %5860 = vmatpush.msk.msra.mxu3 %vm2656_vm3, %v2650_v53  ;;  %2751 = vmatpush.msrb.mxu2 %v2708_v54  ;;  %v2850_v54 = vld [vmem:[#allocation21] sm:$0xff] }
 0x358   : > { %2920 = vmatpush.msrb.mxu0 %v2902_v41 }
 0x359   : > { %2752 = vmatpush.msrb.mxu2 %v2707_v55 }
 0x35b   : > { %2753 = vmatpush.msrb.mxu2 %v2706_v56 }
 0x35c   : > { %v8572_v21 = vpop.f32.mrf.mxu2 }
 0x35d   : > { %v2332_v22 = vpop.f32.mrf.mxu0  ;;  %v2364_v23 = vpop.f32.mrf.mxu1  ;;  %2754 = vmatpush.msrb.mxu2 %v2705_v18 }
 0x35e   : > { %2442 = vmatmul.f32.gmra.mxu3 %v2332_v22  ;;  %2482 = vmatmul.f32.gmra.mxu0 %v2364_v23  ;;  %v2762_v22 = vld [vmem:[#allocation19 + $0x50] sm:$0xff]  ;;  %v2761_v23 = vld [vmem:[#allocation19 + $0x48] sm:$0xff] }
 0x364   : > { %v2420_v25 = vpop.f32.mrf.mxu2 }
 0x365   : > { %v2519_v27 = vpop.f32.mrf.mxu1 }
 0x366   : > { %5857 = vmatmul.msk.f32.vlgmr.msrb.gmra.mxu3 %vm2564_vm5, %v8483_v50  ;;  %5858 = vmatmul.msk.f32.vlgmr.msra.gmra.mxu1 %vm2564_vm5, %v2519_v27  ;;  %v2681_v50 = vld [vmem:[#allocation27 + $0x4] sm:$0xf] }
 0x367   : > { %5862 = vmatpush.msk.msrb.mxu3 %vm2656_vm3, %v2650_v53  ;;  %5868 = vmatmul.msk.f32.vlgmr.msra.gmra.mxu0 %vm2797_vm6, %v2796_v26  ;;  %v2854_v26 = vld [vmem:[#allocation21 + $0x18] sm:$0xff] }
 0x368   : > { %5869 = vmatpush.msk.msra.mxu1 %vm2801_vm4, %v8568_v17 }
 0x36c   : > { %v2544_v32 = vpop.f32.mrf.mxu2 }
 0x36d   : > { %5859 = vmatmul.msk.f32.vlgmr.msra.gmra.mxu2 %vm2564_vm5, %v2544_v32  ;;  %v2760_v32 = vld [vmem:[#allocation19 + $0x40] sm:$0xff] }
 0x36e   : > { %5861 = vmatmul.msk.f32.vlgmr.msra.gmra.mxu3 %vm2652_vm7, %v2651_v31  ;;  %5864 = vmatmul.msk.f32.vlgmr.msrb.gmra.mxu1 %vm1583_vm0, %v2650_v53  ;;  %v8606_v53 = vpop.f32.mrf.mxu3 }
 0x36f   : > { %2779 = vmatpush.msra.mxu3 %v2763_v19  ;;  %2871 = vmatpush.msra.mxu2 %v2854_v26 }
 0x371   : > { %2780 = vmatpush.msra.mxu3 %v2762_v22  ;;  %v2901_v22 = vld [vmem:[#allocation21 + $0x20] sm:$0xff] }
 0x372   : > { %2921 = vmatpush.msrb.mxu0 %v2901_v22  ;;  %v2974_v22 = vld [vmem:[%s9516_s5 + $0xe0] sm:$0xff] }
 0x373   : > { %2781 = vmatpush.msra.mxu3 %v2761_v23  ;;  %v6427_v23 = vld [vmem:[#allocation31] ss:$0 sm:$0xff] }
 0x375   : > { %2782 = vmatpush.msra.mxu3 %v2760_v32 }
 0x376   : > { %5863 = vmatmul.msk.f32.vlgmr.msrb.gmra.mxu3 %vm2652_vm7, %v2681_v50  ;;  %5870 = vmatmul.msk.f32.vlgmr.msra.gmra.mxu1 %vm2797_vm6, %v2826_v6  ;;  %v8608_v57 = vpop.f32.mrf.mxu3  ;;  %v2853_v50 = vld [vmem:[#allocation21 + $0x10] sm:$0xff]  ;;  %v2851_v6 = vld [vmem:[#allocation21 + $0x8] sm:$0xff] }
 0x377   : > { %2872 = vmatpush.msra.mxu2 %v2853_v50  ;;  %2894 = vmatpush.msrb.mxu3 %v2851_v6  ;;  %v2942_v50 = vld [vmem:[#allocation37] sm:$0xff]  ;;  %v2943_v6 = vld [vmem:[#allocation37 + $0x8] sm:$0xff] }
 0x379   : > { %2895 = vmatpush.msrb.mxu3 %v2850_v54 }
 0x3d3   : > { %v2480_v27 = vpop.f32.mrf.mxu0 }
 0x3d9   : > { %v2440_v31 = vpop.f32.mrf.mxu3 }
 0x3da   : > { %v2441_v55 = vadd.f32 %v2440_v31, %v8572_v21 }
 0x3db   : > { %v2483_v18 = vpop.f32.mrf.mxu0 }
 0x3dc   : > { %v2486_v26 = vadd.f32 %v2480_v27, %v2441_v55  ;;  %v6428_v27 = vld [vmem:[#allocation33] ss:$0 sm:$0xff] }
 0x3de   : > { %v8613_v32 = vadd.f32 %v6427_v23, %v2486_v26 }
 0x3e1   : > { %v2443_v56 = vpop.f32.mrf.mxu3 }
 0x3e2   : > { %v2444_v19 = vadd.f32 %v2443_v56, %v2420_v25 }
 0x3e3   : > { %v2608_v45 = vpop.f32.mrf.mxu1 }
 0x3e4   : > { %v2487_v58 = vadd.f32 %v2483_v18, %v2444_v19  ;;  %v2976_v19 = vld [vmem:[%s9516_s5 + $0xf0] sm:$0xff] }
 0x3e6   : > { %v8611_v42 = vadd.f32 %v6427_v23, %v2487_v58  ;;  %v2972_v23 = vld [vmem:[%s9516_s5 + $0xd0] sm:$0xff] }
 0x3e8   : > { %3006 = vmatpush.msrb.mxu1 %v8611_v42 }
 0x3e9   : > { %v2585_v21 = vpop.f32.mrf.mxu3 }
 0x3ea   : > { %3007 = vmatpush.msrb.mxu1 %v8613_v32  ;;  %v2609_v41 = vadd.f32 %v2608_v45, %v2585_v21  ;;  %v2944_v45 = vld [vmem:[#allocation37 + $0x10] sm:$0xff]  ;;  %v2975_v21 = vld [vmem:[%s9516_s5 + $0xe8] sm:$0xff] }
 0x3eb   : > { %5874 = vmatmul.msk.f32.vlgmr.msrb.gmra.mxu1 %vm2305_vm1, %v2942_v50  ;;  %v8618_v25 = vpop.f32.mrf.mxu1  ;;  %v2977_v50 = vld [vmem:[%s9516_s5 + $0xf8] sm:$0xff] }
 0x3ec   : > { %3155 = vmatpush.msra.mxu1 %v2976_v19  ;;  %v2964_v19 = vld [vmem:[%s9516_s5 + $0x90] sm:$0xff] }
 0x3ee   : > { %3156 = vmatpush.msra.mxu1 %v2974_v22  ;;  %v2965_v22 = vld [vmem:[%s9516_s5 + $0x98] sm:$0xff] }
 0x3f0   : > { %v2640_v31 = vpop.f32.mrf.mxu2  ;;  %3157 = vmatpush.msra.mxu1 %v2972_v23  ;;  %v2962_v23 = vld [vmem:[%s9516_s5 + $0x80] sm:$0xff] }
 0x3f1   : > { %v2643_v58 = vadd.f32 %v2640_v31, %v2609_v41  ;;  %v2677_v54 = vpop.f32.mrf.mxu3  ;;  %v3022_v41 = vld [vmem:[#allocation37 + $0x20] sm:$0xff]  ;;  %v2973_v31 = vld [vmem:[%s9516_s5 + $0xd8] sm:$0xff] }
 0x3f2   : > { %5865 = vmatmul.msk.f32.vlgmr.msrb.gmra.mxu2 %vm1583_vm0, %v2677_v54  ;;  %v2968_v54 = vld [vmem:[%s9516_s5 + $0xb0] sm:$0xff] }
 0x3f3   : > { %v2648_v55 = vadd.f32 %v6428_v27, %v2643_v58  ;;  %5875 = vmatmul.msk.f32.gmra.mxu1 %vm2305_vm1, %v2943_v6  ;;  %v2847_v56 = vpop.f32.mrf.mxu1  ;;  %v2945_v27 = vld [vmem:[#allocation37 + $0x18] sm:$0xff]  ;;  %v2970_v6 = vld [vmem:[%s9516_s5 + $0xc0] sm:$0xff]  ;;  %v2971_v58 = vld [vmem:[%s9516_s5 + $0xc8] sm:$0xff] }
 0x3f4   : > { %5873 = vmatmul.msk.f32.vlgmr.msrb.gmra.mxu0 %vm2305_vm1, %v2847_v56  ;;  %3158 = vmatpush.msra.mxu1 %v2970_v6  ;;  %v2966_v56 = vld [vmem:[%s9516_s5 + $0xa0] sm:$0xff] }
 0x3f5   : > { %2649 = vst.msk [vmem:[#allocation4] sm:$0xff] %vm2564_vm5, %v2648_v55  ;;  %v2969_v55 = vld [vmem:[%s9516_s5 + $0xb8] sm:$0xff]  ;;  %v2954_v6 = vld [vmem:[%s9516_s5 + $0x40] sm:$0xff] }
 0x3f6   : > { %3159 = vmatpush.msra.mxu1 %v2968_v54  ;;  %v2950_v54 = vld [vmem:[%s9516_s5 + $0x20] sm:$0xff] }
 0x3f8   : > { %3160 = vmatpush.msra.mxu1 %v2966_v56  ;;  %v2948_v56 = vld [vmem:[%s9516_s5 + $0x10] sm:$0xff] }
 0x3f9   : > { %v2702_v18 = vpop.f32.mrf.mxu3 }
 0x3fa   : > { %5866 = vmatmul.msk.f32.vlgmr.msra.gmra.mxu3 %vm1583_vm0, %v2702_v18  ;;  %5871 = vmatmul.msk.f32.vlgmr.msra.gmra.mxu2 %vm2305_vm1, %v8568_v17  ;;  %v2822_v17 = vpop.f32.mrf.mxu0  ;;  %v3023_v18 = vld [vmem:[#allocation37 + $0x28] sm:$0xff] }
 0x3fb   : > { %5876 = vmatmul.msk.f32.gmra.mxu1 %vm2305_vm1, %v2944_v45  ;;  %v2967_v45 = vld [vmem:[%s9516_s5 + $0xa8] sm:$0xff] }
 0x3fc   : > { %v8630_v26 = vld [vmem:[#allocation4] sm:$0xff]  ;;  %3161 = vmatpush.msra.mxu1 %v2964_v19  ;;  %v5911_v19 = vld [vmem:[%s9516_s5 + $0x428] sm:$0xff] }
 0x3fd   : > { %3071 = vmatpush.msrb.mxu2 %v8630_v26 }
 0x3fe   : > { %3162 = vmatpush.msra.mxu1 %v2962_v23  ;;  %v2959_v23 = vld [vmem:[%s9516_s5 + $0x68] sm:$0xff] }
 0x3ff   : > { %3184 = vmatpush.msra.mxu2 %v2977_v50  ;;  %v2963_v50 = vld [vmem:[%s9516_s5 + $0x88] sm:$0xff] }
 0x401   : > { %3185 = vmatpush.msra.mxu2 %v2975_v21  ;;  %v2960_v21 = vld [vmem:[%s9516_s5 + $0x70] sm:$0xff] }
 0x402   : > { %5872 = vmatmul.msk.f32.vlgmr.msrb.gmra.mxu3 %vm2305_vm1, %v2822_v17  ;;  %5894 = vmatmul.msk.f32.vlgmr.msrb.gmra.mxu2 %vm2498_vm2, %v3022_v41  ;;  %v2961_v17 = vld [vmem:[%s9516_s5 + $0x78] sm:$0xff]  ;;  %v2958_v41 = vld [vmem:[%s9516_s5 + $0x60] sm:$0xff] }
 0x403   : > { %5877 = vmatmul.msk.f32.gmra.mxu1 %vm2305_vm1, %v2945_v27  ;;  %3186 = vmatpush.msra.mxu2 %v2973_v31  ;;  %v3024_v27 = vld [vmem:[#allocation37 + $0x30] sm:$0xff] }
 0x404   : > { %3163 = vmatpush.msra.mxu1 %v2960_v21  ;;  %v2956_v31 = vld [vmem:[%s9516_s5 + $0x50] sm:$0xff]  ;;  %v2957_v21 = vld [vmem:[%s9516_s5 + $0x58] sm:$0xff] }
 0x405   : > { %3187 = vmatpush.msra.mxu2 %v2971_v58  ;;  %v2952_v58 = vld [vmem:[%s9516_s5 + $0x30] sm:$0xff] }
 0x406   : > { %3164 = vmatpush.msra.mxu1 %v2958_v41  ;;  %v2953_v41 = vld [vmem:[%s9516_s5 + $0x38] sm:$0xff] }
 0x407   : > { %3188 = vmatpush.msra.mxu2 %v2969_v55  ;;  %v3025_v55 = vld [vmem:[#allocation37 + $0x38] sm:$0xff] }
 0x408   : > { %3165 = vmatpush.msra.mxu1 %v2956_v31  ;;  %v2949_v31 = vld [vmem:[%s9516_s5 + $0x18] sm:$0xff] }
 0x409   : > { %3189 = vmatpush.msra.mxu2 %v2967_v45  ;;  %v2946_v45 = vld [vmem:[%s9516_s5] sm:$0xff] }
 0x40a   : > { %5895 = vmatmul.msk.f32.gmra.mxu2 %vm2498_vm2, %v3023_v18  ;;  %3166 = vmatpush.msra.mxu1 %v2954_v6  ;;  %v5913_v18 = vld [vmem:[%s9516_s5 + $0x438] sm:$0xff]  ;;  %v2947_v6 = vld [vmem:[%s9516_s5 + $0x8] sm:$0xff] }
 0x40b   : > { %3190 = vmatpush.msra.mxu2 %v2965_v22  ;;  %v5909_v22 = vld [vmem:[%s9516_s5 + $0x418] sm:$0xff] }
 0x40c   : > { %3167 = vmatpush.msra.mxu1 %v2952_v58  ;;  %v5892_v58 = vld [vmem:[%s9516_s5 + $0x270] sm:$0xff] }
 0x40d   : > { %3191 = vmatpush.msra.mxu2 %v2963_v50  ;;  %v5907_v50 = vld [vmem:[%s9516_s5 + $0x408] sm:$0xff]  ;;  %3105 = vmatpush.msra.mxu3 %v5892_v58 }
 0x40e   : > { %3168 = vmatpush.msra.mxu1 %v2950_v54  ;;  %v5890_v54 = vld [vmem:[%s9516_s5 + $0x260] sm:$0xff] }
 0x40f   : > { %3192 = vmatpush.msra.mxu2 %v2961_v17  ;;  %v2955_v17 = vld [vmem:[%s9516_s5 + $0x48] sm:$0xff]  ;;  %3106 = vmatpush.msra.mxu3 %v5890_v54 }
 0x410   : > { %3169 = vmatpush.msra.mxu1 %v2948_v56  ;;  %v5888_v56 = vld [vmem:[%s9516_s5 + $0x250] sm:$0xff] }
 0x411   : > { %3193 = vmatpush.msra.mxu2 %v2959_v23  ;;  %3107 = vmatpush.msra.mxu3 %v5888_v56  ;;  %v5887_v23 = vld [vmem:[%s9516_s5 + $0x248] sm:$0xff] }
 0x412   : > { %5896 = vmatmul.msk.f32.gmra.mxu2 %vm2498_vm2, %v3024_v27  ;;  %3170 = vmatpush.msra.mxu1 %v2946_v45  ;;  %v2951_v27 = vld [vmem:[%s9516_s5 + $0x28] sm:$0xff] }
 0x413   : > { %3194 = vmatpush.msra.mxu2 %v2957_v21  ;;  %v5891_v45 = vld [vmem:[%s9516_s5 + $0x268] sm:$0xff] }
 0x414   : > { %3325 = vmatpush.msrb.mxu1 %v5913_v18  ;;  %v5889_v18 = vld [vmem:[%s9516_s5 + $0x258] sm:$0xff] }
 0x415   : > { %3195 = vmatpush.msra.mxu2 %v2955_v17  ;;  %v5884_v17 = vld [vmem:[%s9516_s5 + $0x230] sm:$0xff] }
 0x416   : > { %3326 = vmatpush.msrb.mxu1 %v5911_v19  ;;  %v1914_v19 = vadd.f32 %v8513_v13, %v8511_v12  ;;  %v2211_v13 = vadd.f32 %v8561_v51, %v8559_v49  ;;  %v8703_v49 = vld [vmem:[#allocation30] sm:$0x3]  ;;  %v5881_v51 = vld [vmem:[%s9516_s5 + $0x218] sm:$0xff] }
 0x417   : > { %3196 = vmatpush.msra.mxu2 %v2953_v41  ;;  %v5885_v41 = vld [vmem:[%s9516_s5 + $0x238] sm:$0xff] }
 0x418   : > { %3327 = vmatpush.msrb.mxu1 %v5909_v22  ;;  %v5886_v22 = vld [vmem:[%s9516_s5 + $0x240] sm:$0xff]  ;;  %v2001_v21 = vadd.f32 %v8535_v38, %v1914_v19  ;;  %v5883_v38 = vld [vmem:[%s9516_s5 + $0x228] sm:$0xff] }
 0x419   : > { %3197 = vmatpush.msra.mxu2 %v2951_v27  ;;  %3108 = vmatpush.msra.mxu3 %v5886_v22  ;;  %v1908_v27 = vadd.f32 %v8501_v63, %v8499_v3  ;;  %v2208_v3 = vadd.f32 %v8555_v40, %v8553_v36  ;;  %v5880_v63 = vld [vmem:[%s9516_s5 + $0x210] sm:$0xff]  ;;  %v2202_v40 = vadd.f32 %v8543_v5, %v8541_v4  ;;  %v6429_v22 = vld [vmem:[#allocation34] ss:$0 sm:$0xff] }
 0x41a   : > { %5897 = vmatmul.msk.f32.gmra.mxu2 %vm2498_vm2, %v3025_v55  ;;  %3328 = vmatpush.msrb.mxu1 %v5907_v50  ;;  %v5893_v55 = vld [vmem:[%s9516_s5 + $0x278] sm:$0xff]  ;;  %v1911_v50 = vadd.f32 %v8507_v10, %v8505_v9  ;;  %v1905_v9 = vadd.f32 %v8495_v62, %v8493_v61  ;;  %v5882_v10 = vld [vmem:[%s9516_s5 + $0x220] sm:$0xff]  ;;  %v2205_v62 = vadd.f32 %v8549_v60, %v8547_v59 }
 0x41b   : > { %3198 = vmatpush.msra.mxu2 %v2949_v31  ;;  %3134 = vmatpush.msra.mxu0 %v5893_v55  ;;  %v1995_v31 = vadd.f32 %v8523_v0, %v1908_v27  ;;  %v5878_v0 = vld [vmem:[%s9516_s5 + $0x200] sm:$0xff] }
 0x41c   : > { %v1998_v12 = vadd.f32 %v8529_v29, %v1911_v50  ;;  %3109 = vmatpush.msra.mxu3 %v5884_v17  ;;  %v1992_v29 = vadd.f32 %v8517_v15, %v1905_v9  ;;  %v2281_v15 = vperm.slane %v8703_v49, 0 }
 0x41d   : > { %3199 = vmatpush.msra.mxu2 %v2947_v6  ;;  %3135 = vmatpush.msra.mxu0 %v5891_v45  ;;  %v2030_v6 = vadd.f32 %v8537_v39, %v2001_v21  ;;  %v5879_v39 = vld [vmem:[%s9516_s5 + $0x208] sm:$0xff]  ;;  %v2024_v36 = vadd.f32 %v8525_v1, %v1995_v31  ;;  %v5929_v31 = vld [vmem:[%s9516_s5 + $0x610] sm:$0xff] }
 0x41e   : > { %3110 = vmatpush.msra.mxu3 %v5882_v10  ;;  %v2027_v61 = vadd.f32 %v8531_v30, %v1998_v12  ;;  %v2021_v30 = vadd.f32 %v8519_v16, %v1992_v29  ;;  %v1972_v10 = vadd.f32 %v8592_v35, %v8515_v14  ;;  %v2269_v14 = vadd.f32 %v8608_v57, %v8563_v52  ;;  %v9519_v57 = vld [vmem:[#allocation111_spill] sm:$0xff] }
 0x41f   : > { %3136 = vmatpush.msra.mxu0 %v5889_v18  ;;  %v2277_v58 = vadd.f32 %v2211_v13, %v2030_v6  ;;  %v2273_v55 = vadd.f32 %v2205_v62, %v2024_v36  ;;  %v9520_v36 = vld [vmem:[#allocation109_spill] sm:$0xff] }
 0x420   : > { %3111 = vmatpush.msra.mxu3 %v5880_v63  ;;  %v2275_v54 = vadd.f32 %v2208_v3, %v2027_v61  ;;  %v2271_v60 = vadd.f32 %v2202_v40, %v2021_v30  ;;  %v1969_v3 = vadd.f32 %v8590_v7, %v8509_v11  ;;  %v2059_v63 = vadd.f32 %v8539_v48, %v1972_v10  ;;  %v3694_v30 = vld [vmem:[#allocation45 + $0xf8] sm:$0xff] }
 0x421   : > { %3137 = vmatpush.msra.mxu0 %v5887_v23  ;;  %v8716_v56 = vadd.f32 %v2281_v15, %v2277_v58  ;;  %v8721_v1 = vadd.f32 %v2281_v15, %v2273_v55  ;;  %v1966_v61 = vadd.f32 %v8583_v33, %v8503_v8  ;;  %v1963_v11 = vadd.f32 %v8574_v24, %v8497_v2  ;;  %v9517_v24 = vld [vmem:[#allocation110_spill] sm:$0xff]  ;;  %v3216_v10 = vld [vmem:[#allocation37 + $0x50] sm:$0xff] }
 0x422   : > { %3112 = vmatpush.msra.mxu3 %v5878_v0  ;;  %v8718_v45 = vadd.f32 %v2281_v15, %v2275_v54  ;;  %v8724_v4 = vadd.f32 %v2281_v15, %v2271_v60  ;;  %v2056_v62 = vadd.f32 %v8533_v37, %v1969_v3  ;;  %v2088_v35 = vadd.f32 %v8600_v44, %v2059_v63  ;;  %v3352_v55 = vld [vmem:[#allocation37 + $0x68] sm:$0xff]  ;;  %v3217_v63 = vld [vmem:[#allocation37 + $0x58] sm:$0xff] }
 0x423   : > { %3138 = vmatpush.msra.mxu0 %v5885_v41  ;;  %v2053_v48 = vadd.f32 %v8527_v28, %v1966_v61  ;;  %v2266_v58 = vadd.f32 %v8606_v53, %v8557_v47  ;;  %v2050_v8 = vadd.f32 %v8521_v20, %v1963_v11  ;;  %v2263_v2 = vadd.f32 %v8604_v46, %v8551_v34  ;;  %v9518_v28 = vld [vmem:[#allocation108_spill] sm:$0xff]  ;;  %v3351_v53 = vld [vmem:[#allocation37 + $0x60] sm:$0xff]  ;;  %v8792_v3 = vld [vmem:[#allocation39 + $0x8] sm:$0xff] }
 0x424   : > { %v2085_v37 = vadd.f32 %v8598_v43, %v2056_v62  ;;  %v2278_v52 = vadd.f32 %v2269_v14, %v2088_v35  ;;  %v2260_v44 = vadd.f32 %v9519_v57, %v9518_v28  ;;  %v2282_v0 = vperm.slane %v8703_v49, 1  ;;  %v5912_v61 = vld [vmem:[%s9516_s5 + $0x430] sm:$0xff]  ;;  %v5910_v62 = vld [vmem:[%s9516_s5 + $0x420] sm:$0xff] }
 0x425   : > { %3139 = vmatpush.msra.mxu0 %v5883_v38  ;;  %v2082_v33 = vadd.f32 %v9517_v24, %v2053_v48  ;;  %v2079_v40 = vadd.f32 %v9520_v36, %v2050_v8  ;;  %v5908_v48 = vld [vmem:[%s9516_s5 + $0x410] sm:$0xff]  ;;  %v5930_v36 = vld [vmem:[%s9516_s5 + $0x618] sm:$0xff] }
 0x426   : > { %v2276_v47 = vadd.f32 %v2266_v58, %v2085_v37  ;;  %v8763_v20 = vadd.f32 %v2282_v0, %v2278_v52  ;;  %v5906_v58 = vld [vmem:[%s9516_s5 + $0x400] sm:$0xff] }
 0x427   : > { %3140 = vmatpush.msra.mxu0 %v5881_v51  ;;  %v5927_v51 = vld [vmem:[%s9516_s5 + $0x600] sm:$0xff]  ;;  %v2274_v15 = vadd.f32 %v2263_v2, %v2082_v33  ;;  %v2272_v34 = vadd.f32 %v2260_v44, %v2079_v40 }
 0x428   : > { %v8767_v46 = vadd.f32 %v2282_v0, %v2276_v47 }
 0x429   : > { %3141 = vmatpush.msra.mxu0 %v5879_v39  ;;  %v8772_v49 = vadd.f32 %v2282_v0, %v2274_v15  ;;  %v8775_v54 = vadd.f32 %v2282_v0, %v2272_v34  ;;  %v5928_v34 = vld [vmem:[%s9516_s5 + $0x608] sm:$0xff] }
 0x42b   : > { %3296 = vmatpush.msrb.mxu0 %v5912_v61  ;;  %v4086_v61 = vld [vmem:[%s9521_s26 + $0xd0] sm:$0xff] }
 0x42d   : > { %3297 = vmatpush.msrb.mxu0 %v5910_v62  ;;  %v3665_v62 = vld [vmem:[#allocation45 + $0x10] sm:$0xff] }
 0x42f   : > { %3298 = vmatpush.msrb.mxu0 %v5908_v48  ;;  %v4084_v48 = vld [vmem:[%s9521_s26 + $0xc0] sm:$0xff] }
 0x431   : > { %3299 = vmatpush.msrb.mxu0 %v5906_v58  ;;  %v3873_v58 = vld [vmem:[#allocation39 + $0x20] sm:$0xff] }
 0x468   : > { %v3009_v59 = vpop.f32.mrf.mxu1 }
 0x469   : > { %3171 = vmatmul.f32.vlgmr.msra.gmra.mxu1 %v3009_v59  ;;  %3200 = vmatmul.f32.vlgmr.msra.gmra.mxu2 %v3009_v59  ;;  %v3693_v59 = vld [vmem:[#allocation45 + $0xf0] sm:$0xff] }
 0x46a   : > { %3721 = vmatpush.msra.mxu1 %v8716_v56 }
 0x46c   : > { %3722 = vmatpush.msra.mxu1 %v8718_v45 }
 0x46e   : > { %3723 = vmatpush.msra.mxu1 %v8721_v1 }
 0x470   : > { %3724 = vmatpush.msra.mxu1 %v8724_v4  ;;  %v3012_v16 = vpop.f32.mrf.mxu1 }
 0x471   : > { %3203 = vmatmul.f32.gmra.mxu2 %v3012_v16  ;;  %3174 = vmatmul.f32.gmra.mxu1 %v3012_v16  ;;  %v2923_v27 = vpop.f32.mrf.mxu0  ;;  %v3692_v16 = vld [vmem:[#allocation45 + $0xe8] sm:$0xff] }
 0x475   : > { %v2756_v5 = vpop.f32.mrf.mxu2 }
 0x476   : > { %v2757_v19 = vadd.f32 %v2756_v5, %v8618_v25  ;;  %v6430_v25 = vld [vmem:[#allocation36] ss:$0 sm:$0xff] }
 0x477   : > { %v3691_v5 = vld [vmem:[#allocation45 + $0xe0] sm:$0xff] }
 0x478   : > { %v3015_v18 = vpop.f32.mrf.mxu1 }
 0x479   : > { %3206 = vmatmul.f32.gmra.mxu2 %v3015_v18  ;;  %3177 = vmatmul.f32.gmra.mxu1 %v3015_v18  ;;  %v3690_v18 = vld [vmem:[#allocation45 + $0xd8] sm:$0xff] }
 0x47d   : > { %v2784_v23 = vpop.f32.mrf.mxu3  ;;  %v2874_v50 = vpop.f32.mrf.mxu2 }
 0x47e   : > { %v2787_v21 = vadd.f32 %v2784_v23, %v2757_v19  ;;  %v3353_v19 = vld [vmem:[#allocation37 + $0x70] sm:$0xff]  ;;  %v3689_v23 = vld [vmem:[#allocation45 + $0xd0] sm:$0xff] }
 0x480   : > { %v2792_v17 = vadd.f32 %v6429_v22, %v2787_v21  ;;  %v3018_v41 = vpop.f32.mrf.mxu1  ;;  %v3214_v22 = vld [vmem:[#allocation37 + $0x40] sm:$0xff]  ;;  %v3687_v21 = vld [vmem:[#allocation45 + $0xc0] sm:$0xff] }
 0x481   : > { %3209 = vmatmul.f32.gmra.mxu2 %v3018_v41  ;;  %3180 = vmatmul.f32.gmra.mxu1 %v3018_v41  ;;  %v3354_v41 = vld [vmem:[#allocation37 + $0x78] sm:$0xff] }
 0x482   : > { %2794 = vst.msk [vmem:[#allocation5] sm:$0xf] %vm2793_vm8, %v2792_v17  ;;  %v3686_v17 = vld [vmem:[#allocation45 + $0xb8] sm:$0xff] }
 0x485   : > { %v2897_v12 = vpop.f32.mrf.mxu3  ;;  %v3073_v13 = vpop.f32.mrf.mxu2 }
 0x486   : > { %v2898_v9 = vadd.f32 %v2897_v12, %v2874_v50  ;;  %5898 = vmatmul.msk.f32.vlgmr.msra.gmra.mxu3 %vm2564_vm5, %v3073_v13  ;;  %5902 = vmatmul.msk.f32.vlgmr.msra.gmra.mxu0 %vm2564_vm5, %v3073_v13  ;;  %v3688_v50 = vld [vmem:[#allocation45 + $0xc8] sm:$0xff]  ;;  %v3685_v12 = vld [vmem:[#allocation45 + $0xb0] sm:$0xff] }
 0x487   : > { %v3684_v13 = vld [vmem:[#allocation45 + $0xa8] sm:$0xff]  ;;  %3460 = vmatpush.msra.mxu0 %v5930_v36 }
 0x488   : > { %v2926_v38 = vadd.f32 %v2923_v27, %v2898_v9  ;;  %v3215_v27 = vld [vmem:[#allocation37 + $0x48] sm:$0xff]  ;;  %v3683_v9 = vld [vmem:[#allocation45 + $0xa0] sm:$0xff]  ;;  %v4080_v36 = vld [vmem:[%s9521_s26 + $0xa0] sm:$0xff] }
 0x489   : > { %v3227_v6 = vld [vmem:[#allocation5] sm:$0xf]  ;;  %3461 = vmatpush.msra.mxu0 %v5928_v34  ;;  %v4076_v34 = vld [vmem:[%s9521_s26 + $0x80] sm:$0xff] }
 0x48a   : > { %v2931_v29 = vadd.f32 %v6430_v25, %v2926_v38  ;;  %5914 = vmatpush.msk.msrb.mxu3 %vm2656_vm3, %v3227_v6  ;;  %v3682_v25 = vld [vmem:[#allocation45 + $0x98] sm:$0xff]  ;;  %v3681_v38 = vld [vmem:[#allocation45 + $0x90] sm:$0xff]  ;;  %v3679_v6 = vld [vmem:[#allocation45 + $0x80] sm:$0xff] }
 0x48b   : > { %v3880_v44 = vld [vmem:[#allocation5] sm:$0xf] }
 0x48c   : > { %3431 = vmatpush.msra.mxu3 %v5929_v31  ;;  %2933 = vst.msk [vmem:[#allocation6] sm:$0x3] %vm2932_vm9, %v2931_v29  ;;  %v3680_v31 = vld [vmem:[#allocation45 + $0x88] sm:$0xff] }
 0x48d   : > { %v3076_v7 = vpop.f32.mrf.mxu2 }
 0x48e   : > { %3432 = vmatpush.msra.mxu3 %v5927_v51  ;;  %5903 = vmatmul.msk.f32.gmra.mxu0 %vm2564_vm5, %v3076_v7 }
 0x48f   : > { %5899 = vmatmul.msk.f32.gmra.mxu3 %vm2564_vm5, %v3076_v7 }
 0x493   : > { %v3360_v39 = vld [vmem:[#allocation6] sm:$0x3] }
 0x494   : > { %5931 = vmatpush.msk.msrb.mxu2 %vm2801_vm4, %v3360_v39 }
 0x495   : > { %v3079_v43 = vpop.f32.mrf.mxu2  ;;  %5932 = vmatmul.msk.f32.vlgmr.msrb.gmra.mxu2 %vm2797_vm6, %v3351_v53 }
 0x496   : > { %3744 = vmatpush.msra.mxu2 %v8763_v20  ;;  %5904 = vmatmul.msk.f32.gmra.mxu0 %vm2564_vm5, %v3079_v43 }
 0x497   : > { %5900 = vmatmul.msk.f32.gmra.mxu3 %vm2564_vm5, %v3079_v43  ;;  %v3678_v43 = vld [vmem:[#allocation45 + $0x78] sm:$0xff] }
 0x498   : > { %3745 = vmatpush.msra.mxu2 %v8767_v46 }
 0x49a   : > { %3746 = vmatpush.msra.mxu2 %v8772_v49 }
 0x49c   : > { %3747 = vmatpush.msra.mxu2 %v8775_v54 }
 0x49d   : > { %v3082_v60 = vpop.f32.mrf.mxu2  ;;  %5933 = vmatmul.msk.f32.gmra.mxu2 %vm2797_vm6, %v3352_v55  ;;  %v3676_v55 = vld [vmem:[#allocation45 + $0x68] sm:$0xff] }
 0x49e   : > { %3849 = vmatpush.msrb.mxu2 %v3694_v30  ;;  %5905 = vmatmul.msk.f32.gmra.mxu0 %vm2564_vm5, %v3082_v60  ;;  %v3677_v30 = vld [vmem:[#allocation45 + $0x70] sm:$0xff] }
 0x49f   : > { %5901 = vmatmul.msk.f32.gmra.mxu3 %vm2564_vm5, %v3082_v60 }
 0x4a0   : > { %3850 = vmatpush.msrb.mxu2 %v3693_v59  ;;  %v3675_v59 = vld [vmem:[#allocation45 + $0x60] sm:$0xff] }
 0x4a2   : > { %3851 = vmatpush.msrb.mxu2 %v3692_v16 }
 0x4a4   : > { %3852 = vmatpush.msrb.mxu2 %v3691_v5  ;;  %v3674_v5 = vld [vmem:[#allocation45 + $0x58] sm:$0xff] }
 0x4a5   : > { %5934 = vmatmul.msk.f32.gmra.mxu2 %vm2797_vm6, %v3353_v19  ;;  %v3672_v19 = vld [vmem:[#allocation45 + $0x48] sm:$0xff] }
 0x4a6   : > { %3853 = vmatpush.msrb.mxu2 %v3690_v18  ;;  %v3673_v18 = vld [vmem:[#allocation45 + $0x50] sm:$0xff] }
 0x4a7   : > { %5915 = vmatmul.msk.f32.vlgmr.msrb.gmra.mxu3 %vm2652_vm7, %v3214_v22  ;;  %v3756_v22 = vld [vmem:[#allocation39 + $0x10] sm:$0xff] }
 0x4a8   : > { %3789 = vmatpush.msrb.mxu3 %v8630_v26  ;;  %3854 = vmatpush.msrb.mxu2 %v3689_v23  ;;  %v8787_v26 = vld [vmem:[#allocation39] sm:$0xff]  ;;  %v3671_v23 = vld [vmem:[#allocation45 + $0x40] sm:$0xff] }
 0x4aa   : > { %3855 = vmatpush.msrb.mxu2 %v3688_v50 }
 0x4ac   : > { %3856 = vmatpush.msrb.mxu2 %v3687_v21 }
 0x4ad   : > { %5935 = vmatmul.msk.f32.gmra.mxu2 %vm2797_vm6, %v3354_v41  ;;  %v3950_v41 = vld [vmem:[#allocation6] sm:$0x3] }
 0x4ae   : > { %3857 = vmatpush.msrb.mxu2 %v3686_v17  ;;  %v4091_v17 = vld [vmem:[%s9521_s26 + $0xf8] sm:$0xff] }
 0x4af   : > { %5916 = vmatmul.msk.f32.gmra.mxu3 %vm2652_vm7, %v3215_v27  ;;  %v3670_v27 = vld [vmem:[#allocation45 + $0x38] sm:$0xff] }
 0x4b0   : > { %3858 = vmatpush.msrb.mxu2 %v3685_v12  ;;  %v4090_v12 = vld [vmem:[%s9521_s26 + $0xf0] sm:$0xff] }
 0x4b2   : > { %3859 = vmatpush.msrb.mxu2 %v3684_v13  ;;  %v3669_v13 = vld [vmem:[#allocation45 + $0x30] sm:$0xff] }
 0x4b4   : > { %3860 = vmatpush.msrb.mxu2 %v3683_v9  ;;  %v4089_v9 = vld [vmem:[%s9521_s26 + $0xe8] sm:$0xff] }
 0x4b5   : > { %5954 = vmatmul.msk.f32.vlgmr.msra.gmra.mxu2 %vm1583_vm0, %v8787_v26 }
 0x4b6   : > { %3861 = vmatpush.msrb.mxu2 %v3682_v25  ;;  %v3668_v25 = vld [vmem:[#allocation45 + $0x28] sm:$0xff] }
 0x4b7   : > { %5917 = vmatmul.msk.f32.gmra.mxu3 %vm2652_vm7, %v3216_v10  ;;  %v4088_v10 = vld [vmem:[%s9521_s26 + $0xe0] sm:$0xff] }
 0x4b8   : > { %3862 = vmatpush.msrb.mxu2 %v3681_v38  ;;  %v3757_v38 = vld [vmem:[#allocation39 + $0x18] sm:$0xff] }
 0x4ba   : > { %3863 = vmatpush.msrb.mxu2 %v3680_v31 }
 0x4bc   : > { %3864 = vmatpush.msrb.mxu2 %v3679_v6  ;;  %v3667_v6 = vld [vmem:[#allocation45 + $0x20] sm:$0xff] }
 0x4bd   : > { %5955 = vmatmul.msk.f32.gmra.mxu2 %vm1583_vm0, %v8792_v3 }
 0x4be   : > { %4135 = vmatpush.msra.mxu2 %v8763_v20 }
 0x4bf   : > { %5918 = vmatmul.msk.f32.gmra.mxu3 %vm2652_vm7, %v3217_v63  ;;  %v4087_v63 = vld [vmem:[%s9521_s26 + $0xd8] sm:$0xff] }
 0x4c0   : > { %4136 = vmatpush.msra.mxu2 %v8767_v46 }
 0x4c2   : > { %4137 = vmatpush.msra.mxu2 %v8772_v49 }
 0x4c4   : > { %4138 = vmatpush.msra.mxu2 %v8775_v54 }
 0x4ec   : > { %v3201_v29 = vpop.f32.mrf.mxu2 }
 0x4f4   : > { %v3204_v51 = vpop.f32.mrf.mxu2 }
 0x4fc   : > { %v3207_v11 = vpop.f32.mrf.mxu2 }
 0x503   : > { %v3143_v14 = vpop.f32.mrf.mxu0 }
 0x504   : > { %v8803_v7 = vadd.f32 %v3201_v29, %v3143_v14  ;;  %v3210_v2 = vpop.f32.mrf.mxu2  ;;  %v4085_v14 = vld [vmem:[%s9521_s26 + $0xc8] sm:$0xff] }
 0x509   : > { %v8806_v35 = vpop.f32.mrf.mxu3 }
 0x50b   : > { %v3146_v8 = vpop.f32.mrf.mxu0 }
 0x50c   : > { %v8809_v37 = vadd.f32 %v3204_v51, %v3146_v8  ;;  %v3666_v51 = vld [vmem:[#allocation45 + $0x18] sm:$0xff]  ;;  %v8859_v8 = vld [vmem:[#allocation40] sm:$0xff] }
 0x512   : > { %v8811_v52 = vpop.f32.mrf.mxu3 }
 0x513   : > { %v3149_v24 = vpop.f32.mrf.mxu0 }
 0x514   : > { %v8813_v33 = vadd.f32 %v3207_v11, %v3149_v24  ;;  %v3664_v11 = vld [vmem:[#allocation45 + $0x8] sm:$0xff]  ;;  %v4083_v24 = vld [vmem:[%s9521_s26 + $0xb8] sm:$0xff] }
 0x518   : > { %v8815_v28 = vpop.f32.mrf.mxu2 }
 0x519   : > { %5936 = vmatmul.msk.f32.vlgmr.msra.gmra.mxu3 %vm2305_vm1, %v8815_v28 }
 0x51a   : > { %v8817_v57 = vpop.f32.mrf.mxu3  ;;  %5960 = vmatpush.msk.msra.mxu3 %vm2656_vm3, %v3880_v44  ;;  %v4082_v44 = vld [vmem:[%s9521_s26 + $0xb0] sm:$0xff] }
 0x51b   : > { %v3152_v0 = vpop.f32.mrf.mxu0 }
 0x51c   : > { %v8822_v47 = vadd.f32 %v3210_v2, %v3152_v0  ;;  %v3663_v2 = vld [vmem:[#allocation45] sm:$0xff]  ;;  %v4081_v0 = vld [vmem:[%s9521_s26 + $0xa8] sm:$0xff] }
 0x520   : > { %v8824_v53 = vpop.f32.mrf.mxu2 }
 0x521   : > { %5937 = vmatmul.msk.f32.gmra.mxu3 %vm2305_vm1, %v8824_v53 }
 0x522   : > { %v8826_v39 = vpop.f32.mrf.mxu3 }
 0x528   : > { %v8831_v40 = vpop.f32.mrf.mxu2 }
 0x529   : > { %5938 = vmatmul.msk.f32.gmra.mxu3 %vm2305_vm1, %v8831_v40 }
 0x52a   : > { %v3260_v15 = vpop.f32.mrf.mxu3 }
 0x52b   : > { %5919 = vmatmul.msk.f32.vlgmr.msrb.gmra.mxu0 %vm1583_vm0, %v3260_v15  ;;  %5923 = vmatmul.msk.f32.vlgmr.msrb.gmra.mxu1 %vm1583_vm0, %v3260_v15  ;;  %v3874_v15 = vld [vmem:[#allocation39 + $0x28] sm:$0xff] }
 0x52c   : > { %3826 = vmatpush.msrb.mxu1 %v3678_v43  ;;  %v4079_v43 = vld [vmem:[%s9521_s26 + $0x98] sm:$0xff] }
 0x52e   : > { %3827 = vmatpush.msrb.mxu1 %v3677_v30  ;;  %v3945_v30 = vld [vmem:[#allocation39 + $0x30] sm:$0xff] }
 0x530   : > { %3828 = vmatpush.msrb.mxu1 %v3676_v55  ;;  %v8838_v60 = vpop.f32.mrf.mxu2  ;;  %v3946_v55 = vld [vmem:[#allocation39 + $0x38] sm:$0xff] }
 0x531   : > { %5939 = vmatmul.msk.f32.gmra.mxu3 %vm2305_vm1, %v8838_v60 }
 0x532   : > { %v3263_v16 = vpop.f32.mrf.mxu3  ;;  %3829 = vmatpush.msrb.mxu1 %v3675_v59  ;;  %v3766_v59 = vld [vmem:[#allocation45 + $0x138] sm:$0xff] }
 0x533   : > { %5920 = vmatmul.msk.f32.gmra.mxu0 %vm1583_vm0, %v3263_v16  ;;  %5924 = vmatmul.msk.f32.gmra.mxu1 %vm1583_vm0, %v3263_v16  ;;  %v3765_v16 = vld [vmem:[#allocation45 + $0x130] sm:$0xff] }
 0x534   : > { %3830 = vmatpush.msrb.mxu1 %v3674_v5  ;;  %3811 = vmatpush.msrb.mxu0 %v3766_v59  ;;  %v3764_v5 = vld [vmem:[#allocation45 + $0x128] sm:$0xff] }
 0x536   : > { %3831 = vmatpush.msrb.mxu1 %v3673_v18  ;;  %3812 = vmatpush.msrb.mxu0 %v3765_v16 }
 0x538   : > { %3832 = vmatpush.msrb.mxu1 %v3672_v19  ;;  %v3749_v50 = vpop.f32.mrf.mxu2  ;;  %3813 = vmatpush.msrb.mxu0 %v3764_v5  ;;  %v3763_v19 = vld [vmem:[#allocation45 + $0x120] sm:$0xff] }
 0x539   : > { %5956 = vmatmul.msk.f32.vlgmr.msrb.gmra.mxu3 %vm2498_vm2, %v3756_v22  ;;  %3865 = vmatmul.f32.vlgmr.msrb.gmra.mxu2 %v3749_v50  ;;  %v3761_v22 = vld [vmem:[#allocation45 + $0x110] sm:$0xff]  ;;  %v3760_v50 = vld [vmem:[#allocation45 + $0x108] sm:$0xff] }
 0x53a   : > { %v3266_v21 = vpop.f32.mrf.mxu3  ;;  %3833 = vmatpush.msrb.mxu1 %v3671_v23  ;;  %5965 = vmatpush.msk.msrb.mxu3 %vm2801_vm4, %v3950_v41 }
 0x53b   : > { %4227 = vmatpush.msrb.mxu2 %v4091_v17  ;;  %5921 = vmatmul.msk.f32.gmra.mxu0 %vm1583_vm0, %v3266_v21 }
 0x53c   : > { %5925 = vmatmul.msk.f32.gmra.mxu1 %vm1583_vm0, %v3266_v21  ;;  %3814 = vmatpush.msrb.mxu0 %v3763_v19  ;;  %v3759_v21 = vld [vmem:[#allocation45 + $0x100] sm:$0xff] }
 0x53d   : > { %3834 = vmatpush.msrb.mxu1 %v3670_v27  ;;  %4228 = vmatpush.msrb.mxu2 %v4090_v12  ;;  %v3879_v27 = vld [vmem:[#allocation45 + $0x218] sm:$0xff] }
 0x53f   : > { %3835 = vmatpush.msrb.mxu1 %v3669_v13  ;;  %4229 = vmatpush.msrb.mxu2 %v4089_v9 }
 0x540   : > { %v3752_v31 = vpop.f32.mrf.mxu2 }
 0x541   : > { %3836 = vmatpush.msrb.mxu1 %v3668_v25  ;;  %4230 = vmatpush.msrb.mxu2 %v4088_v10  ;;  %v3878_v25 = vld [vmem:[#allocation45 + $0x210] sm:$0xff] }
 0x542   : > { %v3269_v29 = vpop.f32.mrf.mxu3  ;;  %5957 = vmatmul.msk.f32.gmra.mxu3 %vm2498_vm2, %v3757_v38  ;;  %3868 = vmatmul.f32.gmra.mxu2 %v3752_v31  ;;  %v3877_v38 = vld [vmem:[#allocation45 + $0x208] sm:$0xff] }
 0x543   : > { %3837 = vmatpush.msrb.mxu1 %v3667_v6  ;;  %4231 = vmatpush.msrb.mxu2 %v4087_v63  ;;  %v3876_v63 = vld [vmem:[#allocation45 + $0x200] sm:$0xff] }
 0x544   : > { %5922 = vmatmul.msk.f32.gmra.mxu0 %vm1583_vm0, %v3269_v29  ;;  %5926 = vmatmul.msk.f32.gmra.mxu1 %vm1583_vm0, %v3269_v29 }
 0x545   : > { %3838 = vmatpush.msrb.mxu1 %v3666_v51  ;;  %4232 = vmatpush.msrb.mxu2 %v4086_v61 }
 0x547   : > { %3839 = vmatpush.msrb.mxu1 %v3665_v62  ;;  %4233 = vmatpush.msrb.mxu2 %v4085_v14 }
 0x549   : > { %3840 = vmatpush.msrb.mxu1 %v3664_v11  ;;  %4234 = vmatpush.msrb.mxu2 %v4084_v48 }
 0x54a   : > { %5961 = vmatmul.msk.f32.vlgmr.msra.gmra.mxu3 %vm2652_vm7, %v3873_v58  ;;  %5973 = vmatmul.msk.f32.vlgmr.msra.gmra.mxu2 %vm1583_vm0, %v8859_v8 }
 0x54b   : > { %3841 = vmatpush.msrb.mxu1 %v3663_v2  ;;  %4235 = vmatpush.msrb.mxu2 %v4083_v24 }
 0x54c   : > { %5940 = vmatmul.msk.f32.vlgmr.msra.gmra.mxu0 %vm2305_vm1, %v8815_v28  ;;  %5952 = vmatmul.msk.f32.vlgmr.msra.gmra.mxu1 %vm1583_vm0, %v8787_v26  ;;  %v4078_v28 = vld [vmem:[%s9521_s26 + $0x90] sm:$0xff]  ;;  %v4077_v26 = vld [vmem:[%s9521_s26 + $0x88] sm:$0xff] }
 0x54d   : > { %4115 = vmatpush.msra.mxu1 %v8716_v56  ;;  %4236 = vmatpush.msrb.mxu2 %v4082_v44 }
 0x54f   : > { %4116 = vmatpush.msra.mxu1 %v8718_v45  ;;  %4237 = vmatpush.msrb.mxu2 %v4081_v0 }
 0x551   : > { %4117 = vmatpush.msra.mxu1 %v8721_v1  ;;  %4238 = vmatpush.msrb.mxu2 %v4080_v36 }
 0x552   : > { %5962 = vmatmul.msk.f32.gmra.mxu3 %vm2652_vm7, %v3874_v15 }
 0x553   : > { %4118 = vmatpush.msra.mxu1 %v8724_v4  ;;  %4239 = vmatpush.msrb.mxu2 %v4079_v43 }
 0x554   : > { %5941 = vmatmul.msk.f32.gmra.mxu0 %vm2305_vm1, %v8824_v53  ;;  %5953 = vmatmul.msk.f32.gmra.mxu1 %vm1583_vm0, %v8792_v3  ;;  %v3172_v3 = vpop.f32.mrf.mxu1 }
 0x555   : > { %4240 = vmatpush.msrb.mxu2 %v4078_v28  ;;  %v3173_v41 = vadd.f32 %v3172_v3, %v8806_v35  ;;  %v3948_v3 = vld [vmem:[#allocation45 + $0x300] sm:$0xff] }
 0x557   : > { %4241 = vmatpush.msrb.mxu2 %v4077_v26  ;;  %v3949_v26 = vld [vmem:[#allocation45 + $0x308] sm:$0xff] }
 0x559   : > { %4242 = vmatpush.msrb.mxu2 %v4076_v34 }
 0x55a   : > { %5966 = vmatmul.msk.f32.vlgmr.msrb.gmra.mxu3 %vm2797_vm6, %v3945_v30 }
 0x55b   : > { %4506 = vmatpush.msra.mxu2 %v8611_v42 }
 0x55c   : > { %5942 = vmatmul.msk.f32.gmra.mxu0 %vm2305_vm1, %v8831_v40  ;;  %v3175_v53 = vpop.f32.mrf.mxu1  ;;  %v3762_v40 = vld [vmem:[#allocation45 + $0x118] sm:$0xff] }
 0x55d   : > { %4507 = vmatpush.msra.mxu2 %v8613_v32  ;;  %3815 = vmatpush.msrb.mxu0 %v3762_v40  ;;  %v3176_v35 = vadd.f32 %v3175_v53, %v8811_v52 }
 0x55f   : > { %3816 = vmatpush.msrb.mxu0 %v3761_v22 }
 0x561   : > { %3817 = vmatpush.msrb.mxu0 %v3760_v50 }
 0x562   : > { %5967 = vmatmul.msk.f32.gmra.mxu3 %vm2797_vm6, %v3946_v55 }
 0x563   : > { %3818 = vmatpush.msrb.mxu0 %v3759_v21 }
 0x564   : > { %5943 = vmatmul.msk.f32.gmra.mxu0 %vm2305_vm1, %v8838_v60  ;;  %v3178_v18 = vpop.f32.mrf.mxu1 }
 0x565   : > { %3931 = vmatpush.msra.mxu0 %v3879_v27  ;;  %v3179_v44 = vadd.f32 %v3178_v18, %v8817_v57 }
 0x567   : > { %3932 = vmatpush.msra.mxu0 %v3878_v25 }
 0x569   : > { %3933 = vmatpush.msra.mxu0 %v3877_v38 }
 0x56b   : > { %3934 = vmatpush.msra.mxu0 %v3876_v63 }
 0x56c   : > { %v3181_v60 = vpop.f32.mrf.mxu1 }
 0x56d   : > { %v3182_v59 = vadd.f32 %v3181_v60, %v8826_v39 }
 0x59c   : > { %v3434_v23 = vpop.f32.mrf.mxu3 }
 0x5a4   : > { %v3437_v17 = vpop.f32.mrf.mxu3 }
 0x5a8   : > { %v3301_v12 = vpop.f32.mrf.mxu0  ;;  %v8894_v9 = vpop.f32.mrf.mxu1 }
 0x5a9   : > { %v3342_v13 = vadd.f32 %v3301_v12, %v3173_v41 }
 0x5ab   : > { %v3475_v10 = vadd.f32 %v3434_v23, %v3342_v13 }
 0x5ac   : > { %v3440_v6 = vpop.f32.mrf.mxu3 }
 0x5ad   : > { %v3483_v31 = vmul.f32 %v3475_v10, %v8724_v4  ;;  %v3343_v10 = vadd.f32 %v8894_v9, %v8803_v7 }
 0x5af   : > { %v3491_v29 = vadd.f32 %v3483_v31, %v8724_v4 }
 0x5b0   : > { %v3304_v61 = vpop.f32.mrf.mxu0  ;;  %v8899_v62 = vpop.f32.mrf.mxu1 }
 0x5b1   : > { %v5944_v51 = vmul.f32 -1.442695, %v3491_v29  ;;  %v3344_v14 = vadd.f32 %v3304_v61, %v3176_v35 }
 0x5b3   : > { %6431 = vpow2.f32 %v5944_v51  ;;  %v3477_v11 = vadd.f32 %v3437_v17, %v3344_v14 }
 0x5b4   : > { %v3443_v58 = vpop.f32.mrf.mxu3 }
 0x5b5   : > { %v3485_v48 = vmul.f32 %v3477_v11, %v8721_v1  ;;  %v4075_v11 = vld [vmem:[%s9521_s26 + $0x78] sm:$0xff] }
 0x5b7   : > { %v3493_v2 = vadd.f32 %v3485_v48, %v8721_v1 }
 0x5b8   : > { %v3307_v15 = vpop.f32.mrf.mxu0 }
 0x5b9   : > { %v6432_v24 = vpop.eup %6431  ;;  %v5946_v36 = vmul.f32 -1.442695, %v3493_v2  ;;  %v3346_v43 = vadd.f32 %v3307_v15, %v3179_v44  ;;  %v8904_v52 = vpop.f32.mrf.mxu1 }
 0x5ba   : > { %v3523_v0 = vadd.f32 1.0, %v6432_v24 }
 0x5bb   : > { %v3479_v28 = vadd.f32 %v3440_v6, %v3346_v43 }
 0x5bc   : > { %6433 = vrcp.f32 %v3523_v0  ;;  %v3791_v34 = vpop.f32.mrf.mxu3  ;;  %v8907_v55 = vpop.f32.mrf.mxu2  ;;  %v3542_v21 = vand.u32 2147483648, %v3523_v0  ;;  %v3540_v41 = vand.u32 2147483647, %v3523_v0  ;;  %vm3536_vm11 = vweird.f32 %v3523_v0 }
 0x5bd   : > { %6435 = vpow2.f32 %v5946_v36  ;;  %v3487_v30 = vmul.f32 %v3479_v28, %v8718_v45  ;;  %5958 = vmatmul.msk.f32.vlgmr.msrb.gmra.mxu0 %vm2564_vm5, %v3791_v34  ;;  %v4074_v36 = vld [vmem:[%s9521_s26 + $0x70] sm:$0xff]  ;;  %v4073_v34 = vld [vmem:[%s9521_s26 + $0x68] sm:$0xff] }
 0x5be   : > { %4003 = vmatpush.msrb.mxu0 %v3949_v26  ;;  %v3543_v25 = vor.u32 1.1754944e-38, %v3542_v21  ;;  %vm3541_vm13 = vcmp.eq.f32.partialorder %v3540_v41, 8.507059e+37  ;;  %v3345_v26 = vadd.f32 %v8899_v62, %v8809_v37  ;;  %v4469_v62 = vld [vmem:[#allocation42 + $0x4] sm:$0xf]  ;;  %v6030_v41 = vld [vmem:[%s9522_s30 + $0x238] sm:$0xff] }
 0x5bf   : > { %v3495_v57 = vadd.f32 %v3487_v30, %v8718_v45 }
 0x5c0   : > { %4004 = vmatpush.msrb.mxu0 %v3948_v3 }
 0x5c1   : > { %v5948_v18 = vmul.f32 -1.442695, %v3495_v57  ;;  %v3310_v19 = vpop.f32.mrf.mxu0  ;;  %v8912_v40 = vpop.f32.mrf.mxu1 }
 0x5c2   : > { %v6434_v53 = vpop.eup %6433  ;;  %v3348_v23 = vadd.f32 %v3310_v19, %v3182_v59 }
 0x5c3   : > { %v6436_v16 = vpop.eup %6435  ;;  %v3532_v5 = vmul.f32 %v6434_v53, %v3523_v0  ;;  %6437 = vpow2.f32 %v5948_v18  ;;  %vm3537_vm10 = vweird.f32 %v6434_v53  ;;  %v8939_v0 = vld [vmem:[#allocation4] sm:$0xff] }
 0x5c4   : > { %v8914_v22 = vadd.f32 1.0, %v6436_v16  ;;  %v3481_v27 = vadd.f32 %v3443_v58, %v3348_v23  ;;  %vm3538_vm12 = vmor %vm3536_vm11, %vm3537_vm10  ;;  %v4072_v18 = vld [vmem:[%s9521_s26 + $0x60] sm:$0xff] }
 0x5c5   : > { %v3533_v50 = vsub.f32 1.0, %v3532_v5  ;;  %v3794_v39 = vpop.f32.mrf.mxu3  ;;  %v8917_v60 = vpop.f32.mrf.mxu2 }
 0x5c6   : > { %6439 = vrcp.f32 %v8914_v22  ;;  %5959 = vmatmul.msk.f32.gmra.mxu0 %vm2564_vm5, %v3794_v39  ;;  %v3489_v13 = vmul.f32 %v3481_v27, %v8716_v56  ;;  %v3572_v44 = vand.u32 2147483648, %v8914_v22  ;;  %v3570_v43 = vand.u32 2147483647, %v8914_v22 }
 0x5c7   : > { %v3534_v17 = vmul.f32 %v6434_v53, %v3533_v50  ;;  %vm3566_vm15 = vweird.f32 %v8914_v22 }
 0x5c8   : > { %v3497_v6 = vadd.f32 %v3489_v13, %v8716_v56  ;;  %v3573_v16 = vor.u32 1.1754944e-38, %v3572_v44  ;;  %vm3571_vm11 = vcmp.eq.f32.partialorder %v3570_v43, 8.507059e+37  ;;  %v4070_v13 = vld [vmem:[%s9521_s26 + $0x50] sm:$0xff]  ;;  %v4067_v44 = vld [vmem:[%s9521_s26 + $0x38] sm:$0xff] }
 0x5c9   : > { %v3535_v12 = vadd.f32 %v6434_v53, %v3534_v17  ;;  %v6438_v38 = vpop.eup %6437  ;;  %v3463_v63 = vpop.f32.mrf.mxu0  ;;  %v4071_v17 = vld [vmem:[%s9521_s26 + $0x58] sm:$0xff] }
 0x5ca   : > { %v3726_v29 = vpop.f32.mrf.mxu1  ;;  %v8924_v61 = vadd.f32 1.0, %v6438_v38  ;;  %v3476_v14 = vadd.f32 %v3463_v63, %v3343_v10  ;;  %v5950_v9 = vmul.f32 -1.442695, %v3497_v6  ;;  %v3347_v6 = vadd.f32 %v8904_v52, %v8813_v33  ;;  %v4069_v63 = vld [vmem:[%s9521_s26 + $0x48] sm:$0xff]  ;;  %v4068_v52 = vld [vmem:[%s9521_s26 + $0x40] sm:$0xff] }
 0x5cb   : > { %v3539_v31 = vsel %vm3538_vm12, %v6434_v53, %v3535_v12  ;;  %3842 = vmatmul.f32.vlgmr.msrb.gmra.mxu1 %v3726_v29  ;;  %v4254_v33 = vld [vmem:[#allocation5] sm:$0xf] }
 0x5cc   : > { %v6440_v35 = vpop.eup %6439  ;;  %v3544_v51 = vsel %vm3541_vm13, %v3543_v25, %v3539_v31  ;;  %4181 = vmatpush.msrb.mxu1 %v8611_v42  ;;  %6441 = vrcp.f32 %v8924_v61  ;;  %v3484_v58 = vmul.f32 %v3476_v14, %v8775_v54  ;;  %v3602_v12 = vand.u32 2147483648, %v8924_v61  ;;  %v6029_v25 = vld [vmem:[%s9522_s30 + $0x230] sm:$0xff] }
 0x5cd   : > { %3651 = vst [vmem:[%s8928_s20] sm:$0xff] %v3544_v51  ;;  %v3562_v7 = vmul.f32 %v6440_v35, %v8914_v22  ;;  %6443 = vpow2.f32 %v5950_v9  ;;  %v3907_v2 = vpop.f32.mrf.mxu3  ;;  %v4140_v24 = vpop.f32.mrf.mxu2  ;;  %vm3567_vm14 = vweird.f32 %v6440_v35  ;;  %v3600_v38 = vand.u32 2147483647, %v8924_v61 }
 0x5ce   : > { %4182 = vmatpush.msrb.mxu1 %v8613_v32  ;;  %5963 = vmatmul.msk.f32.vlgmr.msra.gmra.mxu0 %vm1583_vm0, %v3907_v2  ;;  %v3492_v28 = vadd.f32 %v3484_v58, %v8775_v54  ;;  %vm3568_vm10 = vmor %vm3566_vm15, %vm3567_vm14  ;;  %vm3596_vm13 = vweird.f32 %v8924_v61  ;;  %v3603_v9 = vor.u32 1.1754944e-38, %v3602_v12  ;;  %v6027_v58 = vld [vmem:[%s9522_s30 + $0x220] sm:$0xff] }
 0x5cf   : > { %v3563_v48 = vsub.f32 1.0, %v3562_v7  ;;  %4243 = vmatmul.f32.vlgmr.msrb.gmra.mxu2 %v4140_v24  ;;  %4207 = vmatpush.msra.mxu0 %v4075_v11  ;;  %v6028_v7 = vld [vmem:[%s9522_s30 + $0x228] sm:$0xff]  ;;  %vm3601_vm15 = vcmp.eq.f32.partialorder %v3600_v38, 8.507059e+37  ;;  %v6023_v12 = vld [vmem:[%s9522_s30 + $0x200] sm:$0xff] }
 0x5d0   : > { %4602 = vmatpush.msrb.mxu2 %v8939_v0  ;;  %v5945_v3 = vmul.f32 -1.442695, %v3492_v28  ;;  %v6026_v28 = vld [vmem:[%s9522_s30 + $0x218] sm:$0xff] }
 0x5d1   : > { %v3564_v15 = vmul.f32 %v6440_v35, %v3563_v48  ;;  %v3466_v57 = vpop.f32.mrf.mxu0  ;;  %4208 = vmatpush.msra.mxu0 %v4074_v36 }
 0x5d2   : > { %v3729_v53 = vpop.f32.mrf.mxu1  ;;  %v6442_v59 = vpop.eup %6441  ;;  %v3478_v5 = vadd.f32 %v3466_v57, %v3345_v26  ;;  %6445 = vpow2.f32 %v5945_v3  ;;  %v4066_v26 = vld [vmem:[%s9521_s26 + $0x30] sm:$0xff]  ;;  %v4144_v57 = vld [vmem:[#allocation40 + $0x8] sm:$0xff] }
 0x5d3   : > { %v3565_v30 = vadd.f32 %v6440_v35, %v3564_v15  ;;  %3845 = vmatmul.f32.gmra.mxu1 %v3729_v53  ;;  %v6444_v19 = vpop.eup %6443  ;;  %v3592_v37 = vmul.f32 %v6442_v59, %v8924_v61  ;;  %4209 = vmatpush.msra.mxu0 %v4073_v34  ;;  %vm3597_vm12 = vweird.f32 %v6442_v59  ;;  %v6025_v3 = vld [vmem:[%s9522_s30 + $0x210] sm:$0xff] }
 0x5d4   : > { %v8951_v50 = vadd.f32 1.0, %v6444_v19  ;;  %v3486_v21 = vmul.f32 %v3478_v5, %v8772_v49  ;;  %vm3598_vm14 = vmor %vm3596_vm13, %vm3597_vm12  ;;  %v5994_v5 = vld [vmem:[%s9521_s26 + $0x218] sm:$0xff] }
 0x5d5   : > { %v3569_v23 = vsel %vm3568_vm10, %v6440_v35, %v3565_v30  ;;  %v3593_v27 = vsub.f32 1.0, %v3592_v37  ;;  %4210 = vmatpush.msra.mxu0 %v4072_v18  ;;  %v3910_v39 = vpop.f32.mrf.mxu3 }
 0x5d6   : > { %v3574_v22 = vsel %vm3571_vm11, %v3573_v16, %v3569_v23  ;;  %6447 = vrcp.f32 %v8951_v50  ;;  %5964 = vmatmul.msk.f32.gmra.mxu0 %vm1583_vm0, %v3910_v39  ;;  %v3494_v31 = vadd.f32 %v3486_v21, %v8772_v49  ;;  %v3632_v53 = vand.u32 2147483648, %v8951_v50  ;;  %v4065_v16 = vld [vmem:[%s9521_s26 + $0x28] sm:$0xff] }
 0x5d7   : > { %3653 = vst [vmem:[%s8928_s20 + $0x10] sm:$0xff] %v3574_v22  ;;  %6022 = vmatmul.msk.f32.vlgmr.msra.gmra.mxu2 %vm2305_vm1, %v4469_v62  ;;  %v3594_v10 = vmul.f32 %v6442_v59, %v3593_v27  ;;  %4211 = vmatpush.msra.mxu0 %v4071_v17  ;;  %v3630_v23 = vand.u32 2147483647, %v8951_v50  ;;  %v6024_v22 = vld [vmem:[%s9522_s30 + $0x208] sm:$0xff]  ;;  %v4064_v17 = vld [vmem:[%s9521_s26 + $0x20] sm:$0xff]  ;;  %vm3626_vm11 = vweird.f32 %v8951_v50 }
 0x5d8   : > { %4618 = vmatpush.msra.mxu2 %v6030_v41  ;;  %v6446_v29 = vpop.eup %6445  ;;  %v5947_v51 = vmul.f32 -1.442695, %v3494_v31  ;;  %v5993_v41 = vld [vmem:[%s9521_s26 + $0x210] sm:$0xff] }
 0x5d9   : > { %v3595_v35 = vadd.f32 %v6442_v59, %v3594_v10  ;;  %v3469_v14 = vpop.f32.mrf.mxu0  ;;  %4212 = vmatpush.msra.mxu0 %v4070_v13  ;;  %v8971_v11 = vadd.f32 1.0, %v6446_v29  ;;  %v3633_v13 = vor.u32 1.1754944e-38, %v3632_v53  ;;  %vm3631_vm13 = vcmp.eq.f32.partialorder %v3630_v23, 8.507059e+37 }
 0x5da   : > { %4619 = vmatpush.msra.mxu2 %v6029_v25  ;;  %v3480_v48 = vadd.f32 %v3469_v14, %v3347_v6  ;;  %6449 = vpow2.f32 %v5947_v51  ;;  %v4063_v25 = vld [vmem:[%s9521_s26 + $0x18] sm:$0xff]  ;;  %v5992_v6 = vld [vmem:[%s9521_s26 + $0x208] sm:$0xff]  ;;  %v4062_v51 = vld [vmem:[%s9521_s26 + $0x10] sm:$0xff] }
 0x5db   : > { %5972 = vmatmul.msk.f32.vlgmr.msra.gmra.mxu1 %vm1583_vm0, %v8859_v8  ;;  %v3599_v61 = vsel %vm3598_vm14, %v6442_v59, %v3595_v35  ;;  %4213 = vmatpush.msra.mxu0 %v4069_v63  ;;  %6451 = vrcp.f32 %v8971_v11  ;;  %v4573_v8 = vld [vmem:[#allocation42 + $0x8] sm:$0xf]  ;;  %v3349_v59 = vadd.f32 %v8912_v40, %v8822_v47  ;;  %v3557_v29 = vand.u32 2147483648, %v8971_v11  ;;  %v4636_v35 = vld [vmem:[#allocation6] sm:$0x3] }
 0x5dc   : > { %5995 = vmatpush.msk.msra.mxu1 %vm2656_vm3, %v4254_v33  ;;  %v8978_v2 = vpop.eup %6447  ;;  %v3604_v24 = vsel %vm3601_vm15, %v3603_v9, %v3599_v61  ;;  %4620 = vmatpush.msra.mxu2 %v6028_v7  ;;  %v3488_v15 = vmul.f32 %v3480_v48, %v8767_v46  ;;  %v3555_v7 = vand.u32 2147483647, %v8971_v11  ;;  %v5991_v48 = vld [vmem:[%s9521_s26 + $0x200] sm:$0xff]  ;;  %v4248_v33 = vld [vmem:[#allocation40 + $0x10] sm:$0xff]  ;;  %vm3551_vm15 = vweird.f32 %v8971_v11 }
 0x5dd   : > { %3655 = vst [vmem:[%s8928_s20 + $0x20] sm:$0xff] %v3604_v24  ;;  %v3622_v36 = vmul.f32 %v8978_v2, %v8951_v50  ;;  %4214 = vmatpush.msra.mxu0 %v4068_v52  ;;  %v3977_v43 = vpop.f32.mrf.mxu3  ;;  %vm3627_vm10 = vweird.f32 %v8978_v2  ;;  %v4061_v52 = vld [vmem:[%s9521_s26 + $0x8] sm:$0xff] }
 0x5de   : > { %4621 = vmatpush.msra.mxu2 %v6027_v58  ;;  %5968 = vmatmul.msk.f32.vlgmr.msrb.gmra.mxu0 %vm2305_vm1, %v3977_v43  ;;  %v3496_v30 = vadd.f32 %v3488_v15, %v8767_v46  ;;  %vm3628_vm12 = vmor %vm3626_vm11, %vm3627_vm10  ;;  %vm3556_vm11 = vcmp.eq.f32.partialorder %v3555_v7, 8.507059e+37  ;;  %v5984_v7 = vld [vmem:[%s9521_s26 + $0x150] sm:$0xff] }
 0x5df   : > { %v3623_v34 = vsub.f32 1.0, %v3622_v36  ;;  %4215 = vmatpush.msra.mxu0 %v4067_v44  ;;  %6031 = vmatmul.msk.f32.vlgmr.msrb.gmra.mxu2 %vm2498_vm2, %v4573_v8  ;;  %v3558_v44 = vor.u32 1.1754944e-38, %v3557_v29  ;;  %v4060_v36 = vld [vmem:[%s9521_s26] sm:$0xff]  ;;  %v5988_v29 = vld [vmem:[%s9521_s26 + $0x170] sm:$0xff] }
 0x5e0   : > { %4622 = vmatpush.msra.mxu2 %v6026_v28  ;;  %v6450_v18 = vpop.eup %6449  ;;  %v5949_v37 = vmul.f32 -1.442695, %v3496_v30 }
 0x5e1   : > { %v3624_v19 = vmul.f32 %v8978_v2, %v3623_v34  ;;  %v3472_v62 = vpop.f32.mrf.mxu0  ;;  %4216 = vmatpush.msra.mxu0 %v4066_v26  ;;  %v9001_v21 = vpop.eup %6451  ;;  %v9003_v47 = vadd.f32 1.0, %v6450_v18 }
 0x5e2   : > { %v3482_v40 = vadd.f32 %v3472_v62, %v3349_v59  ;;  %4623 = vmatpush.msra.mxu2 %v6025_v3  ;;  %v3547_v39 = vmul.f32 %v9001_v21, %v8971_v11  ;;  %6453 = vpow2.f32 %v5949_v37  ;;  %vm3552_vm14 = vweird.f32 %v9001_v21  ;;  %v4310_v11 = vld [vmem:[#allocation6] sm:$0x3] }
 0x5e3   : > { %5990 = vmatmul.msk.f32.vlgmr.msrb.gmra.mxu1 %vm2305_vm1, %v4144_v57  ;;  %v3625_v27 = vadd.f32 %v8978_v2, %v3624_v19  ;;  %4217 = vmatpush.msra.mxu0 %v4065_v16  ;;  %6455 = vrcp.f32 %v9003_v47  ;;  %vm3553_vm10 = vmor %vm3551_vm15, %vm3552_vm14  ;;  %v3587_v34 = vand.u32 2147483648, %v9003_v47  ;;  %v3585_v3 = vand.u32 2147483647, %v9003_v47 }
 0x5e4   : > { %4296 = vmatpush.msrb.mxu1 %v5994_v5  ;;  %4624 = vmatpush.msra.mxu2 %v6024_v22  ;;  %v3548_v10 = vsub.f32 1.0, %v3547_v39  ;;  %v3490_v38 = vmul.f32 %v3482_v40, %v8763_v20 }
 0x5e5   : > { %v3629_v50 = vsel %vm3628_vm12, %v8978_v2, %v3625_v27  ;;  %4218 = vmatpush.msra.mxu0 %v4064_v17  ;;  %v3980_v31 = vpop.f32.mrf.mxu3  ;;  %v3588_v16 = vor.u32 1.1754944e-38, %v3587_v34  ;;  %vm3586_vm14 = vcmp.eq.f32.partialorder %v3585_v3, 8.507059e+37 }
 0x5e6   : > { %4297 = vmatpush.msrb.mxu1 %v5993_v41  ;;  %v3634_v63 = vsel %vm3631_vm13, %v3633_v13, %v3629_v50  ;;  %4625 = vmatpush.msra.mxu2 %v6023_v12  ;;  %v3549_v14 = vmul.f32 %v9001_v21, %v3548_v10  ;;  %v3498_v9 = vadd.f32 %v3490_v38, %v8763_v20  ;;  %vm3581_vm13 = vweird.f32 %v9003_v47 }
 0x5e7   : > { %5969 = vmatmul.msk.f32.gmra.mxu0 %vm2305_vm1, %v3980_v31  ;;  %3657 = vst [vmem:[%s8928_s20 + $0x30] sm:$0xff] %v3634_v63  ;;  %v5989_v63 = vld [vmem:[%s9521_s26 + $0x178] sm:$0xff] }
 0x5e8   : > { %6035 = vmatpush.msk.msrb.mxu2 %vm2801_vm4, %v4636_v35  ;;  %4219 = vmatpush.msra.mxu0 %v4063_v25  ;;  %v6454_v61 = vpop.eup %6453  ;;  %v3550_v58 = vadd.f32 %v9001_v21, %v3549_v14  ;;  %v5951_v2 = vmul.f32 -1.442695, %v3498_v9  ;;  %v5987_v35 = vld [vmem:[%s9521_s26 + $0x168] sm:$0xff]  ;;  %v5985_v14 = vld [vmem:[%s9521_s26 + $0x158] sm:$0xff] }
 0x5e9   : > { %4298 = vmatpush.msrb.mxu1 %v5992_v6  ;;  %v6456_v24 = vpop.eup %6455  ;;  %v3528_v8 = vadd.f32 1.0, %v6454_v61  ;;  %4187 = vmatpush.msra.mxu3 %v5989_v63  ;;  %v5983_v9 = vld [vmem:[%s9521_s26 + $0x148] sm:$0xff]  ;;  %v4391_v63 = vld [vmem:[%s9522_s30 + $0x30] sm:$0xff] }
 0x5ea   : > { %4220 = vmatpush.msra.mxu0 %v4062_v51  ;;  %v3554_v15 = vsel %vm3553_vm10, %v9001_v21, %v3550_v58  ;;  %v3577_v43 = vmul.f32 %v6456_v24, %v9003_v47  ;;  %6457 = vpow2.f32 %v5951_v2  ;;  %vm3582_vm12 = vweird.f32 %v6456_v24  ;;  %v5986_v51 = vld [vmem:[%s9521_s26 + $0x160] sm:$0xff]  ;;  %v5979_v61 = vld [vmem:[%s9521_s26 + $0x128] sm:$0xff]  ;;  %v5977_v2 = vld [vmem:[%s9521_s26 + $0x118] sm:$0xff] }
 0x5eb   : > { %4299 = vmatpush.msrb.mxu1 %v5991_v48  ;;  %v3559_v28 = vsel %vm3556_vm11, %v3558_v44, %v3554_v15  ;;  %6459 = vrcp.f32 %v3528_v8  ;;  %v3617_v62 = vand.u32 2147483648, %v3528_v8  ;;  %v3615_v21 = vand.u32 2147483647, %v3528_v8  ;;  %4188 = vmatpush.msra.mxu3 %v5988_v29  ;;  %v5982_v48 = vld [vmem:[%s9521_s26 + $0x140] sm:$0xff]  ;;  %v5976_v44 = vld [vmem:[%s9521_s26 + $0x110] sm:$0xff] }
 0x5ec   : > { %5996 = vmatmul.msk.f32.vlgmr.msra.gmra.mxu1 %vm2652_vm7, %v4248_v33  ;;  %4221 = vmatpush.msra.mxu0 %v4061_v52  ;;  %3652 = vst [vmem:[%s8928_s20 + $0x8] sm:$0xff] %v3559_v28  ;;  %v3578_v26 = vsub.f32 1.0, %v3577_v43  ;;  %vm3611_vm10 = vweird.f32 %v3528_v8  ;;  %v5981_v33 = vld [vmem:[%s9521_s26 + $0x138] sm:$0xff]  ;;  %v5980_v52 = vld [vmem:[%s9521_s26 + $0x130] sm:$0xff]  ;;  %v5978_v58 = vld [vmem:[%s9521_s26 + $0x120] sm:$0xff] }
 0x5ed   : > { %6000 = vmatpush.msk.msra.mxu1 %vm2801_vm4, %v4310_v11  ;;  %vm3583_vm4 = vmor %vm3581_vm13, %vm3582_vm12  ;;  %v3618_v17 = vor.u32 1.1754944e-38, %v3617_v62  ;;  %vm3616_vm12 = vcmp.eq.f32.partialorder %v3615_v21, 8.507059e+37  ;;  %4189 = vmatpush.msra.mxu3 %v5987_v35  ;;  %v5974_v15 = vld [vmem:[%s9521_s26 + $0x100] sm:$0xff]  ;;  %v4632_v29 = vld [vmem:[#allocation42 + $0xc] sm:$0xf] }
 0x5ee   : > { %4222 = vmatpush.msra.mxu0 %v4060_v36  ;;  %v3579_v30 = vmul.f32 %v6456_v24, %v3578_v26  ;;  %v4397_v62 = vld [vmem:[%s9522_s30 + $0x60] sm:$0xff] }
 0x5ef   : > { %4190 = vmatpush.msra.mxu3 %v5986_v51 }
 0x5f0   : > { %4440 = vmatpush.msrb.mxu0 %v8716_v56  ;;  %v6458_v57 = vpop.eup %6457  ;;  %v3580_v53 = vadd.f32 %v6456_v24, %v3579_v30 }
 0x5f1   : > { %v6460_v59 = vpop.eup %6459  ;;  %v3530_v5 = vadd.f32 1.0, %v6458_v57  ;;  %4191 = vmatpush.msra.mxu3 %v5985_v14  ;;  %v4400_v57 = vld [vmem:[%s9522_s30 + $0x78] sm:$0xff]  ;;  %v4390_v14 = vld [vmem:[%s9522_s30 + $0x28] sm:$0xff] }
 0x5f2   : > { %4441 = vmatpush.msrb.mxu0 %v8718_v45  ;;  %v3584_v18 = vsel %vm3583_vm4, %v6456_v24, %v3580_v53  ;;  %v3607_v19 = vmul.f32 %v6460_v59, %v3528_v8  ;;  %vm3612_vm15 = vweird.f32 %v6460_v59  ;;  %v5975_v8 = vld [vmem:[%s9521_s26 + $0x108] sm:$0xff] }
 0x5f3   : > { %v3589_v23 = vsel %vm3586_vm14, %v3588_v16, %v3584_v18  ;;  %6461 = vrcp.f32 %v3530_v5  ;;  %vm3613_vm11 = vmor %vm3611_vm10, %vm3612_vm15  ;;  %v3647_v13 = vand.u32 2147483648, %v3530_v5  ;;  %v3645_v50 = vand.u32 2147483647, %v3530_v5  ;;  %4192 = vmatpush.msra.mxu3 %v5984_v7  ;;  %v4306_v7 = vld [vmem:[#allocation40 + $0x18] sm:$0xff] }
 0x5f4   : > { %4442 = vmatpush.msrb.mxu0 %v8721_v1  ;;  %3654 = vst [vmem:[%s8928_s20 + $0x18] sm:$0xff] %v3589_v23  ;;  %v3608_v37 = vsub.f32 1.0, %v3607_v19  ;;  %vm3641_vm4 = vweird.f32 %v3530_v5  ;;  %v4398_v19 = vld [vmem:[%s9522_s30 + $0x68] sm:$0xff] }
 0x5f5   : > { %v3648_v38 = vor.u32 1.1754944e-38, %v3647_v13  ;;  %vm3646_vm15 = vcmp.eq.f32.partialorder %v3645_v50, 8.507059e+37  ;;  %4193 = vmatpush.msra.mxu3 %v5983_v9  ;;  %v4393_v50 = vld [vmem:[%s9522_s30 + $0x40] sm:$0xff]  ;;  %v4388_v9 = vld [vmem:[%s9522_s30 + $0x18] sm:$0xff] }
 0x5f6   : > { %4443 = vmatpush.msrb.mxu0 %v8724_v4  ;;  %v3609_v22 = vmul.f32 %v6460_v59, %v3608_v37 }
 0x5f7   : > { %4194 = vmatpush.msra.mxu3 %v5982_v48  ;;  %v4416_v48 = vld [vmem:[%s9522_s30 + $0xf8] sm:$0xff] }
 0x5f8   : > { %v3610_v47 = vadd.f32 %v6460_v59, %v3609_v22  ;;  %v9076_v22 = vld [vmem:[#allocation42] sm:$0xf] }
 0x5f9   : > { %v6462_v40 = vpop.eup %6461  ;;  %4195 = vmatpush.msra.mxu3 %v5981_v33  ;;  %v4387_v33 = vld [vmem:[%s9522_s30 + $0x10] sm:$0xff] }
 0x5fa   : > { %v3614_v41 = vsel %vm3613_vm11, %v6460_v59, %v3610_v47  ;;  %v3637_v27 = vmul.f32 %v6462_v40, %v3530_v5  ;;  %vm3642_vm13 = vweird.f32 %v6462_v40  ;;  %v4399_v59 = vld [vmem:[%s9522_s30 + $0x70] sm:$0xff]  ;;  %v4396_v47 = vld [vmem:[%s9522_s30 + $0x58] sm:$0xff] }
 0x5fb   : > { %v3619_v39 = vsel %vm3616_vm12, %v3618_v17, %v3614_v41  ;;  %vm3643_vm14 = vmor %vm3641_vm4, %vm3642_vm13  ;;  %4196 = vmatpush.msra.mxu3 %v5980_v52  ;;  %v4395_v41 = vld [vmem:[%s9522_s30 + $0x50] sm:$0xff] }
 0x5fc   : > { %3656 = vst [vmem:[%s8928_s20 + $0x28] sm:$0xff] %v3619_v39  ;;  %v3638_v12 = vsub.f32 1.0, %v3637_v27  ;;  %v4795_v52 = vld [vmem:[#allocation43 + $0x2] sm:$0x3] }
 0x5fd   : > { %4197 = vmatpush.msra.mxu3 %v5979_v61  ;;  %v6065_v61 = vld [vmem:[%s9523_s13 + $0x238] sm:$0xff] }
 0x5fe   : > { %v3639_v25 = vmul.f32 %v6462_v40, %v3638_v12 }
 0x5ff   : > { %4198 = vmatpush.msra.mxu3 %v5978_v58 }
 0x600   : > { %v3640_v10 = vadd.f32 %v6462_v40, %v3639_v25 }
 0x601   : > { %4199 = vmatpush.msra.mxu3 %v5977_v2  ;;  %v4386_v2 = vld [vmem:[%s9522_s30 + $0x8] sm:$0xff] }
 0x602   : > { %v3644_v31 = vsel %vm3643_vm14, %v6462_v40, %v3640_v10 }
 0x603   : > { %v3649_v6 = vsel %vm3646_vm15, %v3648_v38, %v3644_v31  ;;  %4200 = vmatpush.msra.mxu3 %v5976_v44  ;;  %v4392_v38 = vld [vmem:[%s9522_s30 + $0x38] sm:$0xff] }
 0x604   : > { %3658 = vst [vmem:[%s8928_s20 + $0x38] sm:$0xff] %v3649_v6 }
 0x605   : > { %4201 = vmatpush.msra.mxu3 %v5975_v8  ;;  %v4414_v8 = vld [vmem:[%s9522_s30 + $0xe8] sm:$0xff] }
 0x607   : > { %4202 = vmatpush.msra.mxu3 %v5974_v15 }
 0x63a   : > { %v3820_v24 = vpop.f32.mrf.mxu0 }
 0x643   : > { %v3823_v36 = vpop.f32.mrf.mxu0 }
 0x648   : > { %v3843_v43 = vpop.f32.mrf.mxu1 }
 0x649   : > { %v3844_v34 = vadd.f32 %v3843_v43, %v3820_v24  ;;  %v4385_v43 = vld [vmem:[%s9522_s30] sm:$0xff] }
 0x64b   : > { %v3936_v11 = vpop.f32.mrf.mxu0  ;;  %v3867_v3 = vadd.f32 %v8907_v55, %v3844_v34  ;;  %v6063_v34 = vld [vmem:[%s9523_s13 + $0x228] sm:$0xff] }
 0x64d   : > { %v3942_v5 = vadd.f32 %v3936_v11, %v3867_v3  ;;  %v4413_v11 = vld [vmem:[%s9522_s30 + $0xe0] sm:$0xff]  ;;  %v4412_v3 = vld [vmem:[%s9522_s30 + $0xd8] sm:$0xff] }
 0x650   : > { %v3846_v28 = vpop.f32.mrf.mxu1 }
 0x651   : > { %v3847_v18 = vadd.f32 %v3846_v28, %v3823_v36  ;;  %v6064_v36 = vld [vmem:[%s9523_s13 + $0x230] sm:$0xff] }
 0x652   : > { %v9067_v26 = vpop.f32.mrf.mxu2 }
 0x653   : > { %v3939_v30 = vpop.f32.mrf.mxu0  ;;  %v3870_v55 = vadd.f32 %v8917_v60, %v3847_v18  ;;  %v4394_v60 = vld [vmem:[%s9522_s30 + $0x48] sm:$0xff]  ;;  %v4411_v18 = vld [vmem:[%s9522_s30 + $0xd0] sm:$0xff] }
 0x655   : > { %v3943_v27 = vadd.f32 %v3939_v30, %v3870_v55 }
 0x658   : > { %v4120_v53 = vpop.f32.mrf.mxu1 }
 0x659   : > { %4223 = vmatmul.f32.vlgmr.msra.gmra.mxu0 %v4120_v53 }
 0x65a   : > { %4532 = vmatpush.msra.mxu0 %v4400_v57  ;;  %v9072_v16 = vpop.f32.mrf.mxu2 }
 0x65b   : > { %v4006_v23 = vpop.f32.mrf.mxu0 }
 0x65c   : > { %4533 = vmatpush.msra.mxu0 %v4399_v59  ;;  %v4012_v37 = vadd.f32 %v4006_v23, %v3942_v5  ;;  %v6062_v59 = vld [vmem:[%s9523_s13 + $0x220] sm:$0xff]  ;;  %v5999_v5 = vld [vmem:[%s9521_s26 + $0x308] sm:$0xff]  ;;  %v4899_v23 = vld [vmem:[#allocation43 + $0x4] sm:$0x3] }
 0x65d   : > { %4354 = vmatpush.msrb.mxu3 %v5999_v5  ;;  %v6033_v5 = vld [vmem:[%s9522_s30 + $0x300] sm:$0xff] }
 0x65e   : > { %4534 = vmatpush.msra.mxu0 %v4398_v19  ;;  %v4014_v21 = vmul.f32 %v4012_v37, %v8613_v32  ;;  %v5998_v37 = vld [vmem:[%s9521_s26 + $0x300] sm:$0xff] }
 0x65f   : > { %4355 = vmatpush.msrb.mxu3 %v5998_v37  ;;  %v4726_v37 = vld [vmem:[%s9523_s13 + $0x78] sm:$0xff] }
 0x660   : > { %4535 = vmatpush.msra.mxu0 %v4397_v62  ;;  %v4184_v40 = vpop.f32.mrf.mxu1  ;;  %v4016_v17 = vadd.f32 %v4014_v21, %v8613_v32  ;;  %v4410_v21 = vld [vmem:[%s9522_s30 + $0xc8] sm:$0xff] }
 0x661   : > { %4203 = vmatmul.f32.vlgmr.msra.gmra.mxu3 %v4184_v40  ;;  %6004 = vmatmul.msk.f32.vlgmr.msrb.gmra.mxu0 %vm1583_vm0, %v9076_v22  ;;  %v6060_v40 = vld [vmem:[%s9523_s13 + $0x210] sm:$0xff]  ;;  %v6054_v62 = vld [vmem:[%s9523_s13 + $0x168] sm:$0xff] }
 0x662   : > { %4536 = vmatpush.msra.mxu0 %v4396_v47  ;;  %v5970_v39 = vmul.f32 -1.442695, %v4016_v17  ;;  %v4604_v12 = vpop.f32.mrf.mxu2  ;;  %v4409_v17 = vld [vmem:[%s9522_s30 + $0xc0] sm:$0xff] }
 0x663   : > { %6032 = vmatmul.msk.f32.vlgmr.msra.gmra.mxu2 %vm2564_vm5, %v4604_v12  ;;  %v4408_v12 = vld [vmem:[%s9522_s30 + $0xb8] sm:$0xff] }
 0x664   : > { %4537 = vmatpush.msra.mxu0 %v4395_v41  ;;  %v4009_v13 = vpop.f32.mrf.mxu0  ;;  %6463 = vpow2.f32 %v5970_v39  ;;  %4832 = vmatpush.msra.mxu2 %v8611_v42  ;;  %v6059_v39 = vld [vmem:[%s9523_s13 + $0x208] sm:$0xff] }
 0x665   : > { %v4013_v25 = vadd.f32 %v4009_v13, %v3943_v27 }
 0x666   : > { %4538 = vmatpush.msra.mxu0 %v4394_v60  ;;  %4833 = vmatpush.msra.mxu2 %v8613_v32 }
 0x667   : > { %v4015_v10 = vmul.f32 %v4013_v25, %v8611_v42  ;;  %v6058_v25 = vld [vmem:[%s9523_s13 + $0x200] sm:$0xff] }
 0x668   : > { %4539 = vmatpush.msra.mxu0 %v4393_v50  ;;  %v4407_v50 = vld [vmem:[%s9522_s30 + $0xb0] sm:$0xff] }
 0x669   : > { %v4017_v31 = vadd.f32 %v4015_v10, %v8611_v42  ;;  %v4278_v6 = vpop.f32.mrf.mxu1  ;;  %v4389_v42 = vld [vmem:[%s9522_s30 + $0x20] sm:$0xff] }
 0x66a   : > { %5997 = vmatmul.msk.f32.vlgmr.msrb.gmra.mxu1 %vm1583_vm0, %v4278_v6  ;;  %4540 = vmatpush.msra.mxu0 %v4392_v38  ;;  %v6464_v35 = vpop.eup %6463  ;;  %v4406_v38 = vld [vmem:[%s9522_s30 + $0xa8] sm:$0xff] }
 0x66b   : > { %v5971_v51 = vmul.f32 -1.442695, %v4017_v31  ;;  %4460 = vmatpush.msrb.mxu1 %v8763_v20  ;;  %v9097_v32 = vadd.f32 1.0, %v6464_v35  ;;  %6036 = vmatmul.msk.f32.vlgmr.msrb.gmra.mxu2 %vm2797_vm6, %v4632_v29  ;;  %v4964_v31 = vld [vmem:[#allocation5] sm:$0xf]  ;;  %v4404_v35 = vld [vmem:[%s9522_s30 + $0x98] sm:$0xff] }
 0x66c   : > { %4541 = vmatpush.msra.mxu0 %v4391_v63  ;;  %4928 = vmatpush.msrb.mxu2 %v8939_v0  ;;  %v4415_v0 = vld [vmem:[%s9522_s30 + $0xf0] sm:$0xff]  ;;  %v4405_v63 = vld [vmem:[%s9522_s30 + $0xa0] sm:$0xff] }
 0x66d   : > { %6465 = vpow2.f32 %v5971_v51  ;;  %4461 = vmatpush.msrb.mxu1 %v8767_v46  ;;  %v4037_v30 = vand.u32 2147483648, %v9097_v32  ;;  %v4035_v53 = vand.u32 2147483647, %v9097_v32  ;;  %vm4031_vm10 = vweird.f32 %v9097_v32  ;;  %v4403_v51 = vld [vmem:[%s9522_s30 + $0x90] sm:$0xff] }
 0x66e   : > { %6467 = vrcp.f32 %v9097_v32  ;;  %4542 = vmatpush.msra.mxu0 %v4390_v14  ;;  %v4402_v14 = vld [vmem:[%s9522_s30 + $0x88] sm:$0xff] }
 0x66f   : > { %4462 = vmatpush.msrb.mxu1 %v8772_v49  ;;  %v4038_v55 = vor.u32 1.1754944e-38, %v4037_v30  ;;  %vm4036_vm12 = vcmp.eq.f32.partialorder %v4035_v53, 8.507059e+37 }
 0x670   : > { %4543 = vmatpush.msra.mxu0 %v4389_v42  ;;  %v6021_v42 = vld [vmem:[%s9522_s30 + $0x178] sm:$0xff] }
 0x671   : > { %4463 = vmatpush.msrb.mxu1 %v8775_v54  ;;  %4512 = vmatpush.msra.mxu3 %v6021_v42  ;;  %v4713_v42 = vld [vmem:[%s9523_s13 + $0x10] sm:$0xff] }
 0x672   : > { %6001 = vmatmul.msk.f32.vlgmr.msra.gmra.mxu1 %vm2797_vm6, %v4306_v7  ;;  %4544 = vmatpush.msra.mxu0 %v4388_v9  ;;  %v6020_v7 = vld [vmem:[%s9522_s30 + $0x170] sm:$0xff]  ;;  %v6019_v9 = vld [vmem:[%s9522_s30 + $0x168] sm:$0xff] }
 0x673   : > { %v6466_v58 = vpop.eup %6465  ;;  %4552 = vmatpush.msra.mxu1 %v4416_v48  ;;  %6057 = vmatmul.msk.f32.vlgmr.msra.gmra.mxu2 %vm2305_vm1, %v4795_v52  ;;  %v6018_v48 = vld [vmem:[%s9522_s30 + $0x160] sm:$0xff]  ;;  %v6012_v52 = vld [vmem:[%s9522_s30 + $0x130] sm:$0xff] }
 0x674   : > { %v6468_v24 = vpop.eup %6467  ;;  %v9113_v44 = vadd.f32 1.0, %v6466_v58  ;;  %4545 = vmatpush.msra.mxu0 %v4387_v33  ;;  %4944 = vmatpush.msra.mxu2 %v6065_v61  ;;  %v6013_v33 = vld [vmem:[%s9522_s30 + $0x138] sm:$0xff]  ;;  %v6010_v61 = vld [vmem:[%s9522_s30 + $0x120] sm:$0xff] }
 0x675   : > { %v4027_v15 = vmul.f32 %v6468_v24, %v9097_v32  ;;  %4553 = vmatpush.msra.mxu1 %v4415_v0  ;;  %vm4032_vm6 = vweird.f32 %v6468_v24  ;;  %v4401_v32 = vld [vmem:[%s9522_s30 + $0x80] sm:$0xff]  ;;  %4513 = vmatpush.msra.mxu3 %v6020_v7  ;;  %v6011_v0 = vld [vmem:[%s9522_s30 + $0x128] sm:$0xff]  ;;  %v6009_v58 = vld [vmem:[%s9522_s30 + $0x118] sm:$0xff] }
 0x676   : > { %6469 = vrcp.f32 %v9113_v44  ;;  %4546 = vmatpush.msra.mxu0 %v4386_v2  ;;  %4945 = vmatpush.msra.mxu2 %v6064_v36  ;;  %vm9136_vm11 = vmor %vm4031_vm10, %vm4032_vm6  ;;  %v4050_v13 = vand.u32 2147483647, %v9113_v44  ;;  %vm4046_vm13 = vweird.f32 %v9113_v44  ;;  %v6008_v2 = vld [vmem:[%s9522_s30 + $0x110] sm:$0xff]  ;;  %v4740_v7 = vld [vmem:[%s9523_s13 + $0xe8] sm:$0xff] }
 0x677   : > { %v4028_v28 = vsub.f32 1.0, %v4027_v15  ;;  %4554 = vmatpush.msra.mxu1 %v4414_v8  ;;  %4514 = vmatpush.msra.mxu3 %v6019_v9  ;;  %v4712_v9 = vld [vmem:[%s9523_s13 + $0x8] sm:$0xff] }
 0x678   : > { %4547 = vmatpush.msra.mxu0 %v4385_v43  ;;  %4946 = vmatpush.msra.mxu2 %v6063_v34  ;;  %vm4051_vm14 = vcmp.eq.f32.partialorder %v4050_v13, 8.507059e+37  ;;  %v4710_v43 = vld [vmem:[#allocation43] sm:$0x3]  ;;  %v4958_v13 = vld [vmem:[#allocation43 + $0x6] sm:$0x3] }
 0x679   : > { %v4029_v57 = vmul.f32 %v6468_v24, %v4028_v28  ;;  %4555 = vmatpush.msra.mxu1 %v4413_v11  ;;  %4515 = vmatpush.msra.mxu3 %v6018_v48  ;;  %v4711_v48 = vld [vmem:[%s9523_s13] sm:$0xff] }
 0x67a   : > { %4766 = vmatpush.msrb.mxu0 %v8716_v56  ;;  %6005 = vmatmul.msk.f32.vlgmr.msrb.gmra.mxu1 %vm1583_vm0, %v9076_v22  ;;  %v6061_v22 = vld [vmem:[%s9523_s13 + $0x218] sm:$0xff] }
 0x67b   : > { %v4030_v19 = vadd.f32 %v6468_v24, %v4029_v57  ;;  %4556 = vmatpush.msra.mxu1 %v4412_v3  ;;  %4947 = vmatpush.msra.mxu2 %v6062_v59  ;;  %v6034_v57 = vld [vmem:[%s9522_s30 + $0x308] sm:$0xff] }
 0x67c   : > { %4767 = vmatpush.msrb.mxu0 %v8718_v45  ;;  %v6470_v56 = vpop.eup %6469  ;;  %6066 = vmatmul.msk.f32.vlgmr.msrb.gmra.mxu2 %vm2498_vm2, %v4899_v23  ;;  %v6055_v23 = vld [vmem:[%s9523_s13 + $0x170] sm:$0xff] }
 0x67d   : > { %v4042_v47 = vmul.f32 %v6470_v56, %v9113_v44  ;;  %4557 = vmatpush.msra.mxu1 %v4411_v18  ;;  %v4034_v45 = vsel %vm9136_vm11, %v6468_v24, %v4030_v19  ;;  %4948 = vmatpush.msra.mxu2 %v6061_v22  ;;  %vm4047_vm2 = vweird.f32 %v6470_v56  ;;  %v6007_v24 = vld [vmem:[%s9522_s30 + $0x108] sm:$0xff]  ;;  %v6053_v22 = vld [vmem:[%s9523_s13 + $0x160] sm:$0xff] }
 0x67e   : > { %4768 = vmatpush.msrb.mxu0 %v8721_v1  ;;  %v4039_v41 = vsel %vm4036_vm12, %v4038_v55, %v4034_v45  ;;  %v4052_v1 = vand.u32 2147483648, %v9113_v44  ;;  %vm4048_vm4 = vmor %vm4046_vm13, %vm4047_vm2  ;;  %v6006_v44 = vld [vmem:[%s9522_s30 + $0x100] sm:$0xff]  ;;  %v4724_v55 = vld [vmem:[%s9523_s13 + $0x68] sm:$0xff] }
 0x67f   : > { %v4043_v27 = vsub.f32 1.0, %v4042_v47  ;;  %4558 = vmatpush.msra.mxu1 %v4410_v21  ;;  %4056 = vst [vmem:[%s9151_s7] sm:$0xff] %v4039_v41  ;;  %4949 = vmatpush.msra.mxu2 %v6060_v40  ;;  %v4723_v21 = vld [vmem:[%s9523_s13 + $0x60] sm:$0xff]  ;;  %v4722_v47 = vld [vmem:[%s9523_s13 + $0x58] sm:$0xff]  ;;  %v6051_v45 = vld [vmem:[%s9523_s13 + $0x150] sm:$0xff] }
 0x680   : > { %4769 = vmatpush.msrb.mxu0 %v8724_v4  ;;  %v4053_v4 = vor.u32 1.1754944e-38, %v4052_v1  ;;  %v4721_v40 = vld [vmem:[%s9523_s13 + $0x50] sm:$0xff]  ;;  %v6050_v41 = vld [vmem:[%s9523_s13 + $0x148] sm:$0xff]  ;;  %v6049_v1 = vld [vmem:[%s9523_s13 + $0x140] sm:$0xff] }
 0x681   : > { %v4044_v60 = vmul.f32 %v6470_v56, %v4043_v27  ;;  %4559 = vmatpush.msra.mxu1 %v4409_v17  ;;  %4950 = vmatpush.msra.mxu2 %v6059_v39  ;;  %v4720_v27 = vld [vmem:[%s9523_s13 + $0x48] sm:$0xff]  ;;  %v4719_v39 = vld [vmem:[%s9523_s13 + $0x40] sm:$0xff] }
 0x683   : > { %v4045_v10 = vadd.f32 %v6470_v56, %v4044_v60  ;;  %4560 = vmatpush.msra.mxu1 %v4408_v12  ;;  %4951 = vmatpush.msra.mxu2 %v6058_v25  ;;  %v6048_v12 = vld [vmem:[%s9523_s13 + $0x138] sm:$0xff]  ;;  %v6047_v25 = vld [vmem:[%s9523_s13 + $0x130] sm:$0xff] }
 0x684   : > { %v4718_v60 = vld [vmem:[%s9523_s13 + $0x38] sm:$0xff] }
 0x685   : > { %4561 = vmatpush.msra.mxu1 %v4407_v50  ;;  %v4049_v6 = vsel %vm4048_vm4, %v6470_v56, %v4045_v10  ;;  %6072 = vmatpush.msk.msrb.mxu2 %vm2656_vm3, %v4964_v31  ;;  %v4725_v56 = vld [vmem:[%s9523_s13 + $0x70] sm:$0xff]  ;;  %v6046_v10 = vld [vmem:[%s9523_s13 + $0x128] sm:$0xff]  ;;  %v6044_v31 = vld [vmem:[%s9523_s13 + $0x118] sm:$0xff] }
 0x686   : > { %v4054_v29 = vsel %vm4051_vm14, %v4053_v4, %v4049_v6  ;;  %v4717_v50 = vld [vmem:[%s9523_s13 + $0x30] sm:$0xff]  ;;  %v4716_v4 = vld [vmem:[%s9523_s13 + $0x28] sm:$0xff] }
 0x687   : > { %4562 = vmatpush.msra.mxu1 %v4406_v38  ;;  %4057 = vst [vmem:[%s9151_s7 + $0x8] sm:$0xff] %v4054_v29  ;;  %v6045_v38 = vld [vmem:[%s9523_s13 + $0x120] sm:$0xff]  ;;  %v6043_v6 = vld [vmem:[%s9523_s13 + $0x110] sm:$0xff] }
 0x688   : > { %v6041_v29 = vld [vmem:[%s9523_s13 + $0x100] sm:$0xff] }
 0x689   : > { %4563 = vmatpush.msra.mxu1 %v4405_v63  ;;  %v6042_v63 = vld [vmem:[%s9523_s13 + $0x108] sm:$0xff] }
 0x68b   : > { %4564 = vmatpush.msra.mxu1 %v4404_v35  ;;  %v4715_v35 = vld [vmem:[%s9523_s13 + $0x20] sm:$0xff] }
 0x68d   : > { %4565 = vmatpush.msra.mxu1 %v4403_v51  ;;  %v4714_v51 = vld [vmem:[%s9523_s13 + $0x18] sm:$0xff] }
 0x68f   : > { %4566 = vmatpush.msra.mxu1 %v4402_v14  ;;  %v4742_v14 = vld [vmem:[%s9523_s13 + $0xf8] sm:$0xff] }
 0x691   : > { %4567 = vmatpush.msra.mxu1 %v4401_v32  ;;  %v4741_v32 = vld [vmem:[%s9523_s13 + $0xf0] sm:$0xff] }
 0x693   : > { %4786 = vmatpush.msrb.mxu1 %v8763_v20  ;;  %v6017_v20 = vld [vmem:[%s9522_s30 + $0x158] sm:$0xff] }
 0x694   : > { %4516 = vmatpush.msra.mxu3 %v6017_v20  ;;  %v4739_v20 = vld [vmem:[%s9523_s13 + $0xe0] sm:$0xff] }
 0x695   : > { %4787 = vmatpush.msrb.mxu1 %v8767_v46  ;;  %v6016_v46 = vld [vmem:[%s9522_s30 + $0x150] sm:$0xff] }
 0x696   : > { %4517 = vmatpush.msra.mxu3 %v6016_v46  ;;  %v4738_v46 = vld [vmem:[%s9523_s13 + $0xd8] sm:$0xff] }
 0x697   : > { %4788 = vmatpush.msrb.mxu1 %v8772_v49  ;;  %v6015_v49 = vld [vmem:[%s9522_s30 + $0x148] sm:$0xff] }
 0x698   : > { %4518 = vmatpush.msra.mxu3 %v6015_v49  ;;  %v4737_v49 = vld [vmem:[%s9523_s13 + $0xd0] sm:$0xff] }
 0x699   : > { %4789 = vmatpush.msrb.mxu1 %v8775_v54  ;;  %v6014_v54 = vld [vmem:[%s9522_s30 + $0x140] sm:$0xff] }
 0x69a   : > { %4519 = vmatpush.msra.mxu3 %v6014_v54  ;;  %v4736_v54 = vld [vmem:[%s9523_s13 + $0xc8] sm:$0xff] }
 0x69c   : > { %4520 = vmatpush.msra.mxu3 %v6013_v33  ;;  %v4735_v33 = vld [vmem:[%s9523_s13 + $0xc0] sm:$0xff] }
 0x69e   : > { %4521 = vmatpush.msra.mxu3 %v6012_v52  ;;  %v4734_v52 = vld [vmem:[%s9523_s13 + $0xb8] sm:$0xff] }
 0x6a0   : > { %4522 = vmatpush.msra.mxu3 %v6011_v0  ;;  %v4733_v0 = vld [vmem:[%s9523_s13 + $0xb0] sm:$0xff] }
 0x6a2   : > { %4523 = vmatpush.msra.mxu3 %v6010_v61  ;;  %v4732_v61 = vld [vmem:[%s9523_s13 + $0xa8] sm:$0xff] }
 0x6a4   : > { %4524 = vmatpush.msra.mxu3 %v6009_v58  ;;  %v4731_v58 = vld [vmem:[%s9523_s13 + $0xa0] sm:$0xff] }
 0x6a6   : > { %4525 = vmatpush.msra.mxu3 %v6008_v2  ;;  %v4730_v2 = vld [vmem:[%s9523_s13 + $0x98] sm:$0xff] }
 0x6a8   : > { %4526 = vmatpush.msra.mxu3 %v6007_v24 }
 0x6aa   : > { %4527 = vmatpush.msra.mxu3 %v6006_v44  ;;  %v4729_v44 = vld [vmem:[%s9523_s13 + $0x90] sm:$0xff] }
 0x6d6   : > { %v4224_v8 = vpop.f32.mrf.mxu0 }
 0x6de   : > { %v4445_v36 = vpop.f32.mrf.mxu0 }
 0x6df   : > { %4548 = vmatmul.f32.vlgmr.msra.gmra.mxu0 %v4445_v36  ;;  %v4727_v36 = vld [vmem:[%s9523_s13 + $0x80] sm:$0xff] }
 0x6e0   : > { %4858 = vmatpush.msra.mxu0 %v4726_v37 }
 0x6e2   : > { %4859 = vmatpush.msra.mxu0 %v4725_v56 }
 0x6e4   : > { %v4204_v15 = vpop.f32.mrf.mxu3  ;;  %4860 = vmatpush.msra.mxu0 %v4724_v55 }
 0x6e5   : > { %v4225_v11 = vadd.f32 %v4224_v8, %v4204_v15  ;;  %v4728_v8 = vld [vmem:[%s9523_s13 + $0x88] sm:$0xff] }
 0x6e6   : > { %v9191_v30 = vpop.f32.mrf.mxu2  ;;  %4861 = vmatpush.msra.mxu0 %v4723_v21 }
 0x6e7   : > { %v4245_v28 = vadd.f32 %v9067_v26, %v4225_v11  ;;  %v4301_v34 = vpop.f32.mrf.mxu1  ;;  %6039 = vmatmul.msk.f32.vlgmr.msrb.gmra.mxu0 %vm1583_vm0, %v4710_v43  ;;  %v6056_v26 = vld [vmem:[%s9523_s13 + $0x178] sm:$0xff]  ;;  %v6070_v11 = vld [vmem:[%s9523_s13 + $0x310] sm:$0xff] }
 0x6e8   : > { %4862 = vmatpush.msra.mxu0 %v4722_v47 }
 0x6e9   : > { %v9194_v3 = vadd.f32 %v4301_v34, %v4245_v28  ;;  %v6069_v28 = vld [vmem:[%s9523_s13 + $0x308] sm:$0xff]  ;;  %v6068_v34 = vld [vmem:[%s9523_s13 + $0x300] sm:$0xff] }
 0x6ea   : > { %4863 = vmatpush.msra.mxu0 %v4721_v40 }
 0x6ec   : > { %4864 = vmatpush.msra.mxu0 %v4720_v27 }
 0x6ee   : > { %v4660_v59 = vpop.f32.mrf.mxu2  ;;  %4865 = vmatpush.msra.mxu0 %v4719_v39 }
 0x6ef   : > { %v4334_v53 = vpop.f32.mrf.mxu1 }
 0x6f0   : > { %6002 = vmatmul.msk.f32.vlgmr.msrb.gmra.mxu3 %vm2305_vm1, %v4334_v53  ;;  %4866 = vmatpush.msra.mxu0 %v4718_v60 }
 0x6f1   : > { %4680 = vmatpush.msrb.mxu3 %v6034_v57 }
 0x6f2   : > { %4867 = vmatpush.msra.mxu0 %v4717_v50 }
 0x6f3   : > { %4681 = vmatpush.msrb.mxu3 %v6033_v5  ;;  %v6483_v5 = vld [vmem:[#allocation4] sm:$0xff] }
 0x6f4   : > { %4868 = vmatpush.msra.mxu0 %v4716_v4 }
 0x6f6   : > { %v4835_v19 = vpop.f32.mrf.mxu2  ;;  %4869 = vmatpush.msra.mxu0 %v4715_v35 }
 0x6f7   : > { %v4465_v18 = vpop.f32.mrf.mxu1 }
 0x6f8   : > { %4528 = vmatmul.f32.vlgmr.msra.gmra.mxu3 %v9072_v16  ;;  %4568 = vmatmul.f32.vlgmr.msra.gmra.mxu1 %v4465_v18  ;;  %v6052_v16 = vld [vmem:[%s9523_s13 + $0x158] sm:$0xff] }
 0x6f9   : > { %4838 = vmatpush.msra.mxu3 %v6056_v26  ;;  %4878 = vmatpush.msra.mxu1 %v4742_v14 }
 0x6fa   : > { %4870 = vmatpush.msra.mxu0 %v4714_v51 }
 0x6fb   : > { %4839 = vmatpush.msra.mxu3 %v6055_v23  ;;  %4879 = vmatpush.msra.mxu1 %v4741_v32 }
 0x6fc   : > { %4871 = vmatpush.msra.mxu0 %v4713_v42 }
 0x6fd   : > { %4840 = vmatpush.msra.mxu3 %v6054_v62  ;;  %4880 = vmatpush.msra.mxu1 %v4740_v7 }
 0x6fe   : > { %4872 = vmatpush.msra.mxu0 %v4712_v9 }
 0x6ff   : > { %4841 = vmatpush.msra.mxu3 %v6053_v22  ;;  %v4930_v17 = vpop.f32.mrf.mxu2  ;;  %4881 = vmatpush.msra.mxu1 %v4739_v20 }
 0x700   : > { %6037 = vmatmul.msk.f32.vlgmr.msrb.gmra.mxu3 %vm2305_vm1, %v4660_v59  ;;  %6040 = vmatmul.msk.f32.vlgmr.msrb.gmra.mxu1 %vm1583_vm0, %v4710_v43  ;;  %v6071_v43 = vld [vmem:[%s9523_s13 + $0x318] sm:$0xff] }
 0x701   : > { %4842 = vmatpush.msra.mxu3 %v6052_v16  ;;  %6067 = vmatmul.msk.f32.vlgmr.msra.gmra.mxu2 %vm2564_vm5, %v4930_v17 }
 0x702   : > { %4873 = vmatpush.msra.mxu0 %v4711_v48  ;;  %4882 = vmatpush.msra.mxu1 %v4738_v46 }
 0x703   : > { %4843 = vmatpush.msra.mxu3 %v6051_v45  ;;  %v4383_v45 = vld [vmem:[#allocation5] sm:$0xf] }
 0x704   : > { %4883 = vmatpush.msra.mxu1 %v4737_v49 }
 0x705   : > { %4844 = vmatpush.msra.mxu3 %v6050_v41 }
 0x706   : > { %4884 = vmatpush.msra.mxu1 %v4736_v54 }
 0x707   : > { %4845 = vmatpush.msra.mxu3 %v6049_v1 }
 0x708   : > { %4885 = vmatpush.msra.mxu1 %v4735_v33 }
 0x709   : > { %4846 = vmatpush.msra.mxu3 %v6048_v12  ;;  %6073 = vmatmul.msk.f32.vlgmr.msrb.gmra.mxu2 %vm2652_vm7, %v4958_v13 }
 0x70a   : > { %4886 = vmatpush.msra.mxu1 %v4734_v52 }
 0x70b   : > { %4847 = vmatpush.msra.mxu3 %v6047_v25 }
 0x70c   : > { %4887 = vmatpush.msra.mxu1 %v4733_v0 }
 0x70d   : > { %4848 = vmatpush.msra.mxu3 %v6046_v10 }
 0x70e   : > { %4888 = vmatpush.msra.mxu1 %v4732_v61 }
 0x70f   : > { %4849 = vmatpush.msra.mxu3 %v6045_v38 }
 0x710   : > { %4889 = vmatpush.msra.mxu1 %v4731_v58 }
 0x711   : > { %4850 = vmatpush.msra.mxu3 %v6044_v31 }
 0x712   : > { %4890 = vmatpush.msra.mxu1 %v4730_v2 }
 0x713   : > { %4851 = vmatpush.msra.mxu3 %v6043_v6 }
 0x714   : > { %4891 = vmatpush.msra.mxu1 %v4729_v44 }
 0x715   : > { %4852 = vmatpush.msra.mxu3 %v6042_v63 }
 0x716   : > { %4892 = vmatpush.msra.mxu1 %v4728_v8 }
 0x717   : > { %4853 = vmatpush.msra.mxu3 %v6041_v29 }
 0x718   : > { %4854 = vmatmul.f32.vlgmr.msra.gmra.mxu3 %v4835_v19  ;;  %4893 = vmatpush.msra.mxu1 %v4727_v36 }
 0x719   : > { %5006 = vmatpush.msrb.mxu3 %v6071_v43 }
 0x71b   : > { %5007 = vmatpush.msrb.mxu3 %v6070_v11 }
 0x71d   : > { %5008 = vmatpush.msrb.mxu3 %v6069_v28 }
 0x71f   : > { %5009 = vmatpush.msrb.mxu3 %v6068_v34 }
 0x75c   : > { %v4549_v24 = vpop.f32.mrf.mxu0 }
 0x764   : > { %v4771_v15 = vpop.f32.mrf.mxu0 }
 0x765   : > { %4874 = vmatmul.f32.vlgmr.msra.gmra.mxu0 %v4771_v15 }
 0x773   : > { %v4357_v57 = vpop.f32.mrf.mxu3 }
 0x774   : > { %v4360_v53 = vadd.f32 %v4357_v57, %v9194_v3 }
 0x775   : > { %v4569_v59 = vpop.f32.mrf.mxu1 }
 0x776   : > { %v4361_v26 = vmul.f32 %v6483_v5, %v4360_v53 }
 0x778   : > { %v4362_v18 = vadd.f32 %v6483_v5, %v4361_v26 }
 0x77a   : > { %v6003_v19 = vmul.f32 -1.442695, %v4362_v18 }
 0x77b   : > { %v4529_v23 = vpop.f32.mrf.mxu3 }
 0x77c   : > { %6471 = vpow2.f32 %v6003_v19  ;;  %v4550_v37 = vadd.f32 %v4549_v24, %v4529_v23 }
 0x77d   : > { %v4791_v56 = vpop.f32.mrf.mxu1 }
 0x77e   : > { %v4570_v62 = vadd.f32 %v4569_v59, %v4550_v37  ;;  %4894 = vmatmul.f32.vlgmr.msra.gmra.mxu1 %v4791_v56 }
 0x780   : > { %v4630_v22 = vadd.f32 %v9191_v30, %v4570_v62 }
 0x782   : > { %v6472_v55 = vpop.eup %6471 }
 0x783   : > { %v4366_v21 = vadd.f32 1.0, %v6472_v55  ;;  %v4683_v16 = vpop.f32.mrf.mxu3 }
 0x784   : > { %v4686_v47 = vadd.f32 %v4683_v16, %v4630_v22  ;;  %v9258_v3 = vpop.f32.mrf.mxu2 }
 0x785   : > { %6473 = vrcp.f32 %v4366_v21  ;;  %v4378_v30 = vand.u32 2147483648, %v4366_v21  ;;  %v4376_v13 = vand.u32 2147483647, %v4366_v21  ;;  %vm4372_vm3 = vweird.f32 %v4366_v21 }
 0x786   : > { %v4687_v40 = vmul.f32 %v4686_v47, %v4383_v45 }
 0x787   : > { %v4379_v38 = vor.u32 1.1754944e-38, %v4378_v30  ;;  %vm4377_vm15 = vcmp.eq.f32.partialorder %v4376_v13, 8.507059e+37 }
 0x788   : > { %v4688_v17 = vadd.f32 %v4687_v40, %v4383_v45 }
 0x78a   : > { %v6038_v41 = vmul.f32 -1.442695, %v4688_v17 }
 0x78b   : > { %v6474_v27 = vpop.eup %6473 }
 0x78c   : > { %v4368_v1 = vmul.f32 %v6474_v27, %v4366_v21  ;;  %6475 = vpow2.f32 %v6038_v41  ;;  %v4988_v39 = vpop.f32.mrf.mxu2  ;;  %vm4373_vm1 = vweird.f32 %v6474_v27 }
 0x78d   : > { %6074 = vmatmul.msk.f32.vlgmr.msrb.gmra.mxu3 %vm1583_vm0, %v4988_v39  ;;  %vm4374_vm7 = vmor %vm4372_vm3, %vm4373_vm1 }
 0x78e   : > { %v4369_v12 = vsub.f32 1.0, %v4368_v1 }
 0x790   : > { %v4370_v60 = vmul.f32 %v6474_v27, %v4369_v12 }
 0x792   : > { %v6476_v25 = vpop.eup %6475  ;;  %v4371_v50 = vadd.f32 %v6474_v27, %v4370_v60 }
 0x793   : > { %v4692_v10 = vadd.f32 1.0, %v6476_v25 }
 0x794   : > { %v4375_v4 = vsel %vm4374_vm7, %v6474_v27, %v4371_v50 }
 0x795   : > { %6477 = vrcp.f32 %v4692_v10  ;;  %v4380_v31 = vsel %vm4377_vm15, %v4379_v38, %v4375_v4  ;;  %v4704_v35 = vand.u32 2147483648, %v4692_v10  ;;  %v4702_v14 = vand.u32 2147483647, %v4692_v10 }
 0x796   : > { %4382 = vst.msk [vmem:[%s9263_s6] sm:$0xff] %vm2564_vm5, %v4380_v31  ;;  %vm4698_vm6 = vweird.f32 %v4692_v10 }
 0x797   : > { %v4705_v42 = vor.u32 1.1754944e-38, %v4704_v35  ;;  %vm4703_vm11 = vcmp.eq.f32.partialorder %v4702_v14, 8.507059e+37 }
 0x79b   : > { %v6478_v6 = vpop.eup %6477 }
 0x79c   : > { %v4694_v63 = vmul.f32 %v6478_v6, %v4692_v10  ;;  %vm4699_vm0 = vweird.f32 %v6478_v6 }
 0x79d   : > { %vm4700_vm10 = vmor %vm4698_vm6, %vm4699_vm0 }
 0x79e   : > { %v4695_v29 = vsub.f32 1.0, %v4694_v63 }
 0x7a0   : > { %v4696_v51 = vmul.f32 %v6478_v6, %v4695_v29 }
 0x7a2   : > { %v4697_v32 = vadd.f32 %v6478_v6, %v4696_v51 }
 0x7a4   : > { %v4701_v7 = vsel %vm4700_vm10, %v6478_v6, %v4697_v32 }
 0x7a5   : > { %v4706_v9 = vsel %vm4703_vm11, %v4705_v42, %v4701_v7 }
 0x7a6   : > { %4708 = vst.msk [vmem:[%s1563_s1] sm:$0xf] %vm2793_vm8, %v4706_v9 }
 0x7a7   : > { %7261 = shalt.err (!%p7258_p3)
}
 0x7a8   : > { %s7532_s11 = smov 128   ;;  %s9527_s7 = sld [smem:[#allocation102_spill]] }
 0x7a9   : > { %s7533_s16 = smov 8   ;;  %s6086_s17 = sshll.u32 %s7740_s23, 2 }
 0x7aa   : > { %6185 = dma.vmem_to_hbm [thread:$0]  (%p7925_p5), %s5088_s12, 256, %s5090_s19, %s5043_s2, %s7532_s11, %s7532_s11, %s7533_s16  }
 0x7ab   : > { %s5118_s24 = sshll.u32 %s1563_s1, 4  ;;  %s6092_s5 = sshll.u32 %s7740_s23, 6  ;;  %s5119_s24 = int_to_ptr.vmem [resolvable:$true] %s5118_s24 }
 0x7ac   : > { %s5053_s9 = scalar_lea.sflag [#allocation51], %s8144_s8 }
 0x7ae   : > { %s5116_s3 = scalar_lea.hbm %s9527_s7, %s6086_s17  ;;  %s7282_s14 = scalar_lea.hbm %s9527_s7, 8 }
 0x7af   : > { %s5120_s4 = sshll.u32 %s5116_s3, 4  ;;  %s5121_s4 = int_to_ptr.hbm [resolvable:$true] %s5120_s4 }
 0x7b0   : > { %s7276_s10 = sshra.s32 %s5121_s4, 4  ;;  %s7277_s10 = int_to_ptr.hbm [resolvable:$true] %s7276_s10 }
 0x7b1   : > { %s7278_s13 = scalar_lea.hbm %s7277_s10, 4  ;;  %p7283_p11 = scmp.lt.s32.totalorder %s7277_s10, %s9527_s7 }
 0x7b2   : > { %p7279_p7 = scmp.ne.s32.totalorder %s7277_s10, %s7278_s13  ;;  %p7284_p10 = scmp.lt.s32.totalorder %s7282_s14, %s7278_s13 }
 0x7b4   : > { %p7280_p9 = pnand %p7279_p7, %p7925_p5  ;;  %p7285_p6 = por %p7284_p10, %p7283_p11 }
 0x7b6   : > { %p7281_p4 = pneg %p7280_p9 }
 0x7b8   : > { %p7286_p12 = pnand %p7285_p6, %p7281_p4 }
 0x7ba   : > { %7289 = shalt.err (!%p7286_p12)
}
 0x7bb   : > { %s9528_s1 = sld [smem:[#allocation99_spill]]  ;;  %s5070_s19 = sshll.u32 %s8928_s20, 4  ;;  %s5071_s19 = int_to_ptr.vmem [resolvable:$true] %s5070_s19 }
 0x7bc   : > { %6187 = dma.vmem_to_hbm [thread:$0]  (%p7925_p5), %s5119_s24, 64, %s5121_s4, %s5053_s9  }
 0x7bd   : > { %s6085_s13 = sshll.u32 %s7740_s23, 3  ;;  %s5038_s14 = scalar_lea.sflag [#allocation9], %s8131_s22 }
 0x7c1   : > { %s5069_s12 = scalar_lea.hbm %s9528_s1, %s6092_s5  ;;  %s7310_s17 = scalar_lea.hbm %s9528_s1, 128 }
 0x7c2   : > { %s5072_s10 = sshll.u32 %s5069_s12, 4  ;;  %s5073_s10 = int_to_ptr.hbm [resolvable:$true] %s5072_s10 }
 0x7c3   : > { %s7304_s11 = sshra.s32 %s5073_s10, 4  ;;  %s7305_s11 = int_to_ptr.hbm [resolvable:$true] %s7304_s11 }
 0x7c4   : > { %s7306_s16 = scalar_lea.hbm %s7305_s11, 64  ;;  %p7311_p1 = scmp.lt.s32.totalorder %s7305_s11, %s9528_s1 }
 0x7c5   : > { %p7307_p13 = scmp.ne.s32.totalorder %s7305_s11, %s7306_s16  ;;  %p7312_p2 = scmp.lt.s32.totalorder %s7310_s17, %s7306_s16 }
 0x7c7   : > { %p7308_p0 = pnand %p7307_p13, %p7925_p5  ;;  %p7313_p3 = por %p7312_p2, %p7311_p1 }
 0x7c9   : > { %p7309_p8 = pneg %p7308_p0 }
 0x7cb   : > { %p7314_p7 = pnand %p7313_p3, %p7309_p8 }
 0x7cd   : > { %7317 = shalt.err (!%p7314_p7)
}
 0x7ce   : > { %s7534_s5 = smov 256   ;;  %s9529_s20 = sld [smem:[#allocation101_spill]] }
 0x7cf   : > { %s7535_s24 = smov 16   ;;  %s5104_s4 = sshll.u32 %s9263_s6, 4  ;;  %s5105_s4 = int_to_ptr.vmem [resolvable:$true] %s5104_s4 }
 0x7d0   : > { %6184 = dma.vmem_to_hbm [thread:$0]  (%p7925_p5), %s5071_s19, 1024, %s5073_s10, %s5038_s14, %s7534_s5, %s7534_s5, %s7535_s24  }
 0x7d4   : > { %s5102_s3 = scalar_lea.hbm %s9529_s20, %s6085_s13  ;;  %s7338_s17 = scalar_lea.hbm %s9529_s20, 16 }
 0x7d5   : > { %s5106_s12 = sshll.u32 %s5102_s3, 4  ;;  %s5107_s12 = int_to_ptr.hbm [resolvable:$true] %s5106_s12 }
 0x7d6   : > { %s7332_s11 = sshra.s32 %s5107_s12, 4  ;;  %s7333_s11 = int_to_ptr.hbm [resolvable:$true] %s7332_s11 }
 0x7d7   : > { %s7334_s16 = scalar_lea.hbm %s7333_s11, 8  ;;  %p7339_p10 = scmp.lt.s32.totalorder %s7333_s11, %s9529_s20 }
 0x7d8   : > { %p7335_p9 = scmp.ne.s32.totalorder %s7333_s11, %s7334_s16  ;;  %p7340_p6 = scmp.lt.s32.totalorder %s7338_s17, %s7334_s16 }
 0x7da   : > { %p7336_p4 = pnand %p7335_p9, %p7925_p5  ;;  %p7341_p12 = por %p7340_p6, %p7339_p10 }
 0x7dc   : > { %p7337_p11 = pneg %p7336_p4 }
 0x7de   : > { %p7342_p13 = pnand %p7341_p12, %p7337_p11 }
 0x7e0   : > { %7345 = shalt.err (!%p7342_p13)
}
 0x7e1   : > { %6186 = dma.vmem_to_hbm [thread:$0]  (%p7925_p5), %s5105_s4, 128, %s5107_s12, %s5043_s2   ;;  %v4855_v20 = vpop.f32.mrf.mxu3  ;;  %v4709_v61 = vld [vmem:[#allocation6] sm:$0x3] }
 0x7e2   : > { %v4875_v48 = vpop.f32.mrf.mxu0  ;;  %s9530_s6 = sld [smem:[#allocation103_spill]]  ;;  %s6087_s2 = sshll.u32 %s7740_s23, 1 }
 0x7e3   : > { %v4876_v49 = vadd.f32 %v4875_v48, %v4855_v20  ;;  %s9531_s10 = sshll.u32 %s8131_s22, 1 }
 0x7e4   : > { %s1570_s13 = scalar_lea.vmem [#allocation52], %s9531_s10 }
 0x7e5   : > { %s5132_s14 = sshll.u32 %s1570_s13, 4  ;;  %s5133_s14 = int_to_ptr.vmem [resolvable:$true] %s5132_s14 }
 0x7e8   : > { %s5130_s19 = scalar_lea.hbm %s9530_s6, %s6087_s2  ;;  %s7366_s24 = scalar_lea.hbm %s9530_s6, 4 }
 0x7e9   : > { %s5134_s5 = sshll.u32 %s5130_s19, 4  ;;  %s5135_s5 = int_to_ptr.hbm [resolvable:$true] %s5134_s5 }
 0x7ea   : > { %s7360_s23 = sshra.s32 %s5135_s5, 4  ;;  %s7361_s23 = int_to_ptr.hbm [resolvable:$true] %s7360_s23 }
 0x7eb   : > { %s7362_s22 = scalar_lea.hbm %s7361_s23, 2  ;;  %p7367_p2 = scmp.lt.s32.totalorder %s7361_s23, %s9530_s6 }
 0x7ec   : > { %p7363_p0 = scmp.ne.s32.totalorder %s7361_s23, %s7362_s22  ;;  %p7368_p3 = scmp.lt.s32.totalorder %s7366_s24, %s7362_s22 }
 0x7ee   : > { %p7364_p8 = pnand %p7363_p0, %p7925_p5  ;;  %p7369_p7 = por %p7368_p3, %p7367_p2 }
 0x7f0   : > { %p7365_p1 = pneg %p7364_p8 }
 0x7f2   : > { %p7370_p9 = pnand %p7369_p7, %p7365_p1 }
 0x7fb   : > { %v4895_v46 = vpop.f32.mrf.mxu1 }
 0x7fc   : > { %v4896_v54 = vadd.f32 %v4895_v46, %v4876_v49 }
 0x7fe   : > { %v4956_v33 = vadd.f32 %v9258_v3, %v4896_v54 }
 0x810   : > { %v5011_v52 = vpop.f32.mrf.mxu3 }
 0x811   : > { %v5014_v0 = vadd.f32 %v5011_v52, %v4956_v33 }
 0x813   : > { %v5015_v58 = vmul.f32 %v5014_v0, %v4709_v61 }
 0x815   : > { %v5016_v2 = vadd.f32 %v5015_v58, %v4709_v61 }
 0x817   : > { %v6075_v24 = vmul.f32 -1.442695, %v5016_v2 }
 0x819   : > { %6479 = vpow2.f32 %v6075_v24 }
 0x81f   : > { %v6480_v44 = vpop.eup %6479 }
 0x820   : > { %v5020_v8 = vadd.f32 1.0, %v6480_v44 }
 0x822   : > { %6481 = vrcp.f32 %v5020_v8  ;;  %v5032_v11 = vand.u32 2147483648, %v5020_v8  ;;  %v5030_v34 = vand.u32 2147483647, %v5020_v8  ;;  %vm5026_vm8 = vweird.f32 %v5020_v8 }
 0x824   : > { %v5033_v53 = vor.u32 1.1754944e-38, %v5032_v11  ;;  %vm5031_vm2 = vcmp.eq.f32.partialorder %v5030_v34, 8.507059e+37 }
 0x828   : > { %v6482_v36 = vpop.eup %6481 }
 0x829   : > { %v5022_v15 = vmul.f32 %v6482_v36, %v5020_v8  ;;  %vm5027_vm5 = vweird.f32 %v6482_v36 }
 0x82a   : > { %vm5028_vm12 = vmor %vm5026_vm8, %vm5027_vm5 }
 0x82b   : > { %v5023_v43 = vsub.f32 1.0, %v5022_v15 }
 0x82d   : > { %v5024_v28 = vmul.f32 %v6482_v36, %v5023_v43 }
 0x82f   : > { %v5025_v57 = vadd.f32 %v6482_v36, %v5024_v28 }
 0x831   : > { %v5029_v59 = vsel %vm5028_vm12, %v6482_v36, %v5025_v57 }
 0x832   : > { %v5034_v5 = vsel %vm5031_vm2, %v5033_v53, %v5029_v59 }
 0x833   : > { %5036 = vst.msk [vmem:[%s1570_s13] sm:$0x3] %vm2932_vm9, %v5034_v5 }
 0x834   : > { %7373 = shalt.err (!%p7370_p9)
}
 0x835   : > { %6188 = dma.vmem_to_hbm [thread:$0]  (%p7925_p5), %s5133_s14, 32, %s5135_s5, %s5053_s9  }
 0x836 PF: > { %s5146_s3 = sand.u32 1, %s7456_s0   ;;  %p9532_p4 = scmp.ne.s32.totalorder %s9471_s29, 0 }
 0x837   : > { %p9533_p11 = scmp.ge.s32.totalorder %s7468_s18, 2  ;;  %s5147_s4 = scalar_lea.sflag [#allocation9], %s5146_s3 }
 0x839   : > { %p6272_p10 = pnand %p9533_p11, %p9532_p4 }
 0x83b   : > { %p6273_p6 = pneg %p6272_p10 }
 0x83d   : > { %7443 = dma.done.wait (%p6273_p6), %s5147_s4, 1024  }
 0x83e   : > { %7445 = vsyncadd (%p6273_p6), %s5147_s4, 4294966272  ;;  %s9534_s12 = sadd.s32 4294967294, %s7468_s18  }
 0x83f   : > { %s5156_s11 = sand.u32 1, %s9534_s12  }
 0x840   : > { %s5157_s16 = scalar_lea.sflag [#allocation48], %s5156_s11 }
 0x841   : > { %7447 = dma.done.wait (%p6273_p6), %s5157_s16, 384  }
 0x842   : > { %7449 = vsyncadd (%p6273_p6), %s5157_s16, 4294966912  ;;  %s5177_s28 = scalar_lea.sflag [#allocation51], %s5156_s11 }
 0x843   : > { %7451 = dma.done.wait (%p6273_p6), %s5177_s28, 96  }
 0x844   : > { %7453 = vsyncadd (%p6273_p6), %s5177_s28, 4294967200  ;;  %s9535_s18 = sld [smem:[#allocation106_spill]]  ;;  %s9538_s0 = smov %s7460_s15 }
 0x845   : > { %s9536_s9 = sld [smem:[#allocation104_spill]] }
 0x846   : > { %s9537_s16 = sld [smem:[#allocation107_spill]] }
 0x84a   : > { %p105_p5 = scmp.ge.s32.totalorder %s9535_s18, 4  }
 0x84b   : > { %s9539_s15 = smov %s9536_s9 }
 0x84c   :  { %107 = sbr.rel (!%p105_p5) target bundleno = 100 (0x64), region = 456 }
 0x851   :  { %5193 = vsyncpa [#allocation8], 1 }
 0x852   :  { %5195 = vsyncpa [#allocation8 + $0x1], 1 }
 0x853   :  { %5196 = vsyncpa [#allocation11], 1 }
 0x854   :  { %5198 = vsyncpa [#allocation11 + $0x1], 1 }
 0x855   :  { %5199 = vsyncpa [#allocation14], 1 }
 0x856   :  { %5201 = vsyncpa [#allocation14 + $0x1], 1 }
 0x857   :  { %5202 = vsyncpa [#allocation17], 1 }
 0x858   :  { %5203 = vsyncpa [#allocation20], 1 }
 0x859   :  { %5204 = vsyncpa [#allocation23], 1 }
 0x85a   :  { %5205 = vsyncpa [#allocation26], 1 }
 0x85b   :  { %5206 = vsyncpa [#allocation29], 1 }
 0x85c   :  { %5207 = vsyncpa [#allocation32], 1 }
 0x85d   :  { %5208 = vsyncpa [#allocation35], 1 }
 0x85e   :  { %5209 = vsyncpa [#allocation38], 1 }
 0x85f   :  { %5210 = vsyncpa [#allocation41], 1 }
 0x860   :  { %5211 = vsyncpa [#allocation44], 1 }
 0x861   :  { %5212 = vsyncpa [#allocation9], 1 }
 0x862   :  { %5214 = vsyncpa [#allocation9 + $0x1], 1 }
 0x863   :  { %5215 = vsyncpa [#allocation48], 1 }
 0x864   :  { %5217 = vsyncpa [#allocation48 + $0x1], 1 }
 0x865   :  { %5218 = vsyncpa [#allocation51], 1 }
 0x866   :  { %5220 = vsyncpa [#allocation51 + $0x1], 1 }

</bundles_post_ra>
